<compile_context>
chip_gen: v7x
topology: tpu7x:2x2x1
jax: 0.10.0
libtpu: 0.0.40
codegen_flags: <defaults>
</compile_context>

<pallas_src>
import functools
import math

import jax
import jax.numpy as jnp
from jax.experimental import pallas as pl
from jax.experimental.pallas import tpu as pltpu

EPS = 1e-5  # nn.LayerNorm default eps


def _layer_norm(x, gamma, beta):
    mu = jnp.mean(x, axis=-1, keepdims=True)
    var = jnp.mean((x - mu) ** 2, axis=-1, keepdims=True)
    return (x - mu) * jax.lax.rsqrt(var + EPS) * gamma + beta


# ---------------------------------------------------------------------------
# Fused encoder kernel: LN + fused QKV + attention + out-proj + residual +
# LN + FFN + residual, looped over num_layers, for a block of bb batch elems.
# ---------------------------------------------------------------------------
def _encoder_kernel(nt, num_heads, head_dim, num_layers, compute_dtype,
                    x_ref, ln_ref, wqkv_ref, bqkv_ref, wo_ref, bo_ref,
                    w1_ref, b1_ref, w2_ref, b2_ref, out_ref):
    bb, n_tot, d = x_ref.shape
    bn = bb * n_tot
    hd = head_dim
    scale = 1.0 / math.sqrt(hd)

    # Token slab flattened so LN / QKV / out-proj / FFN see M = bb * n_tot.
    # (leading-dim merge; layout-free since n_tot is a multiple of 8)
    x0 = x_ref[...].reshape(bn, d).astype(jnp.float32)

    # ---- weights / biases: read (and cast) ONCE, hoisted out of the loop ----
    ln = ln_ref[...]                              # (4, d) f32
    g1, bt1, g2, bt2 = ln[0], ln[1], ln[2], ln[3]
    wqkv = wqkv_ref[...].astype(compute_dtype)    # (d, 3d)  fused [Wq|Wk|Wv]
    bqkv = bqkv_ref[...]                          # (1, 3d)  f32
    wo = wo_ref[...].astype(compute_dtype)        # (d, d)
    bo = bo_ref[...]                              # (1, d)
    w1 = w1_ref[...].astype(compute_dtype)        # (d, ff)
    b1 = b1_ref[...]                              # (1, ff)
    w2 = w2_ref[...].astype(compute_dtype)        # (ff, d)
    b2 = b2_ref[...]                              # (1, d)

    def mm(a, b):            # 2-D MXU matmul, f32 accumulation
        return jnp.dot(a.astype(compute_dtype), b,
                       preferred_element_type=jnp.float32)

    def bmm(spec, a, b):     # single-leading-batch MXU matmul, f32 accumulation
        return jnp.einsum(spec, a.astype(compute_dtype), b.astype(compute_dtype),
                          preferred_element_type=jnp.float32)

    hb = num_heads * bb

    def layer(_, x):
        # ---- multi-head KR attention (pre-norm; K/V from context rows) ----
        xn = _layer_norm(x, g1, bt1)                       # (bn, d)
        qkv = mm(xn, wqkv) + bqkv                          # (bn, 3d) f32

        # Static per-head lane slices stacked on a new leading head axis;
        # the reshape (H, bn, hd) -> (H*bb, n_tot, hd) is a free leading split.
        def heads(base):
            return jnp.stack(
                [qkv[:, base + h * hd: base + (h + 1) * hd]
                 for h in range(num_heads)], axis=0)        # (H, bn, hd)

        q = heads(0).reshape(hb, n_tot, hd)                 # (H*bb, N,  hd)
        k = heads(d).reshape(hb, n_tot, hd)[:, nt:, :]      # (H*bb, nc, hd)
        v = heads(2 * d).reshape(hb, n_tot, hd)[:, nt:, :]  # (H*bb, nc, hd)

        s = bmm('gqf,gkf->gqk', q, k) * scale               # (H*bb, N, nc)
        s = s - jnp.max(s, axis=-1, keepdims=True)
        p = jnp.exp(s)
        p = p * pl.reciprocal(jnp.sum(p, axis=-1, keepdims=True), approx=True)
        o = bmm('gqk,gkf->gqf', p, v)                       # (H*bb, N, hd)

        # Concatenate heads back to (bn, d) and do ONE out-projection matmul.
        o = o.reshape(num_heads, bn, hd)                    # free leading merge
        o_cat = jnp.concatenate([o[h] for h in range(num_heads)], axis=1)
        x = x + mm(o_cat, wo) + bo                          # residual

        # ---- feed-forward (pre-norm; shared weights, both streams) ----
        xn2 = _layer_norm(x, g2, bt2)
        hid = jnp.maximum(mm(xn2, w1) + b1, 0.0)            # ReLU
        x = x + mm(hid, w2) + b2                            # residual
        return x

    # Unroll only while shallow: full unrolling multiplies live ranges by L.
    x = jax.lax.fori_loop(0, num_layers, layer, x0,
                          unroll=(num_layers <= 4))

    # Only the target rows are returned (first nt rows of each element).
    # TODO(synk): lane-dense (bb, nt*d) writeback left out — only worthwhile at
    #             production m and needs an in-kernel minor-dim merge relayout.
    out_ref[...] = x.reshape(bb, n_tot, d)[:, :nt, :].astype(out_ref.dtype)


# ---------------------------------------------------------------------------
# Wrapper-side layout plumbing + pallas_call
# ---------------------------------------------------------------------------
def _pack_params(params, compute_dtype):
    """Pack per-layer params: fused QKV, packed LN slab, compute-dtype weights."""
    g1, bt1, wq, bq, wk, bk, wv, bv, wo, bo = params["attn"]
    g2, bt2, w1, b1, w2, b2 = params["ffn"]
    r = lambda a: a.reshape(1, -1)
    ln = jnp.concatenate([r(g1), r(bt1), r(g2), r(bt2)], axis=0)       # (4, d)
    wqkv = jnp.concatenate([wq, wk, wv], axis=1)                       # (d, 3d)
    bqkv = jnp.concatenate([r(bq), r(bk), r(bv)], axis=1)              # (1, 3d)
    cw = lambda w: w.astype(compute_dtype)   # weights DMA'd in compute dtype
    return (ln, cw(wqkv), bqkv, cw(wo), r(bo),
            cw(w1), r(b1), cw(w2), r(b2))


def _largest_divisor_leq(m, cap):
    best = 1
    for cand in range(1, m + 1):
        if m % cand == 0 and cand <= cap:
            best = cand
    return best


def tnpkr_transformer_encoder(xc, xt, params, *, num_layers, num_heads,
                              mask=None, compute_dtype=jnp.float32,
                              batch_block=None, core_parallel=False):
    # mask intentionally ignored: the PyTorch module only warns and never uses it.
    del mask
    m, nc, d = xc.shape
    _, nt, _ = xt.shape
    assert d % num_heads == 0
    head_dim = d // num_heads
    n_tot = nt + nc

    # One token slab per batch element: [targets ; context].
    x = jnp.concatenate([xt, xc], axis=1)                              # (m, n_tot, d)
    packed = _pack_params(params, compute_dtype)
    ff = packed[5].shape[1]                                            # w1: (d, ff)

    # Pick the batch block against a VMEM activation budget (headroom under the
    # v7x 64 MiB physical / 32 MiB default scoped limit).
    if batch_block is None:
        per_elem = 4 * (n_tot * d * 8 + n_tot * 3 * d * 2
                        + num_heads * n_tot * nc * 2 + n_tot * ff * 2)
        batch_block = _largest_divisor_leq(m, max(1, (8 << 20) // per_elem))
    bb = batch_block
    assert m % bb == 0, "batch_block must divide the batch size"
    grid = (m // bb,)

    kernel = functools.partial(_encoder_kernel, nt, num_heads, head_dim,
                               num_layers, compute_dtype)

    in_specs = [pl.BlockSpec((bb, n_tot, d), lambda i: (i, 0, 0))]
    in_specs += [pl.BlockSpec(a.shape, lambda i, _nd=a.ndim: (0,) * _nd)
                 for a in packed]

    # On v7x, core_parallel=True splits the (already blocked) batch axis across
    # the two TensorCores; plain "parallel" is the safe default elsewhere.
    semantics = (pltpu.CORE_PARALLEL if core_parallel else "parallel",)

    return pl.pallas_call(
        kernel,
        out_shape=jax.ShapeDtypeStruct((m, nt, d), xt.dtype),
        grid=grid,
        in_specs=in_specs,
        out_specs=pl.BlockSpec((bb, nt, d), lambda i: (i, 0, 0)),
        compiler_params=pltpu.CompilerParams(dimension_semantics=semantics),
    )(x, *packed)


# ---------------------------------------------------------------------------
# Deterministic synthetic parameters (cloned layers share one weight set)
# ---------------------------------------------------------------------------
def init_params(key, d, ff_dim):
    keys = jax.random.split(key, 6)

    def w(k, shape):
        return (0.05 * jax.random.normal(k, shape)).astype(jnp.float32)

    zeros = lambda n: jnp.zeros((1, n), jnp.float32)
    ones = lambda n: jnp.ones((1, n), jnp.float32)
    attn = (
        ones(d), zeros(d),                         # LayerNorm gamma / beta
        w(keys[0], (d, d)), zeros(d),              # Wq, bq
        w(keys[1], (d, d)), zeros(d),              # Wk, bk
        w(keys[2], (d, d)), zeros(d),              # Wv, bv
        w(keys[3], (d, d)), zeros(d),              # Wo, bo
    )
    ffn = (
        ones(d), zeros(d),                         # LayerNorm gamma / beta
        w(keys[4], (d, ff_dim)), zeros(ff_dim),    # W1, b1
        w(keys[5], (ff_dim, d)), zeros(d),         # W2, b2
    )
    return {"attn": attn, "ffn": ffn}


if __name__ == "__main__":
    m, nc, nt, d = 2, 16, 8, 32
    num_heads, ff_dim, num_layers = 4, 64, 2

    key = jax.random.PRNGKey(0)
    kxc, kxt, kp = jax.random.split(key, 3)
    xc = jax.random.normal(kxc, (m, nc, d), dtype=jnp.float32)
    xt = jax.random.normal(kxt, (m, nt, d), dtype=jnp.float32)
    params = init_params(kp, d, ff_dim)

    encoder = jax.jit(functools.partial(
        tnpkr_transformer_encoder, num_layers=num_layers, num_heads=num_heads))
    out = jax.block_until_ready(encoder(xc, xt, params))
    assert out.shape == (m, nt, d) and out.dtype == jnp.float32
    print("KERNEL_OK")
</pallas_src>

<mosaic_0001>
module attributes {stable_mosaic.version = 11 : i64} {
  func.func @_encoder_kernel(%arg0: i32, %arg1: memref<2x24x32xf32, #tpu.memory_space<vmem>>, %arg2: memref<4x32xf32, #tpu.memory_space<vmem>>, %arg3: memref<32x96xf32, #tpu.memory_space<vmem>>, %arg4: memref<1x96xf32, #tpu.memory_space<vmem>>, %arg5: memref<32x32xf32, #tpu.memory_space<vmem>>, %arg6: memref<1x32xf32, #tpu.memory_space<vmem>>, %arg7: memref<32x64xf32, #tpu.memory_space<vmem>>, %arg8: memref<1x64xf32, #tpu.memory_space<vmem>>, %arg9: memref<64x32xf32, #tpu.memory_space<vmem>>, %arg10: memref<1x32xf32, #tpu.memory_space<vmem>>, %arg11: memref<2x8x32xf32, #tpu.memory_space<vmem>>) attributes {dimension_semantics = [#tpu.dimension_semantics<parallel>], iteration_bounds = array<i64: 1>, scalar_prefetch = 0 : i64, scratch_operands = 0 : i64, tpu.core_type = #tpu.core_type<tc>, window_params = [{transform_indices = @transform_0, window_bounds = array<i64: 2, 24, 32>}, {pipeline_mode = #tpu.pipeline_mode<synchronous>, transform_indices = @transform_1, window_bounds = array<i64: 4, 32>}, {pipeline_mode = #tpu.pipeline_mode<synchronous>, transform_indices = @transform_2, window_bounds = array<i64: 32, 96>}, {pipeline_mode = #tpu.pipeline_mode<synchronous>, transform_indices = @transform_3, window_bounds = array<i64: 1, 96>}, {pipeline_mode = #tpu.pipeline_mode<synchronous>, transform_indices = @transform_4, window_bounds = array<i64: 32, 32>}, {pipeline_mode = #tpu.pipeline_mode<synchronous>, transform_indices = @transform_5, window_bounds = array<i64: 1, 32>}, {pipeline_mode = #tpu.pipeline_mode<synchronous>, transform_indices = @transform_6, window_bounds = array<i64: 32, 64>}, {pipeline_mode = #tpu.pipeline_mode<synchronous>, transform_indices = @transform_7, window_bounds = array<i64: 1, 64>}, {pipeline_mode = #tpu.pipeline_mode<synchronous>, transform_indices = @transform_8, window_bounds = array<i64: 64, 32>}, {pipeline_mode = #tpu.pipeline_mode<synchronous>, transform_indices = @transform_9, window_bounds = array<i64: 1, 32>}, {transform_indices = @transform_10, window_bounds = array<i64: 2, 8, 32>}]} {
    %c0 = arith.constant 0 : index
    %c0_0 = arith.constant 0 : index
    %c0_1 = arith.constant 0 : index
    %0 = vector.load %arg1[%c0, %c0_0, %c0_1] : memref<2x24x32xf32, #tpu.memory_space<vmem>>, vector<2x24x32xf32>
    %1 = vector.shape_cast %0 : vector<2x24x32xf32> to vector<48x32xf32>
    %c0_2 = arith.constant 0 : index
    %c0_3 = arith.constant 0 : index
    %2 = vector.load %arg2[%c0_2, %c0_3] : memref<4x32xf32, #tpu.memory_space<vmem>>, vector<4x32xf32>
    %3 = vector.extract_strided_slice %2 {offsets = [0, 0], sizes = [1, 32], strides = [1, 1]} : vector<4x32xf32> to vector<1x32xf32>
    %4 = vector.shape_cast %3 : vector<1x32xf32> to vector<32xf32>
    %5 = vector.extract_strided_slice %2 {offsets = [1, 0], sizes = [1, 32], strides = [1, 1]} : vector<4x32xf32> to vector<1x32xf32>
    %6 = vector.shape_cast %5 : vector<1x32xf32> to vector<32xf32>
    %7 = vector.extract_strided_slice %2 {offsets = [2, 0], sizes = [1, 32], strides = [1, 1]} : vector<4x32xf32> to vector<1x32xf32>
    %8 = vector.shape_cast %7 : vector<1x32xf32> to vector<32xf32>
    %9 = vector.extract_strided_slice %2 {offsets = [3, 0], sizes = [1, 32], strides = [1, 1]} : vector<4x32xf32> to vector<1x32xf32>
    %10 = vector.shape_cast %9 : vector<1x32xf32> to vector<32xf32>
    %c0_4 = arith.constant 0 : index
    %c0_5 = arith.constant 0 : index
    %11 = vector.load %arg3[%c0_4, %c0_5] : memref<32x96xf32, #tpu.memory_space<vmem>>, vector<32x96xf32>
    %c0_6 = arith.constant 0 : index
    %c0_7 = arith.constant 0 : index
    %12 = vector.load %arg4[%c0_6, %c0_7] : memref<1x96xf32, #tpu.memory_space<vmem>>, vector<1x96xf32>
    %c0_8 = arith.constant 0 : index
    %c0_9 = arith.constant 0 : index
    %13 = vector.load %arg5[%c0_8, %c0_9] : memref<32x32xf32, #tpu.memory_space<vmem>>, vector<32x32xf32>
    %c0_10 = arith.constant 0 : index
    %c0_11 = arith.constant 0 : index
    %14 = vector.load %arg6[%c0_10, %c0_11] : memref<1x32xf32, #tpu.memory_space<vmem>>, vector<1x32xf32>
    %c0_12 = arith.constant 0 : index
    %c0_13 = arith.constant 0 : index
    %15 = vector.load %arg7[%c0_12, %c0_13] : memref<32x64xf32, #tpu.memory_space<vmem>>, vector<32x64xf32>
    %c0_14 = arith.constant 0 : index
    %c0_15 = arith.constant 0 : index
    %16 = vector.load %arg8[%c0_14, %c0_15] : memref<1x64xf32, #tpu.memory_space<vmem>>, vector<1x64xf32>
    %c0_16 = arith.constant 0 : index
    %c0_17 = arith.constant 0 : index
    %17 = vector.load %arg9[%c0_16, %c0_17] : memref<64x32xf32, #tpu.memory_space<vmem>>, vector<64x32xf32>
    %c0_18 = arith.constant 0 : index
    %c0_19 = arith.constant 0 : index
    %18 = vector.load %arg10[%c0_18, %c0_19] : memref<1x32xf32, #tpu.memory_space<vmem>>, vector<1x32xf32>
    %c0_i32 = arith.constant 0 : i32
    %cst = arith.constant dense<0.000000e+00> : vector<48xf32>
    %19 = vector.multi_reduction <add>, %1, %cst [1] : vector<48x32xf32> to vector<48xf32>
    %20 = vector.shape_cast %19 : vector<48xf32> to vector<48x1xf32>
    %cst_20 = arith.constant 3.200000e+01 : f32
    %21 = vector.broadcast %cst_20 : f32 to vector<48x1xf32>
    %22 = arith.divf %20, %21 : vector<48x1xf32>
    %23 = vector.broadcast %22 : vector<48x1xf32> to vector<48x32xf32>
    %24 = arith.subf %1, %23 : vector<48x32xf32>
    %25 = arith.mulf %24, %24 : vector<48x32xf32>
    %cst_21 = arith.constant dense<0.000000e+00> : vector<48xf32>
    %26 = vector.multi_reduction <add>, %25, %cst_21 [1] : vector<48x32xf32> to vector<48xf32>
    %27 = vector.shape_cast %26 : vector<48xf32> to vector<48x1xf32>
    %cst_22 = arith.constant 3.200000e+01 : f32
    %28 = vector.broadcast %cst_22 : f32 to vector<48x1xf32>
    %29 = arith.divf %27, %28 : vector<48x1xf32>
    %30 = vector.broadcast %22 : vector<48x1xf32> to vector<48x32xf32>
    %31 = arith.subf %1, %30 : vector<48x32xf32>
    %cst_23 = arith.constant 9.99999974E-6 : f32
    %32 = vector.broadcast %cst_23 : f32 to vector<48x1xf32>
    %33 = arith.addf %29, %32 : vector<48x1xf32>
    %34 = math.rsqrt %33 : vector<48x1xf32>
    %35 = vector.broadcast %34 : vector<48x1xf32> to vector<48x32xf32>
    %36 = arith.mulf %31, %35 : vector<48x32xf32>
    %37 = vector.shape_cast %4 : vector<32xf32> to vector<1x32xf32>
    %38 = vector.broadcast %37 : vector<1x32xf32> to vector<48x32xf32>
    %39 = arith.mulf %36, %38 : vector<48x32xf32>
    %40 = vector.shape_cast %6 : vector<32xf32> to vector<1x32xf32>
    %41 = vector.broadcast %40 : vector<1x32xf32> to vector<48x32xf32>
    %42 = arith.addf %39, %41 : vector<48x32xf32>
    %cst_24 = arith.constant dense<0.000000e+00> : vector<48x96xf32>
    %43 = tpu.matmul %42, %11, %cst_24 {dimension_numbers = #tpu.dot_dimension_numbers<[1], [0], [0], [1], [0, 0, 1, 1], [], []>} : vector<48x32xf32>, vector<32x96xf32>, vector<48x96xf32> -> vector<48x96xf32>
    %44 = vector.broadcast %12 : vector<1x96xf32> to vector<48x96xf32>
    %45 = arith.addf %43, %44 : vector<48x96xf32>
    %46 = vector.extract_strided_slice %45 {offsets = [0, 0], sizes = [48, 8], strides = [1, 1]} : vector<48x96xf32> to vector<48x8xf32>
    %47 = vector.extract_strided_slice %45 {offsets = [0, 8], sizes = [48, 8], strides = [1, 1]} : vector<48x96xf32> to vector<48x8xf32>
    %48 = vector.extract_strided_slice %45 {offsets = [0, 16], sizes = [48, 8], strides = [1, 1]} : vector<48x96xf32> to vector<48x8xf32>
    %49 = vector.extract_strided_slice %45 {offsets = [0, 24], sizes = [48, 8], strides = [1, 1]} : vector<48x96xf32> to vector<48x8xf32>
    %50 = vector.shape_cast %46 : vector<48x8xf32> to vector<1x48x8xf32>
    %51 = vector.shape_cast %47 : vector<48x8xf32> to vector<1x48x8xf32>
    %52 = vector.shape_cast %48 : vector<48x8xf32> to vector<1x48x8xf32>
    %53 = vector.shape_cast %49 : vector<48x8xf32> to vector<1x48x8xf32>
    %54 = tpu.concatenate %50, %51, %52, %53 in 0 : vector<1x48x8xf32>, vector<1x48x8xf32>, vector<1x48x8xf32>, vector<1x48x8xf32> -> vector<4x48x8xf32>
    %55 = vector.shape_cast %54 : vector<4x48x8xf32> to vector<8x24x8xf32>
    %56 = vector.extract_strided_slice %45 {offsets = [0, 32], sizes = [48, 8], strides = [1, 1]} : vector<48x96xf32> to vector<48x8xf32>
    %57 = vector.extract_strided_slice %45 {offsets = [0, 40], sizes = [48, 8], strides = [1, 1]} : vector<48x96xf32> to vector<48x8xf32>
    %58 = vector.extract_strided_slice %45 {offsets = [0, 48], sizes = [48, 8], strides = [1, 1]} : vector<48x96xf32> to vector<48x8xf32>
    %59 = vector.extract_strided_slice %45 {offsets = [0, 56], sizes = [48, 8], strides = [1, 1]} : vector<48x96xf32> to vector<48x8xf32>
    %60 = vector.shape_cast %56 : vector<48x8xf32> to vector<1x48x8xf32>
    %61 = vector.shape_cast %57 : vector<48x8xf32> to vector<1x48x8xf32>
    %62 = vector.shape_cast %58 : vector<48x8xf32> to vector<1x48x8xf32>
    %63 = vector.shape_cast %59 : vector<48x8xf32> to vector<1x48x8xf32>
    %64 = tpu.concatenate %60, %61, %62, %63 in 0 : vector<1x48x8xf32>, vector<1x48x8xf32>, vector<1x48x8xf32>, vector<1x48x8xf32> -> vector<4x48x8xf32>
    %65 = vector.shape_cast %64 : vector<4x48x8xf32> to vector<8x24x8xf32>
    %66 = vector.extract_strided_slice %65 {offsets = [0, 8, 0], sizes = [8, 16, 8], strides = [1, 1, 1]} : vector<8x24x8xf32> to vector<8x16x8xf32>
    %67 = vector.extract_strided_slice %45 {offsets = [0, 64], sizes = [48, 8], strides = [1, 1]} : vector<48x96xf32> to vector<48x8xf32>
    %68 = vector.extract_strided_slice %45 {offsets = [0, 72], sizes = [48, 8], strides = [1, 1]} : vector<48x96xf32> to vector<48x8xf32>
    %69 = vector.extract_strided_slice %45 {offsets = [0, 80], sizes = [48, 8], strides = [1, 1]} : vector<48x96xf32> to vector<48x8xf32>
    %70 = vector.extract_strided_slice %45 {offsets = [0, 88], sizes = [48, 8], strides = [1, 1]} : vector<48x96xf32> to vector<48x8xf32>
    %71 = vector.shape_cast %67 : vector<48x8xf32> to vector<1x48x8xf32>
    %72 = vector.shape_cast %68 : vector<48x8xf32> to vector<1x48x8xf32>
    %73 = vector.shape_cast %69 : vector<48x8xf32> to vector<1x48x8xf32>
    %74 = vector.shape_cast %70 : vector<48x8xf32> to vector<1x48x8xf32>
    %75 = tpu.concatenate %71, %72, %73, %74 in 0 : vector<1x48x8xf32>, vector<1x48x8xf32>, vector<1x48x8xf32>, vector<1x48x8xf32> -> vector<4x48x8xf32>
    %76 = vector.shape_cast %75 : vector<4x48x8xf32> to vector<8x24x8xf32>
    %77 = vector.extract_strided_slice %76 {offsets = [0, 8, 0], sizes = [8, 16, 8], strides = [1, 1, 1]} : vector<8x24x8xf32> to vector<8x16x8xf32>
    "tpu.trace_start"() <{level = 10 : i32, message = "gqf,gkf->gqk"}> : () -> ()
    %cst_25 = arith.constant dense<0.000000e+00> : vector<8x24x16xf32>
    %78 = tpu.matmul %55, %66, %cst_25 {dimension_numbers = #tpu.dot_dimension_numbers<[2], [2], [1], [1], [0, 0, 0, 1, 1, 1], [0], [0]>} : vector<8x24x8xf32>, vector<8x16x8xf32>, vector<8x24x16xf32> -> vector<8x24x16xf32>
    "tpu.trace_stop"() : () -> ()
    %cst_26 = arith.constant 0.353553385 : f32
    %79 = vector.broadcast %cst_26 : f32 to vector<8x24x16xf32>
    %80 = arith.mulf %78, %79 : vector<8x24x16xf32>
    %cst_27 = arith.constant dense<0xFF800000> : vector<8x24xf32>
    %81 = vector.multi_reduction <maximumf>, %80, %cst_27 [2] : vector<8x24x16xf32> to vector<8x24xf32>
    %82 = vector.shape_cast %81 : vector<8x24xf32> to vector<8x24x1xf32>
    %83 = vector.broadcast %82 : vector<8x24x1xf32> to vector<8x24x16xf32>
    %84 = arith.subf %80, %83 : vector<8x24x16xf32>
    %85 = math.exp %84 : vector<8x24x16xf32>
    %cst_28 = arith.constant dense<0.000000e+00> : vector<8x24xf32>
    %86 = vector.multi_reduction <add>, %85, %cst_28 [2] : vector<8x24x16xf32> to vector<8x24xf32>
    %87 = vector.shape_cast %86 : vector<8x24xf32> to vector<8x24x1xf32>
    %88 = tpu.reciprocal %87 {approx = true} : vector<8x24x1xf32> -> vector<8x24x1xf32>
    %89 = vector.broadcast %88 : vector<8x24x1xf32> to vector<8x24x16xf32>
    %90 = arith.mulf %85, %89 : vector<8x24x16xf32>
    "tpu.trace_start"() <{level = 10 : i32, message = "gqk,gkf->gqf"}> : () -> ()
    %cst_29 = arith.constant dense<0.000000e+00> : vector<8x24x8xf32>
    %91 = tpu.matmul %90, %77, %cst_29 {dimension_numbers = #tpu.dot_dimension_numbers<[2], [1], [1], [2], [0, 0, 0, 1, 1, 2], [0], [0]>} : vector<8x24x16xf32>, vector<8x16x8xf32>, vector<8x24x8xf32> -> vector<8x24x8xf32>
    "tpu.trace_stop"() : () -> ()
    %92 = vector.shape_cast %91 : vector<8x24x8xf32> to vector<4x48x8xf32>
    %93 = vector.extract_strided_slice %92 {offsets = [0, 0, 0], sizes = [1, 48, 8], strides = [1, 1, 1]} : vector<4x48x8xf32> to vector<1x48x8xf32>
    %94 = vector.shape_cast %93 : vector<1x48x8xf32> to vector<48x8xf32>
    %95 = vector.extract_strided_slice %92 {offsets = [1, 0, 0], sizes = [1, 48, 8], strides = [1, 1, 1]} : vector<4x48x8xf32> to vector<1x48x8xf32>
    %96 = vector.shape_cast %95 : vector<1x48x8xf32> to vector<48x8xf32>
    %97 = vector.extract_strided_slice %92 {offsets = [2, 0, 0], sizes = [1, 48, 8], strides = [1, 1, 1]} : vector<4x48x8xf32> to vector<1x48x8xf32>
    %98 = vector.shape_cast %97 : vector<1x48x8xf32> to vector<48x8xf32>
    %99 = vector.extract_strided_slice %92 {offsets = [3, 0, 0], sizes = [1, 48, 8], strides = [1, 1, 1]} : vector<4x48x8xf32> to vector<1x48x8xf32>
    %100 = vector.shape_cast %99 : vector<1x48x8xf32> to vector<48x8xf32>
    %101 = tpu.concatenate %94, %96, %98, %100 in 1 : vector<48x8xf32>, vector<48x8xf32>, vector<48x8xf32>, vector<48x8xf32> -> vector<48x32xf32>
    %cst_30 = arith.constant dense<0.000000e+00> : vector<48x32xf32>
    %102 = tpu.matmul %101, %13, %cst_30 {dimension_numbers = #tpu.dot_dimension_numbers<[1], [0], [0], [1], [0, 0, 1, 1], [], []>} : vector<48x32xf32>, vector<32x32xf32>, vector<48x32xf32> -> vector<48x32xf32>
    %103 = arith.addf %1, %102 : vector<48x32xf32>
    %104 = vector.broadcast %14 : vector<1x32xf32> to vector<48x32xf32>
    %105 = arith.addf %103, %104 : vector<48x32xf32>
    %cst_31 = arith.constant dense<0.000000e+00> : vector<48xf32>
    %106 = vector.multi_reduction <add>, %105, %cst_31 [1] : vector<48x32xf32> to vector<48xf32>
    %107 = vector.shape_cast %106 : vector<48xf32> to vector<48x1xf32>
    %cst_32 = arith.constant 3.200000e+01 : f32
    %108 = vector.broadcast %cst_32 : f32 to vector<48x1xf32>
    %109 = arith.divf %107, %108 : vector<48x1xf32>
    %110 = vector.broadcast %109 : vector<48x1xf32> to vector<48x32xf32>
    %111 = arith.subf %105, %110 : vector<48x32xf32>
    %112 = arith.mulf %111, %111 : vector<48x32xf32>
    %cst_33 = arith.constant dense<0.000000e+00> : vector<48xf32>
    %113 = vector.multi_reduction <add>, %112, %cst_33 [1] : vector<48x32xf32> to vector<48xf32>
    %114 = vector.shape_cast %113 : vector<48xf32> to vector<48x1xf32>
    %cst_34 = arith.constant 3.200000e+01 : f32
    %115 = vector.broadcast %cst_34 : f32 to vector<48x1xf32>
    %116 = arith.divf %114, %115 : vector<48x1xf32>
    %117 = vector.broadcast %109 : vector<48x1xf32> to vector<48x32xf32>
    %118 = arith.subf %105, %117 : vector<48x32xf32>
    %cst_35 = arith.constant 9.99999974E-6 : f32
    %119 = vector.broadcast %cst_35 : f32 to vector<48x1xf32>
    %120 = arith.addf %116, %119 : vector<48x1xf32>
    %121 = math.rsqrt %120 : vector<48x1xf32>
    %122 = vector.broadcast %121 : vector<48x1xf32> to vector<48x32xf32>
    %123 = arith.mulf %118, %122 : vector<48x32xf32>
    %124 = vector.shape_cast %8 : vector<32xf32> to vector<1x32xf32>
    %125 = vector.broadcast %124 : vector<1x32xf32> to vector<48x32xf32>
    %126 = arith.mulf %123, %125 : vector<48x32xf32>
    %127 = vector.shape_cast %10 : vector<32xf32> to vector<1x32xf32>
    %128 = vector.broadcast %127 : vector<1x32xf32> to vector<48x32xf32>
    %129 = arith.addf %126, %128 : vector<48x32xf32>
    %cst_36 = arith.constant dense<0.000000e+00> : vector<48x64xf32>
    %130 = tpu.matmul %129, %15, %cst_36 {dimension_numbers = #tpu.dot_dimension_numbers<[1], [0], [0], [1], [0, 0, 1, 1], [], []>} : vector<48x32xf32>, vector<32x64xf32>, vector<48x64xf32> -> vector<48x64xf32>
    %131 = vector.broadcast %16 : vector<1x64xf32> to vector<48x64xf32>
    %132 = arith.addf %130, %131 : vector<48x64xf32>
    %cst_37 = arith.constant 0.000000e+00 : f32
    %133 = vector.broadcast %cst_37 : f32 to vector<48x64xf32>
    %134 = arith.maximumf %132, %133 : vector<48x64xf32>
    %cst_38 = arith.constant dense<0.000000e+00> : vector<48x32xf32>
    %135 = tpu.matmul %134, %17, %cst_38 {dimension_numbers = #tpu.dot_dimension_numbers<[1], [0], [0], [1], [0, 0, 1, 1], [], []>} : vector<48x64xf32>, vector<64x32xf32>, vector<48x32xf32> -> vector<48x32xf32>
    %136 = arith.addf %105, %135 : vector<48x32xf32>
    %137 = vector.broadcast %18 : vector<1x32xf32> to vector<48x32xf32>
    %138 = arith.addf %136, %137 : vector<48x32xf32>
    %c1_i32 = arith.constant 1 : i32
    %cst_39 = arith.constant dense<0.000000e+00> : vector<48xf32>
    %139 = vector.multi_reduction <add>, %138, %cst_39 [1] : vector<48x32xf32> to vector<48xf32>
    %140 = vector.shape_cast %139 : vector<48xf32> to vector<48x1xf32>
    %cst_40 = arith.constant 3.200000e+01 : f32
    %141 = vector.broadcast %cst_40 : f32 to vector<48x1xf32>
    %142 = arith.divf %140, %141 : vector<48x1xf32>
    %143 = vector.broadcast %142 : vector<48x1xf32> to vector<48x32xf32>
    %144 = arith.subf %138, %143 : vector<48x32xf32>
    %145 = arith.mulf %144, %144 : vector<48x32xf32>
    %cst_41 = arith.constant dense<0.000000e+00> : vector<48xf32>
    %146 = vector.multi_reduction <add>, %145, %cst_41 [1] : vector<48x32xf32> to vector<48xf32>
    %147 = vector.shape_cast %146 : vector<48xf32> to vector<48x1xf32>
    %cst_42 = arith.constant 3.200000e+01 : f32
    %148 = vector.broadcast %cst_42 : f32 to vector<48x1xf32>
    %149 = arith.divf %147, %148 : vector<48x1xf32>
    %150 = vector.broadcast %142 : vector<48x1xf32> to vector<48x32xf32>
    %151 = arith.subf %138, %150 : vector<48x32xf32>
    %cst_43 = arith.constant 9.99999974E-6 : f32
    %152 = vector.broadcast %cst_43 : f32 to vector<48x1xf32>
    %153 = arith.addf %149, %152 : vector<48x1xf32>
    %154 = math.rsqrt %153 : vector<48x1xf32>
    %155 = vector.broadcast %154 : vector<48x1xf32> to vector<48x32xf32>
    %156 = arith.mulf %151, %155 : vector<48x32xf32>
    %157 = vector.shape_cast %4 : vector<32xf32> to vector<1x32xf32>
    %158 = vector.broadcast %157 : vector<1x32xf32> to vector<48x32xf32>
    %159 = arith.mulf %156, %158 : vector<48x32xf32>
    %160 = vector.shape_cast %6 : vector<32xf32> to vector<1x32xf32>
    %161 = vector.broadcast %160 : vector<1x32xf32> to vector<48x32xf32>
    %162 = arith.addf %159, %161 : vector<48x32xf32>
    %cst_44 = arith.constant dense<0.000000e+00> : vector<48x96xf32>
    %163 = tpu.matmul %162, %11, %cst_44 {dimension_numbers = #tpu.dot_dimension_numbers<[1], [0], [0], [1], [0, 0, 1, 1], [], []>} : vector<48x32xf32>, vector<32x96xf32>, vector<48x96xf32> -> vector<48x96xf32>
    %164 = vector.broadcast %12 : vector<1x96xf32> to vector<48x96xf32>
    %165 = arith.addf %163, %164 : vector<48x96xf32>
    %166 = vector.extract_strided_slice %165 {offsets = [0, 0], sizes = [48, 8], strides = [1, 1]} : vector<48x96xf32> to vector<48x8xf32>
    %167 = vector.extract_strided_slice %165 {offsets = [0, 8], sizes = [48, 8], strides = [1, 1]} : vector<48x96xf32> to vector<48x8xf32>
    %168 = vector.extract_strided_slice %165 {offsets = [0, 16], sizes = [48, 8], strides = [1, 1]} : vector<48x96xf32> to vector<48x8xf32>
    %169 = vector.extract_strided_slice %165 {offsets = [0, 24], sizes = [48, 8], strides = [1, 1]} : vector<48x96xf32> to vector<48x8xf32>
    %170 = vector.shape_cast %166 : vector<48x8xf32> to vector<1x48x8xf32>
    %171 = vector.shape_cast %167 : vector<48x8xf32> to vector<1x48x8xf32>
    %172 = vector.shape_cast %168 : vector<48x8xf32> to vector<1x48x8xf32>
    %173 = vector.shape_cast %169 : vector<48x8xf32> to vector<1x48x8xf32>
    %174 = tpu.concatenate %170, %171, %172, %173 in 0 : vector<1x48x8xf32>, vector<1x48x8xf32>, vector<1x48x8xf32>, vector<1x48x8xf32> -> vector<4x48x8xf32>
    %175 = vector.shape_cast %174 : vector<4x48x8xf32> to vector<8x24x8xf32>
    %176 = vector.extract_strided_slice %165 {offsets = [0, 32], sizes = [48, 8], strides = [1, 1]} : vector<48x96xf32> to vector<48x8xf32>
    %177 = vector.extract_strided_slice %165 {offsets = [0, 40], sizes = [48, 8], strides = [1, 1]} : vector<48x96xf32> to vector<48x8xf32>
    %178 = vector.extract_strided_slice %165 {offsets = [0, 48], sizes = [48, 8], strides = [1, 1]} : vector<48x96xf32> to vector<48x8xf32>
    %179 = vector.extract_strided_slice %165 {offsets = [0, 56], sizes = [48, 8], strides = [1, 1]} : vector<48x96xf32> to vector<48x8xf32>
    %180 = vector.shape_cast %176 : vector<48x8xf32> to vector<1x48x8xf32>
    %181 = vector.shape_cast %177 : vector<48x8xf32> to vector<1x48x8xf32>
    %182 = vector.shape_cast %178 : vector<48x8xf32> to vector<1x48x8xf32>
    %183 = vector.shape_cast %179 : vector<48x8xf32> to vector<1x48x8xf32>
    %184 = tpu.concatenate %180, %181, %182, %183 in 0 : vector<1x48x8xf32>, vector<1x48x8xf32>, vector<1x48x8xf32>, vector<1x48x8xf32> -> vector<4x48x8xf32>
    %185 = vector.shape_cast %184 : vector<4x48x8xf32> to vector<8x24x8xf32>
    %186 = vector.extract_strided_slice %185 {offsets = [0, 8, 0], sizes = [8, 16, 8], strides = [1, 1, 1]} : vector<8x24x8xf32> to vector<8x16x8xf32>
    %187 = vector.extract_strided_slice %165 {offsets = [0, 64], sizes = [48, 8], strides = [1, 1]} : vector<48x96xf32> to vector<48x8xf32>
    %188 = vector.extract_strided_slice %165 {offsets = [0, 72], sizes = [48, 8], strides = [1, 1]} : vector<48x96xf32> to vector<48x8xf32>
    %189 = vector.extract_strided_slice %165 {offsets = [0, 80], sizes = [48, 8], strides = [1, 1]} : vector<48x96xf32> to vector<48x8xf32>
    %190 = vector.extract_strided_slice %165 {offsets = [0, 88], sizes = [48, 8], strides = [1, 1]} : vector<48x96xf32> to vector<48x8xf32>
    %191 = vector.shape_cast %187 : vector<48x8xf32> to vector<1x48x8xf32>
    %192 = vector.shape_cast %188 : vector<48x8xf32> to vector<1x48x8xf32>
    %193 = vector.shape_cast %189 : vector<48x8xf32> to vector<1x48x8xf32>
    %194 = vector.shape_cast %190 : vector<48x8xf32> to vector<1x48x8xf32>
    %195 = tpu.concatenate %191, %192, %193, %194 in 0 : vector<1x48x8xf32>, vector<1x48x8xf32>, vector<1x48x8xf32>, vector<1x48x8xf32> -> vector<4x48x8xf32>
    %196 = vector.shape_cast %195 : vector<4x48x8xf32> to vector<8x24x8xf32>
    %197 = vector.extract_strided_slice %196 {offsets = [0, 8, 0], sizes = [8, 16, 8], strides = [1, 1, 1]} : vector<8x24x8xf32> to vector<8x16x8xf32>
    "tpu.trace_start"() <{level = 10 : i32, message = "gqf,gkf->gqk"}> : () -> ()
    %cst_45 = arith.constant dense<0.000000e+00> : vector<8x24x16xf32>
    %198 = tpu.matmul %175, %186, %cst_45 {dimension_numbers = #tpu.dot_dimension_numbers<[2], [2], [1], [1], [0, 0, 0, 1, 1, 1], [0], [0]>} : vector<8x24x8xf32>, vector<8x16x8xf32>, vector<8x24x16xf32> -> vector<8x24x16xf32>
    "tpu.trace_stop"() : () -> ()
    %cst_46 = arith.constant 0.353553385 : f32
    %199 = vector.broadcast %cst_46 : f32 to vector<8x24x16xf32>
    %200 = arith.mulf %198, %199 : vector<8x24x16xf32>
    %cst_47 = arith.constant dense<0xFF800000> : vector<8x24xf32>
    %201 = vector.multi_reduction <maximumf>, %200, %cst_47 [2] : vector<8x24x16xf32> to vector<8x24xf32>
    %202 = vector.shape_cast %201 : vector<8x24xf32> to vector<8x24x1xf32>
    %203 = vector.broadcast %202 : vector<8x24x1xf32> to vector<8x24x16xf32>
    %204 = arith.subf %200, %203 : vector<8x24x16xf32>
    %205 = math.exp %204 : vector<8x24x16xf32>
    %cst_48 = arith.constant dense<0.000000e+00> : vector<8x24xf32>
    %206 = vector.multi_reduction <add>, %205, %cst_48 [2] : vector<8x24x16xf32> to vector<8x24xf32>
    %207 = vector.shape_cast %206 : vector<8x24xf32> to vector<8x24x1xf32>
    %208 = tpu.reciprocal %207 {approx = true} : vector<8x24x1xf32> -> vector<8x24x1xf32>
    %209 = vector.broadcast %208 : vector<8x24x1xf32> to vector<8x24x16xf32>
    %210 = arith.mulf %205, %209 : vector<8x24x16xf32>
    "tpu.trace_start"() <{level = 10 : i32, message = "gqk,gkf->gqf"}> : () -> ()
    %cst_49 = arith.constant dense<0.000000e+00> : vector<8x24x8xf32>
    %211 = tpu.matmul %210, %197, %cst_49 {dimension_numbers = #tpu.dot_dimension_numbers<[2], [1], [1], [2], [0, 0, 0, 1, 1, 2], [0], [0]>} : vector<8x24x16xf32>, vector<8x16x8xf32>, vector<8x24x8xf32> -> vector<8x24x8xf32>
    "tpu.trace_stop"() : () -> ()
    %212 = vector.shape_cast %211 : vector<8x24x8xf32> to vector<4x48x8xf32>
    %213 = vector.extract_strided_slice %212 {offsets = [0, 0, 0], sizes = [1, 48, 8], strides = [1, 1, 1]} : vector<4x48x8xf32> to vector<1x48x8xf32>
    %214 = vector.shape_cast %213 : vector<1x48x8xf32> to vector<48x8xf32>
    %215 = vector.extract_strided_slice %212 {offsets = [1, 0, 0], sizes = [1, 48, 8], strides = [1, 1, 1]} : vector<4x48x8xf32> to vector<1x48x8xf32>
    %216 = vector.shape_cast %215 : vector<1x48x8xf32> to vector<48x8xf32>
    %217 = vector.extract_strided_slice %212 {offsets = [2, 0, 0], sizes = [1, 48, 8], strides = [1, 1, 1]} : vector<4x48x8xf32> to vector<1x48x8xf32>
    %218 = vector.shape_cast %217 : vector<1x48x8xf32> to vector<48x8xf32>
    %219 = vector.extract_strided_slice %212 {offsets = [3, 0, 0], sizes = [1, 48, 8], strides = [1, 1, 1]} : vector<4x48x8xf32> to vector<1x48x8xf32>
    %220 = vector.shape_cast %219 : vector<1x48x8xf32> to vector<48x8xf32>
    %221 = tpu.concatenate %214, %216, %218, %220 in 1 : vector<48x8xf32>, vector<48x8xf32>, vector<48x8xf32>, vector<48x8xf32> -> vector<48x32xf32>
    %cst_50 = arith.constant dense<0.000000e+00> : vector<48x32xf32>
    %222 = tpu.matmul %221, %13, %cst_50 {dimension_numbers = #tpu.dot_dimension_numbers<[1], [0], [0], [1], [0, 0, 1, 1], [], []>} : vector<48x32xf32>, vector<32x32xf32>, vector<48x32xf32> -> vector<48x32xf32>
    %223 = arith.addf %138, %222 : vector<48x32xf32>
    %224 = vector.broadcast %14 : vector<1x32xf32> to vector<48x32xf32>
    %225 = arith.addf %223, %224 : vector<48x32xf32>
    %cst_51 = arith.constant dense<0.000000e+00> : vector<48xf32>
    %226 = vector.multi_reduction <add>, %225, %cst_51 [1] : vector<48x32xf32> to vector<48xf32>
    %227 = vector.shape_cast %226 : vector<48xf32> to vector<48x1xf32>
    %cst_52 = arith.constant 3.200000e+01 : f32
    %228 = vector.broadcast %cst_52 : f32 to vector<48x1xf32>
    %229 = arith.divf %227, %228 : vector<48x1xf32>
    %230 = vector.broadcast %229 : vector<48x1xf32> to vector<48x32xf32>
    %231 = arith.subf %225, %230 : vector<48x32xf32>
    %232 = arith.mulf %231, %231 : vector<48x32xf32>
    %cst_53 = arith.constant dense<0.000000e+00> : vector<48xf32>
    %233 = vector.multi_reduction <add>, %232, %cst_53 [1] : vector<48x32xf32> to vector<48xf32>
    %234 = vector.shape_cast %233 : vector<48xf32> to vector<48x1xf32>
    %cst_54 = arith.constant 3.200000e+01 : f32
    %235 = vector.broadcast %cst_54 : f32 to vector<48x1xf32>
    %236 = arith.divf %234, %235 : vector<48x1xf32>
    %237 = vector.broadcast %229 : vector<48x1xf32> to vector<48x32xf32>
    %238 = arith.subf %225, %237 : vector<48x32xf32>
    %cst_55 = arith.constant 9.99999974E-6 : f32
    %239 = vector.broadcast %cst_55 : f32 to vector<48x1xf32>
    %240 = arith.addf %236, %239 : vector<48x1xf32>
    %241 = math.rsqrt %240 : vector<48x1xf32>
    %242 = vector.broadcast %241 : vector<48x1xf32> to vector<48x32xf32>
    %243 = arith.mulf %238, %242 : vector<48x32xf32>
    %244 = vector.shape_cast %8 : vector<32xf32> to vector<1x32xf32>
    %245 = vector.broadcast %244 : vector<1x32xf32> to vector<48x32xf32>
    %246 = arith.mulf %243, %245 : vector<48x32xf32>
    %247 = vector.shape_cast %10 : vector<32xf32> to vector<1x32xf32>
    %248 = vector.broadcast %247 : vector<1x32xf32> to vector<48x32xf32>
    %249 = arith.addf %246, %248 : vector<48x32xf32>
    %cst_56 = arith.constant dense<0.000000e+00> : vector<48x64xf32>
    %250 = tpu.matmul %249, %15, %cst_56 {dimension_numbers = #tpu.dot_dimension_numbers<[1], [0], [0], [1], [0, 0, 1, 1], [], []>} : vector<48x32xf32>, vector<32x64xf32>, vector<48x64xf32> -> vector<48x64xf32>
    %251 = vector.broadcast %16 : vector<1x64xf32> to vector<48x64xf32>
    %252 = arith.addf %250, %251 : vector<48x64xf32>
    %cst_57 = arith.constant 0.000000e+00 : f32
    %253 = vector.broadcast %cst_57 : f32 to vector<48x64xf32>
    %254 = arith.maximumf %252, %253 : vector<48x64xf32>
    %cst_58 = arith.constant dense<0.000000e+00> : vector<48x32xf32>
    %255 = tpu.matmul %254, %17, %cst_58 {dimension_numbers = #tpu.dot_dimension_numbers<[1], [0], [0], [1], [0, 0, 1, 1], [], []>} : vector<48x64xf32>, vector<64x32xf32>, vector<48x32xf32> -> vector<48x32xf32>
    %256 = arith.addf %225, %255 : vector<48x32xf32>
    %257 = vector.broadcast %18 : vector<1x32xf32> to vector<48x32xf32>
    %258 = arith.addf %256, %257 : vector<48x32xf32>
    %259 = vector.shape_cast %258 : vector<48x32xf32> to vector<2x24x32xf32>
    %260 = vector.extract_strided_slice %259 {offsets = [0, 0, 0], sizes = [2, 8, 32], strides = [1, 1, 1]} : vector<2x24x32xf32> to vector<2x8x32xf32>
    %c0_59 = arith.constant 0 : index
    %c0_60 = arith.constant 0 : index
    %c0_61 = arith.constant 0 : index
    %261 = vector.load %arg11[%c0_59, %c0_60, %c0_61] : memref<2x8x32xf32, #tpu.memory_space<vmem>>, vector<2x8x32xf32>
    tpu.vector_store %arg11[%c0_59, %c0_60, %c0_61], %260 {strides = array<i32>} : memref<2x8x32xf32, #tpu.memory_space<vmem>>, vector<2x8x32xf32>,
    return
  }
  func.func @transform_0(%arg0: i32) -> (i32, i32, i32) {
    %c0_i32 = arith.constant 0 : i32
    %c0_i32_0 = arith.constant 0 : i32
    %c0_i32_1 = arith.constant 0 : i32
    return %arg0, %c0_i32, %c0_i32_0 : i32, i32, i32
  }
  func.func @transform_1(%arg0: i32) -> (i32, i32) {
    %c0_i32 = arith.constant 0 : i32
    %c0_i32_0 = arith.constant 0 : i32
    %c0_i32_1 = arith.constant 0 : i32
    return %c0_i32, %c0_i32_0 : i32, i32
  }
  func.func @transform_2(%arg0: i32) -> (i32, i32) {
    %c0_i32 = arith.constant 0 : i32
    %c0_i32_0 = arith.constant 0 : i32
    %c0_i32_1 = arith.constant 0 : i32
    return %c0_i32, %c0_i32_0 : i32, i32
  }
  func.func @transform_3(%arg0: i32) -> (i32, i32) {
    %c0_i32 = arith.constant 0 : i32
    %c0_i32_0 = arith.constant 0 : i32
    %c0_i32_1 = arith.constant 0 : i32
    return %c0_i32, %c0_i32_0 : i32, i32
  }
  func.func @transform_4(%arg0: i32) -> (i32, i32) {
    %c0_i32 = arith.constant 0 : i32
    %c0_i32_0 = arith.constant 0 : i32
    %c0_i32_1 = arith.constant 0 : i32
    return %c0_i32, %c0_i32_0 : i32, i32
  }
  func.func @transform_5(%arg0: i32) -> (i32, i32) {
    %c0_i32 = arith.constant 0 : i32
    %c0_i32_0 = arith.constant 0 : i32
    %c0_i32_1 = arith.constant 0 : i32
    return %c0_i32, %c0_i32_0 : i32, i32
  }
  func.func @transform_6(%arg0: i32) -> (i32, i32) {
    %c0_i32 = arith.constant 0 : i32
    %c0_i32_0 = arith.constant 0 : i32
    %c0_i32_1 = arith.constant 0 : i32
    return %c0_i32, %c0_i32_0 : i32, i32
  }
  func.func @transform_7(%arg0: i32) -> (i32, i32) {
    %c0_i32 = arith.constant 0 : i32
    %c0_i32_0 = arith.constant 0 : i32
    %c0_i32_1 = arith.constant 0 : i32
    return %c0_i32, %c0_i32_0 : i32, i32
  }
  func.func @transform_8(%arg0: i32) -> (i32, i32) {
    %c0_i32 = arith.constant 0 : i32
    %c0_i32_0 = arith.constant 0 : i32
    %c0_i32_1 = arith.constant 0 : i32
    return %c0_i32, %c0_i32_0 : i32, i32
  }
  func.func @transform_9(%arg0: i32) -> (i32, i32) {
    %c0_i32 = arith.constant 0 : i32
    %c0_i32_0 = arith.constant 0 : i32
    %c0_i32_1 = arith.constant 0 : i32
    return %c0_i32, %c0_i32_0 : i32, i32
  }
  func.func @transform_10(%arg0: i32) -> (i32, i32, i32) {
    %c0_i32 = arith.constant 0 : i32
    %c0_i32_0 = arith.constant 0 : i32
    %c0_i32_1 = arith.constant 0 : i32
    return %arg0, %c0_i32, %c0_i32_0 : i32, i32, i32
  }
}

</mosaic_0001>

<bundles_post_ra>
// kernel: tnpkr_transformer_encoder.1
= control target key start
LH: loop header
LB: loop body
LE: loop exit
PB: predicated region body
PF: predicated region fallthrough
CT: control target
= control target key end

     0   :  { %vm67_vm0 = vcmask 261120   ;;  %s8729_s0 = inlined_call_operand.vmem [shape: f32[2,24,32], index: 0, kind: input, shape index: {}]   ;;  %s8730_s1 = inlined_call_operand.vmem [shape: f32[4,32], index: 1, kind: input, shape index: {}]   ;;  %s8731_s2 = inlined_call_operand.vmem [shape: f32[32,96], index: 2, kind: input, shape index: {}]   ;;  %s8732_s3 = inlined_call_operand.vmem [shape: f32[1,96], index: 3, kind: input, shape index: {}]   ;;  %s8733_s4 = inlined_call_operand.vmem [shape: f32[32,32], index: 4, kind: input, shape index: {}]   ;;  %s8734_s5 = inlined_call_operand.vmem [shape: f32[1,32], index: 5, kind: input, shape index: {}]   ;;  %s8735_s6 = inlined_call_operand.vmem [shape: f32[32,64], index: 6, kind: input, shape index: {}]   ;;  %s8736_s7 = inlined_call_operand.vmem [shape: f32[1,64], index: 7, kind: input, shape index: {}]   ;;  %s8737_s8 = inlined_call_operand.vmem [shape: f32[64,32], index: 8, kind: input, shape index: {}]   ;;  %s8738_s9 = inlined_call_operand.vmem [shape: f32[1,32], index: 9, kind: input, shape index: {}]   ;;  %s8739_s10 = inlined_call_operand.hbm [shape: f32[2,8,32], index: 10, kind: output, shape index: {}]  }
   0x1   :  { %v36_v0 = vld [vmem:[%s8729_s0] sm:$0xff]  ;;  %v38_v1 = vld [vmem:[%s8729_s0 + $0x10] sm:$0xff]  ;;  %v37_v2 = vld [vmem:[%s8729_s0 + $0x8] sm:$0xff] }
   0x2   :  { %v68_v3 = vsel %vm67_vm0, %v36_v0, 0.0  ;;  %v74_v4 = vsel %vm67_vm0, %v38_v1, 0.0  ;;  %v39_v5 = vld [vmem:[%s8729_s0 + $0x18] sm:$0xff] }
   0x3   :  { %69 = vadd.xlane.f32.xlu0 %v68_v3  ;;  %75 = vadd.xlane.f32.xlu1 %v74_v4 }
   0x4   :  { %15 = vsyncpa [#allocation3], 0  ;;  %v71_v6 = vsel %vm67_vm0, %v37_v2, 0.0  ;;  %v77_v7 = vsel %vm67_vm0, %v39_v5, 0.0  ;;  %v40_v8 = vld [vmem:[%s8729_s0 + $0x20] sm:$0xff]  ;;  %v41_v9 = vld [vmem:[%s8729_s0 + $0x28] sm:$0xff]  ;;  %v147_v50 = vlaneseq }
   0x5   :  { %v80_v10 = vsel %vm67_vm0, %v40_v8, 0.0  ;;  %v83_v11 = vsel %vm67_vm0, %v41_v9, 0.0  ;;  %v43_v42 = vld [vmem:[%s8731_s2] sm:$0xff]  ;;  %v44_v43 = vld [vmem:[%s8731_s2 + $0x8] sm:$0xff]  ;;  %v45_v45 = vld [vmem:[%s8731_s2 + $0x10] sm:$0xff]  ;;  %s6945_s16 = smov 120  }
   0x6   :  { %v7073_v44 = vpack.c.bf16 %v44_v43, %v43_v42  ;;  %v46_v46 = vld [vmem:[%s8731_s2 + $0x18] sm:$0xff]  ;;  %v7087_v56 = vshrl.u32 %v147_v50, 7  ;;  %s6946_s17 = smov 112   ;;  %s6948_s18 = smov 104   ;;  %vm6949_vm1 = vmmov 0   ;;  %vm332_vm2 = vcmask 64512  }
   0x7   :  { %72 = vadd.xlane.f32.xlu0 %v71_v6  ;;  %78 = vadd.xlane.f32.xlu1 %v77_v7  ;;  %v7081_v47 = vpack.c.bf16 %v46_v46, %v45_v45  ;;  %v6947_v45 = vmov 0.0|0.0   ;;  %v6950_v46 = vmov 0.0   ;;  %s6951_s19 = smov 96   ;;  %vm7210_vm3 = vmpackc.low %vm332_vm2, %vm332_vm2  ;;  %s6952_s20 = smov 64   ;;  %vm1105_vm4 = vcmask 130048  }
   0x8   :  { %6304 = vmatprep.subr.bf16.mxu0 %v7073_v44  ;;  %v149_v63 = vsub.s32 0, %v7087_v56  ;;  %v159_v4 = vsub.s32 1, %v7087_v56  ;;  %6311 = vmatprep.subr.bf16.mxu1 %v6947_v45  ;;  %s6953_s21 = smov 8   ;;  %s6954_s26 = smov 16   ;;  %vm2214_vm5 = vcmask 195584   ;;  %vm2575_vm6 = vcmask 523264  }
   0x9   :  { %6306 = vmatpush3.bf16.msra.mxu0 %v7073_v44  ;;  %5756 = vmatprep.mubr.msk.f32.mxu1 %vm6949_vm1, %v6950_v46  ;;  %s6955_s11 = smov 24  }
   0xa   :  { %6308 = vmatprep.subr.bf16.mxu0 %v7081_v47 }
   0xb   :  { %81 = vadd.xlane.f32.xlu0 %v80_v10  ;;  %84 = vadd.xlane.f32.xlu1 %v83_v11 }
   0xd   :  { %6310 = vmatpush3.bf16.msra.mxu0 %v7081_v47 }
   0xe   :  { %6315 = vmatprep.subr.bf16.mxu0 %v6947_v45 }
  0x90   :  { %v70_v12 = vpop.xlane.xlu0 %69  ;;  %v76_v13 = vpop.xlane.xlu1 %75 }
  0x91   :  { %v87_v14 = vmul.f32 0.03125, %v70_v12  ;;  %v89_v15 = vmul.f32 0.03125, %v76_v13 }
  0x93   :  { %v7037_v16 = vsub.f32 %v36_v0, %v87_v14  ;;  %v7039_v17 = vsub.f32 %v38_v1, %v89_v15 }
  0x94   :  { %v73_v18 = vpop.xlane.xlu0 %72  ;;  %v79_v19 = vpop.xlane.xlu1 %78 }
  0x95   :  { %v88_v20 = vmul.f32 0.03125, %v73_v18  ;;  %v90_v21 = vmul.f32 0.03125, %v79_v19  ;;  %v99_v22 = vmul.f32 %v7037_v16, %v7037_v16  ;;  %v101_v23 = vmul.f32 %v7039_v17, %v7039_v17 }
  0x97   :  { %v7045_v24 = vsub.f32 %v37_v2, %v88_v20  ;;  %v7047_v25 = vsub.f32 %v39_v5, %v90_v21  ;;  %v105_v26 = vsel %vm67_vm0, %v99_v22, 0.0  ;;  %v111_v29 = vsel %vm67_vm0, %v101_v23, 0.0  ;;  %v42_v2 = vld [vmem:[%s8730_s1] sm:$0xf] }
  0x98   :  { %106 = vadd.xlane.f32.xlu0 %v105_v26  ;;  %v82_v27 = vpop.xlane.xlu0 %81  ;;  %v85_v28 = vpop.xlane.xlu1 %84  ;;  %v7094_v6 = vrot.slane %v42_v2, %v149_v63  ;;  %v7097_v10 = vrot.slane %v42_v2, %v159_v4 }
  0x99   :  { %v91_v30 = vmul.f32 0.03125, %v82_v27  ;;  %v92_v31 = vmul.f32 0.03125, %v85_v28  ;;  %v100_v32 = vmul.f32 %v7045_v24, %v7045_v24  ;;  %v102_v33 = vmul.f32 %v7047_v25, %v7047_v25 }
  0x9b   :  { %v7055_v34 = vsub.f32 %v40_v8, %v91_v30  ;;  %v7057_v35 = vsub.f32 %v41_v9, %v92_v31  ;;  %v108_v36 = vsel %vm67_vm0, %v100_v32, 0.0  ;;  %v114_v37 = vsel %vm67_vm0, %v102_v33, 0.0  ;;  %v5307_v33 = vld [vmem:[%s8732_s3] ss:$0 sm:$0xff] }
  0x9c   :  { %112 = vadd.xlane.f32.xlu0 %v111_v29  ;;  %109 = vadd.xlane.f32.xlu1 %v108_v36 }
  0x9d   :  { %v103_v38 = vmul.f32 %v7055_v34, %v7055_v34  ;;  %v104_v39 = vmul.f32 %v7057_v35, %v7057_v35 }
  0x9f   :  { %v117_v40 = vsel %vm67_vm0, %v103_v38, 0.0  ;;  %v120_v41 = vsel %vm67_vm0, %v104_v39, 0.0 }
  0xa0   :  { %115 = vadd.xlane.f32.xlu1 %v114_v37  ;;  %118 = vadd.xlane.f32.xlu0 %v117_v40 }
  0xa4   :  { %121 = vadd.xlane.f32.xlu1 %v120_v41 }
 0x125   :  { %v107_v48 = vpop.xlane.xlu0 %106 }
 0x126   :  { %v123_v49 = vmul.f32 0.03125, %v107_v48 }
 0x128   :  { %v129_v51 = vadd.f32 1e-05, %v123_v49 }
 0x129   :  { %v110_v52 = vpop.xlane.xlu1 %109  ;;  %v113_v53 = vpop.xlane.xlu0 %112 }
 0x12a   :  { %6670 = vrsqrt.f32 %v129_v51  ;;  %v124_v54 = vmul.f32 0.03125, %v110_v52  ;;  %v125_v55 = vmul.f32 0.03125, %v113_v53 }
 0x12c   :  { %v130_v57 = vadd.f32 1e-05, %v124_v54  ;;  %v131_v58 = vadd.f32 1e-05, %v125_v55 }
 0x12d   :  { %v116_v59 = vpop.xlane.xlu1 %115  ;;  %v119_v60 = vpop.xlane.xlu0 %118 }
 0x12e   :  { %6672 = vrsqrt.f32 %v130_v57  ;;  %v126_v61 = vmul.f32 0.03125, %v116_v59  ;;  %v127_v62 = vmul.f32 0.03125, %v119_v60 }
 0x12f   :  { %6674 = vrsqrt.f32 %v131_v58 }
 0x130   :  { %v132_v0 = vadd.f32 1e-05, %v126_v61  ;;  %v133_v1 = vadd.f32 1e-05, %v127_v62 }
 0x131   :  { %v122_v3 = vpop.xlane.xlu1 %121 }
 0x132   :  { %6676 = vrsqrt.f32 %v132_v0  ;;  %v128_v5 = vmul.f32 0.03125, %v122_v3 }
 0x133   :  { %6678 = vrsqrt.f32 %v133_v1 }
 0x134   :  { %v6671_v7 = vpop.eup %6670  ;;  %v134_v8 = vadd.f32 1e-05, %v128_v5 }
 0x135   :  { %v141_v9 = vmul.f32 %v6671_v7, %v7037_v16 }
 0x136   :  { %6680 = vrsqrt.f32 %v134_v8 }
 0x137   :  { %v151_v11 = vmul.f32 %v7094_v6, %v141_v9 }
 0x138   :  { %v6673_v12 = vpop.eup %6672 }
 0x139   :  { %v6675_v13 = vpop.eup %6674  ;;  %v161_v14 = vadd.f32 %v7097_v10, %v151_v11  ;;  %v142_v15 = vmul.f32 %v6673_v12, %v7045_v24 }
 0x13a   :  { %v143_v18 = vmul.f32 %v6675_v13, %v7039_v17 }
 0x13b   :  { %5743 = vmatprep.mubr.msk.f32.mxu0 %vm67_vm0, %v161_v14  ;;  %v152_v19 = vmul.f32 %v7094_v6, %v142_v15 }
 0x13c   :  { %v6677_v20 = vpop.eup %6676  ;;  %v153_v16 = vmul.f32 %v7094_v6, %v143_v18 }
 0x13d   :  { %v6679_v21 = vpop.eup %6678  ;;  %v162_v22 = vadd.f32 %v7097_v10, %v152_v19  ;;  %v144_v23 = vmul.f32 %v6677_v20, %v7047_v25 }
 0x13e   :  { %v163_v26 = vadd.f32 %v7097_v10, %v153_v16  ;;  %v145_v27 = vmul.f32 %v6679_v21, %v7055_v34 }
 0x13f   :  { %5744 = vmatmul.mubr.msk.f32.vlgmr.msra.gmra.mrb[0].mxu0 %vm67_vm0, %v162_v22  ;;  %v154_v17 = vmul.f32 %v7094_v6, %v144_v23 }
 0x140   :  { %v6681_v24 = vpop.eup %6680  ;;  %5746 = vmatprep.mubr.msk.f32.mxu0 %vm67_vm0, %v163_v26  ;;  %v155_v28 = vmul.f32 %v7094_v6, %v145_v27 }
 0x141   :  { %v164_v29 = vadd.f32 %v7097_v10, %v154_v17  ;;  %v146_v30 = vmul.f32 %v6681_v24, %v7057_v35 }
 0x142   :  { %v165_v31 = vadd.f32 %v7097_v10, %v155_v28 }
 0x143   :  { %5747 = vmatmul.mubr.msk.f32.gmra.mrb[2].mxu0 %vm67_vm0, %v164_v29  ;;  %v156_v25 = vmul.f32 %v7094_v6, %v146_v30 }
 0x144   :  { %5749 = vmatprep.mubr.msk.f32.mxu0 %vm67_vm0, %v165_v31 }
 0x145   :  { %v166_v32 = vadd.f32 %v7097_v10, %v156_v25 }
 0x147   :  { %5750 = vmatmul.mubr.msk.f32.gmra.mrb[4].mxu0 %vm67_vm0, %v166_v32 }
 0x148   :  { %5769 = vmatprep.mubr.msk.f32.mxu0 %vm6949_vm1, %v6950_v46 }
 0x212   :  { %v5745_v34 = vpop.f32.mrb[0].mxu0 }
 0x213   :  { %v7125_v36 = vadd.f32 %v5745_v34, %v5307_v33  ;;  %v257_v35 = vpop.f32.mrb[1].mxu0 }
 0x214   :  { %v258_v57 = vadd.f32 %v5307_v33, %v257_v35 }
 0x215   :  { %294 = vrot.lane.b32.xlu0 %v7125_v36, %s6945_s16 }
 0x216   :  { %v5748_v37 = vpop.f32.mrb[2].mxu0 }
 0x217   :  { %v267_v38 = vpop.f32.mrb[3].mxu0  ;;  %v273_v60 = vadd.f32 %v5748_v37, %v5307_v33 }
 0x218   :  { %v7129_v39 = vadd.f32 %v5307_v33, %v267_v38 }
 0x219   :  { %306 = vrot.lane.b32.xlu0 %v7125_v36, %s6946_s17 }
 0x21a   :  { %296 = vrot.lane.b32.xlu1 %v7129_v39, %s6945_s16  ;;  %v5751_v40 = vpop.f32.mrb[4].mxu0  ;;  %v6510_v48 = vpack.i.bf16 %v7129_v39, %v7125_v36 }
 0x21b   :  { %v277_v41 = vpop.f32.mrb[5].mxu0  ;;  %v7141_v43 = vadd.f32 %v5751_v40, %v5307_v33 }
 0x21c   :  { %v7135_v42 = vadd.f32 %v5307_v33, %v277_v41 }
 0x21e   :  { %312 = vrot.lane.b32.xlu0 %v7135_v42, %s6946_s17  ;;  %300 = vrot.lane.b32.xlu1 %v7135_v42, %s6945_s16  ;;  %v6515_v49 = vpack.i.bf16 %v7141_v43, %v7135_v42 }
 0x222   :  { %318 = vrot.lane.b32.xlu0 %v7125_v36, %s6948_s18  ;;  %302 = vrot.lane.b32.xlu1 %v7141_v43, %s6945_s16 }
 0x226   :  { %324 = vrot.lane.b32.xlu0 %v7135_v42, %s6948_s18  ;;  %308 = vrot.lane.b32.xlu1 %v7129_v39, %s6946_s17 }
 0x22a   :  { %6511 = vrot.lane.b32.xlu0 %v6510_v48, %s6951_s19  ;;  %314 = vrot.lane.b32.xlu1 %v7141_v43, %s6946_s17 }
 0x22e   :  { %320 = vrot.lane.b32.xlu1 %v7129_v39, %s6948_s18 }
 0x232   :  { %326 = vrot.lane.b32.xlu1 %v7141_v43, %s6948_s18 }
 0x236   :  { %6516 = vrot.lane.b32.xlu1 %v6515_v49, %s6951_s19 }
 0x287   :  { %v7169_v50 = vpop.permute.xlu0 %294 }
 0x28b   :  { %v7171_v51 = vpop.permute.xlu0 %306 }
 0x28c   :  { %v7173_v52 = vpop.permute.xlu1 %296 }
 0x28d   :  { %v6520_v53 = vpack.i.bf16 %v7173_v52, %v7169_v50 }
 0x28f   :  { %6521 = vrot.lane.b32.xlu0 %v6520_v53, %s6951_s19 }
 0x290   :  { %v7178_v54 = vpop.permute.xlu1 %300  ;;  %v7180_v55 = vpop.permute.xlu0 %312 }
 0x293   :  { %292 = vrot.lane.b32.xlu0 %v258_v57, %s6945_s16 }
 0x294   :  { %v7183_v58 = vpop.permute.xlu1 %302  ;;  %v7185_v59 = vpop.permute.xlu0 %318 }
 0x295   :  { %v6525_v61 = vpack.i.bf16 %v7183_v58, %v7178_v54 }
 0x297   :  { %6526 = vrot.lane.b32.xlu1 %v6525_v61, %s6951_s19  ;;  %298 = vrot.lane.b32.xlu0 %v273_v60, %s6945_s16 }
 0x298   :  { %v7191_v62 = vpop.permute.xlu1 %308  ;;  %v7193_v63 = vpop.permute.xlu0 %324 }
 0x299   :  { %v7197_v0 = vpack.i.bf16 %v7191_v62, %v7171_v51 }
 0x29b   :  { %304 = vrot.lane.b32.xlu0 %v258_v57, %s6946_s17  ;;  %6531 = vrot.lane.b32.xlu1 %v7197_v0, %s6951_s19 }
 0x29c   :  { %v7202_v1 = vpop.permute.xlu1 %314  ;;  %v6512_v2 = vpop.permute.xlu0 %6511 }
 0x29d   :  { %v6514_v3 = vunpack.i.h.bf16 %v6512_v2  ;;  %v6513_v4 = vunpack.i.l.bf16 %v6512_v2  ;;  %v7206_v5 = vpack.i.bf16 %v7202_v1, %v7180_v55 }
 0x29f   :  { %310 = vrot.lane.b32.xlu0 %v273_v60, %s6946_s17  ;;  %6536 = vrot.lane.b32.xlu1 %v7206_v5, %s6951_s19  ;;  %v6312_v8 = vpack.c.bf16 %v6514_v3, %v6513_v4 }
 0x2a0   :  { %v7217_v9 = vpop.permute.xlu1 %320 }
 0x2a1   :  { %6314 = vmatpush3.bf16.xpose.msk.msra.mxu1 %vm7210_vm3, %v6312_v8  ;;  %v7223_v11 = vpack.i.bf16 %v7217_v9, %v7185_v59 }
 0x2a2   :  { %6319 = vmatprep.subr.bf16.mxu1 %v6947_v45 }
 0x2a3   :  { %316 = vrot.lane.b32.xlu0 %v258_v57, %s6948_s18  ;;  %6541 = vrot.lane.b32.xlu1 %v7223_v11, %s6951_s19 }
 0x2a4   :  { %v7229_v12 = vpop.permute.xlu1 %326 }
 0x2a5   :  { %v7233_v13 = vpack.i.bf16 %v7229_v12, %v7193_v63 }
 0x2a7   :  { %6551 = vrot.lane.b32.xlu0 %v6510_v48, %s6952_s20  ;;  %6546 = vrot.lane.b32.xlu1 %v7233_v13, %s6951_s19 }
 0x2a8   :  { %v6517_v14 = vpop.permute.xlu1 %6516  ;;  %5757 = vmatmul.mubr.msk.f32.vlgmr.msra.gmra.mrb[0].mxu1 %vm332_vm2, %v258_v57 }
 0x2a9   :  { %v6519_v15 = vunpack.i.h.bf16 %v6517_v14  ;;  %v6518_v18 = vunpack.i.l.bf16 %v6517_v14  ;;  %5759 = vmatprep.mubr.msk.f32.mxu1 %vm6949_vm1, %v6950_v46 }
 0x2ab   :  { %v6316_v19 = vpack.c.bf16 %v6519_v15, %v6518_v18  ;;  %6561 = vrot.lane.b32.xlu0 %v6520_v53, %s6952_s20  ;;  %322 = vrot.lane.b32.xlu1 %v273_v60, %s6948_s18 }
 0x2ac   :  { %5760 = vmatmul.mubr.msk.f32.gmra.mrb[2].mxu1 %vm332_vm2, %v7125_v36 }
 0x2ad   :  { %6318 = vmatpush3.bf16.xpose.msk.msra.mxu0 %vm7210_vm3, %v6316_v19  ;;  %5762 = vmatprep.mubr.msk.f32.mxu1 %vm6949_vm1, %v6950_v46 }
 0x2ae   :  { %6323 = vmatprep.subr.bf16.mxu0 %v6947_v45 }
 0x2af   :  { %6566 = vrot.lane.b32.xlu0 %v6525_v61, %s6952_s20  ;;  %6556 = vrot.lane.b32.xlu1 %v6515_v49, %s6952_s20 }
 0x2b0   :  { %5763 = vmatmul.mubr.msk.f32.gmra.mrb[4].mxu1 %vm332_vm2, %v7129_v39 }
 0x2b1   :  { %5782 = vmatprep.mubr.msk.f32.mxu1 %vm6949_vm1, %v6950_v46 }
 0x2b4   :  { %5770 = vmatmul.mubr.msk.f32.vlgmr.msra.gmra.mrb[6].mxu0 %vm332_vm2, %v273_v60 }
 0x2b5   :  { %5772 = vmatprep.mubr.msk.f32.mxu0 %vm6949_vm1, %v6950_v46 }
 0x2b8   :  { %5773 = vmatmul.mubr.msk.f32.gmra.mrb[8].mxu0 %vm332_vm2, %v7135_v42 }
 0x2b9   :  { %5775 = vmatprep.mubr.msk.f32.mxu0 %vm6949_vm1, %v6950_v46 }
 0x2bc   :  { %5776 = vmatmul.mubr.msk.f32.gmra.mrb[10].mxu0 %vm332_vm2, %v7141_v43 }
 0x2bd   :  { %5795 = vmatprep.mubr.msk.f32.mxu0 %vm6949_vm1, %v6950_v46 }
 0x301   :  { %v6522_v20 = vpop.permute.xlu0 %6521 }
 0x302   :  { %v6524_v16 = vunpack.i.h.bf16 %v6522_v20  ;;  %v6523_v21 = vunpack.i.l.bf16 %v6522_v20 }
 0x304   :  { %v6320_v22 = vpack.c.bf16 %v6524_v16, %v6523_v21 }
 0x305   :  { %v293_v23 = vpop.permute.xlu0 %292 }
 0x306   :  { %6322 = vmatpush3.bf16.xpose.msk.msra.mxu1 %vm7210_vm3, %v6320_v22 }
 0x307   :  { %6327 = vmatprep.subr.bf16.mxu1 %v6947_v45 }
 0x309   :  { %v6527_v26 = vpop.permute.xlu1 %6526  ;;  %v299_v27 = vpop.permute.xlu0 %298 }
 0x30a   :  { %v6529_v17 = vunpack.i.h.bf16 %v6527_v26  ;;  %v6528_v24 = vunpack.i.l.bf16 %v6527_v26 }
 0x30c   :  { %v6324_v28 = vpack.c.bf16 %v6529_v17, %v6528_v24 }
 0x30d   :  { %v6532_v29 = vpop.permute.xlu1 %6531  ;;  %v305_v30 = vpop.permute.xlu0 %304  ;;  %5783 = vmatmul.mubr.msk.f32.vlgmr.msra.gmra.mrb[6].mxu1 %vm332_vm2, %v293_v23 }
 0x30e   :  { %v6534_v31 = vunpack.i.h.bf16 %v6532_v29  ;;  %v6533_v25 = vunpack.i.l.bf16 %v6532_v29  ;;  %6326 = vmatpush3.bf16.xpose.msk.msra.mxu0 %vm7210_vm3, %v6324_v28  ;;  %5785 = vmatprep.mubr.msk.f32.mxu1 %vm6949_vm1, %v6950_v46 }
 0x30f   :  { %6331 = vmatprep.subr.bf16.mxu0 %v6947_v45 }
 0x310   :  { %v6328_v32 = vpack.c.bf16 %v6534_v31, %v6533_v25 }
 0x311   :  { %v6537_v33 = vpop.permute.xlu1 %6536  ;;  %v311_v34 = vpop.permute.xlu0 %310  ;;  %5786 = vmatmul.mubr.msk.f32.gmra.mrb[8].mxu1 %vm332_vm2, %v7169_v50 }
 0x312   :  { %v6539_v36 = vunpack.i.h.bf16 %v6537_v33  ;;  %v6538_v35 = vunpack.i.l.bf16 %v6537_v33  ;;  %6330 = vmatpush3.bf16.xpose.msk.msra.mxu1 %vm7210_vm3, %v6328_v32  ;;  %5788 = vmatprep.mubr.msk.f32.mxu1 %vm6949_vm1, %v6950_v46 }
 0x313   :  { %6335 = vmatprep.subr.bf16.mxu1 %v6947_v45 }
 0x314   :  { %v6332_v37 = vpack.c.bf16 %v6539_v36, %v6538_v35 }
 0x315   :  { %v6542_v38 = vpop.permute.xlu1 %6541  ;;  %5796 = vmatmul.mubr.msk.f32.vlgmr.msra.gmra.mrb[12].mxu0 %vm332_vm2, %v299_v27  ;;  %5789 = vmatmul.mubr.msk.f32.gmra.mrb[10].mxu1 %vm332_vm2, %v7173_v52  ;;  %v317_v41 = vpop.permute.xlu0 %316 }
 0x316   :  { %v6544_v39 = vunpack.i.h.bf16 %v6542_v38  ;;  %v6543_v40 = vunpack.i.l.bf16 %v6542_v38  ;;  %6334 = vmatpush3.bf16.xpose.msk.msra.mxu0 %vm7210_vm3, %v6332_v37  ;;  %5798 = vmatprep.mubr.msk.f32.mxu0 %vm6949_vm1, %v6950_v46 }
 0x317   :  { %5808 = vmatprep.mubr.msk.f32.mxu1 %vm6949_vm1, %v6950_v46  ;;  %6339 = vmatprep.subr.bf16.mxu0 %v6947_v45 }
 0x318   :  { %v6336_v42 = vpack.c.bf16 %v6544_v39, %v6543_v40 }
 0x319   :  { %v6547_v43 = vpop.permute.xlu1 %6546  ;;  %5799 = vmatmul.mubr.msk.f32.gmra.mrb[14].mxu0 %vm332_vm2, %v7178_v54  ;;  %5809 = vmatmul.mubr.msk.f32.vlgmr.msra.gmra.mrb[12].mxu1 %vm332_vm2, %v305_v30  ;;  %v6552_v50 = vpop.permute.xlu0 %6551 }
 0x31a   :  { %6338 = vmatpush3.bf16.xpose.msk.msra.mxu1 %vm7210_vm3, %v6336_v42  ;;  %5801 = vmatprep.mubr.msk.f32.mxu0 %vm6949_vm1, %v6950_v46  ;;  %v6549_v48 = vunpack.i.h.bf16 %v6547_v43  ;;  %v6548_v49 = vunpack.i.l.bf16 %v6547_v43  ;;  %v6554_v53 = vunpack.i.h.bf16 %v6552_v50  ;;  %v6553_v54 = vunpack.i.l.bf16 %v6552_v50 }
 0x31b   :  { %5811 = vmatprep.mubr.msk.f32.mxu1 %vm6949_vm1, %v6950_v46  ;;  %6495 = vmatprep.subr.bf16.mxu1 %v6947_v45 }
 0x31c   :  { %v6340_v52 = vpack.c.bf16 %v6549_v48, %v6548_v49 }
 0x31d   :  { %5802 = vmatmul.mubr.msk.f32.gmra.mrb[16].mxu0 %vm332_vm2, %v7183_v58  ;;  %5812 = vmatmul.mubr.msk.f32.gmra.mrb[14].mxu1 %vm332_vm2, %v7171_v51  ;;  %v6344_v51 = vpack.c.bf16 %v6554_v53, %v6553_v54 }
 0x31e   :  { %5814 = vmatprep.mubr.msk.f32.mxu1 %vm6949_vm1, %v6950_v46  ;;  %5821 = vmatprep.mubr.msk.f32.mxu0 %vm6949_vm1, %v6950_v46 }
 0x321   :  { %5822 = vmatmul.mubr.msk.f32.vlgmr.msra.gmra.mrb[18].mxu0 %vm332_vm2, %v311_v34  ;;  %5815 = vmatmul.mubr.msk.f32.gmra.mrb[16].mxu1 %vm332_vm2, %v7191_v62 }
 0x322   :  { %6342 = vmatpush3.bf16.xpose.msk.msra.mxu0 %vm7210_vm3, %v6340_v52  ;;  %5824 = vmatprep.mubr.msk.f32.mxu0 %vm6949_vm1, %v6950_v46 }
 0x323   :  { %5834 = vmatprep.mubr.msk.f32.mxu1 %vm6949_vm1, %v6950_v46  ;;  %6343 = vmatprep.subr.bf16.mxu0 %v6947_v45 }
 0x325   :  { %5825 = vmatmul.mubr.msk.f32.gmra.mrb[20].mxu0 %vm332_vm2, %v7180_v55  ;;  %5835 = vmatmul.mubr.msk.f32.vlgmr.msra.gmra.mrb[18].mxu1 %vm332_vm2, %v317_v41  ;;  %v323_v55 = vpop.permute.xlu1 %322 }
 0x326   :  { %6496 = vmatpush3.bf16.msra.mxu1 %v6344_v51  ;;  %5827 = vmatprep.mubr.msk.f32.mxu0 %vm6949_vm1, %v6950_v46 }
 0x327   :  { %5837 = vmatprep.mubr.msk.f32.mxu1 %vm6949_vm1, %v6950_v46  ;;  %6349 = vmatprep.subr.bf16.mxu1 %v6947_v45 }
 0x329   :  { %5828 = vmatmul.mubr.msk.f32.gmra.mrb[22].mxu0 %vm332_vm2, %v7202_v1  ;;  %5838 = vmatmul.mubr.msk.f32.gmra.mrb[20].mxu1 %vm332_vm2, %v7185_v59 }
 0x32a   :  { %5840 = vmatprep.mubr.msk.f32.mxu1 %vm6949_vm1, %v6950_v46  ;;  %5847 = vmatprep.mubr.msk.f32.mxu0 %vm6949_vm1, %v6950_v46 }
 0x32d   :  { %5841 = vmatmul.mubr.msk.f32.gmra.mrb[22].mxu1 %vm332_vm2, %v7217_v9  ;;  %5848 = vmatmul.mubr.msk.f32.vlgmr.msra.gmra.mrb[24].mxu0 %vm332_vm2, %v323_v55 }
 0x32e   :  { %6345 = vmatpush3.bf16.msra.mxu0 %v6344_v51  ;;  %5850 = vmatprep.mubr.msk.f32.mxu0 %vm6949_vm1, %v6950_v46 }
 0x32f   :  { %5863 = vmatprep.mubr.msk.f32.mxu1 %vm6949_vm1, %v6950_v46  ;;  %6346 = vmatprep.subr.bf16.mxu0 %v6947_v45 }
 0x331   :  { %5851 = vmatmul.mubr.msk.f32.gmra.mrb[26].mxu0 %vm332_vm2, %v7193_v63 }
 0x332   :  { %5853 = vmatprep.mubr.msk.f32.mxu0 %vm6949_vm1, %v6950_v46 }
 0x335   :  { %5854 = vmatmul.mubr.msk.f32.gmra.mrb[28].mxu0 %vm332_vm2, %v7229_v12 }
 0x336   :  { %5860 = vmatprep.mubr.msk.f32.mxu0 %vm6949_vm1, %v6950_v46 }
 0x37b   :  { %v409_v57 = vpop.f32.mrb[0].mxu1 }
 0x37c   :  { %v7353_v58 = vmul.f32 0.35355338, %v409_v57  ;;  %v5758_v59 = vpop.f32.mrb[1].mxu1 }
 0x37e   :  { %v1106_v60 = vsel %vm1105_vm4, %v7353_v58, -inf }
 0x37f   :  { %1107 = vmax.xlane.f32.xlu0 %v1106_v60  ;;  %v414_v61 = vpop.f32.mrb[2].mxu1 }
 0x380   :  { %v7357_v62 = vmul.f32 0.35355338, %v414_v61  ;;  %v5761_v63 = vpop.f32.mrb[3].mxu1 }
 0x382   :  { %v1109_v1 = vsel %vm1105_vm4, %v7357_v62, -inf }
 0x383   :  { %1110 = vmax.xlane.f32.xlu1 %v1109_v1  ;;  %v419_v2 = vpop.f32.mrb[4].mxu1 }
 0x384   :  { %v5764_v3 = vpop.f32.mrb[5].mxu1  ;;  %v7363_v12 = vmul.f32 0.35355338, %v419_v2 }
 0x386   :  { %v1112_v20 = vsel %vm1105_vm4, %v7363_v12, -inf }
 0x387   :  { %v503_v4 = vpop.f32.mrb[6].mxu0 }
 0x388   :  { %v7361_v8 = vmul.f32 0.35355338, %v503_v4  ;;  %v5771_v9 = vpop.f32.mrb[7].mxu0 }
 0x38a   :  { %v1115_v14 = vsel %vm1105_vm4, %v7361_v8, -inf }
 0x38b   :  { %v508_v15 = vpop.f32.mrb[8].mxu0  ;;  %1116 = vmax.xlane.f32.xlu0 %v1115_v14 }
 0x38c   :  { %v5774_v18 = vpop.f32.mrb[9].mxu0  ;;  %v7367_v19 = vmul.f32 0.35355338, %v508_v15 }
 0x38e   :  { %v1118_v23 = vsel %vm1105_vm4, %v7367_v19, -inf }
 0x38f   :  { %v513_v16 = vpop.f32.mrb[10].mxu0  ;;  %1113 = vmax.xlane.f32.xlu0 %v1112_v20 }
 0x390   :  { %v5777_v21 = vpop.f32.mrb[11].mxu0  ;;  %v7371_v22 = vmul.f32 0.35355338, %v513_v16 }
 0x392   :  { %v1121_v26 = vsel %vm1105_vm4, %v7371_v22, -inf }
 0x393   :  { %1119 = vmax.xlane.f32.xlu0 %v1118_v23 }
 0x397   :  { %1122 = vmax.xlane.f32.xlu0 %v1121_v26 }
 0x3e0   :  { %v597_v27 = vpop.f32.mrb[6].mxu1 }
 0x3e1   :  { %v7377_v17 = vmul.f32 0.35355338, %v597_v27  ;;  %v5784_v24 = vpop.f32.mrb[7].mxu1 }
 0x3e3   :  { %v1124_v28 = vsel %vm1105_vm4, %v7377_v17, -inf }
 0x3e4   :  { %1125 = vmax.xlane.f32.xlu1 %v1124_v28  ;;  %v602_v29 = vpop.f32.mrb[8].mxu1 }
 0x3e5   :  { %v7381_v30 = vmul.f32 0.35355338, %v602_v29  ;;  %v5787_v31 = vpop.f32.mrb[9].mxu1 }
 0x3e7   :  { %v1127_v25 = vsel %vm1105_vm4, %v7381_v30, -inf }
 0x3e8   :  { %v691_v32 = vpop.f32.mrb[12].mxu0  ;;  %1128 = vmax.xlane.f32.xlu1 %v1127_v25  ;;  %v607_v33 = vpop.f32.mrb[10].mxu1 }
 0x3e9   :  { %v7385_v34 = vmul.f32 0.35355338, %v691_v32  ;;  %v7387_v36 = vmul.f32 0.35355338, %v607_v33  ;;  %v5790_v35 = vpop.f32.mrb[11].mxu1  ;;  %v5797_v37 = vpop.f32.mrb[13].mxu0 }
 0x3eb   :  { %v1133_v38 = vsel %vm1105_vm4, %v7385_v34, -inf  ;;  %v1130_v39 = vsel %vm1105_vm4, %v7387_v36, -inf }
 0x3ec   :  { %v696_v40 = vpop.f32.mrb[14].mxu0  ;;  %1134 = vmax.xlane.f32.xlu0 %v1133_v38  ;;  %1131 = vmax.xlane.f32.xlu1 %v1130_v39  ;;  %v785_v41 = vpop.f32.mrb[12].mxu1 }
 0x3ed   :  { %v7393_v42 = vmul.f32 0.35355338, %v696_v40  ;;  %v7395_v43 = vmul.f32 0.35355338, %v785_v41  ;;  %v5800_v48 = vpop.f32.mrb[15].mxu0  ;;  %v5810_v49 = vpop.f32.mrb[13].mxu1 }
 0x3ef   :  { %v1136_v50 = vsel %vm1105_vm4, %v7393_v42, -inf  ;;  %v1142_v52 = vsel %vm1105_vm4, %v7395_v43, -inf }
 0x3f0   :  { %v701_v53 = vpop.f32.mrb[16].mxu0  ;;  %1137 = vmax.xlane.f32.xlu0 %v1136_v50  ;;  %1143 = vmax.xlane.f32.xlu1 %v1142_v52  ;;  %v790_v54 = vpop.f32.mrb[14].mxu1 }
 0x3f1   :  { %v7401_v51 = vmul.f32 0.35355338, %v701_v53  ;;  %v7403_v55 = vmul.f32 0.35355338, %v790_v54  ;;  %v5803_v57 = vpop.f32.mrb[17].mxu0  ;;  %v5813_v59 = vpop.f32.mrb[15].mxu1 }
 0x3f3   :  { %v1139_v60 = vsel %vm1105_vm4, %v7401_v51, -inf  ;;  %v1145_v61 = vsel %vm1105_vm4, %v7403_v55, -inf }
 0x3f4   :  { %v879_v63 = vpop.f32.mrb[18].mxu0  ;;  %1140 = vmax.xlane.f32.xlu0 %v1139_v60  ;;  %1146 = vmax.xlane.f32.xlu1 %v1145_v61  ;;  %v795_v1 = vpop.f32.mrb[16].mxu1 }
 0x3f5   :  { %v7409_v2 = vmul.f32 0.35355338, %v879_v63  ;;  %v7411_v3 = vmul.f32 0.35355338, %v795_v1  ;;  %v5816_v4 = vpop.f32.mrb[17].mxu1  ;;  %v5823_v9 = vpop.f32.mrb[19].mxu0 }
 0x3f6   :  { %v7445_v63 = vpop.permute.xlu0 %6561 }
 0x3f7   :  { %v1151_v14 = vsel %vm1105_vm4, %v7409_v2, -inf  ;;  %v1148_v15 = vsel %vm1105_vm4, %v7411_v3, -inf }
 0x3f8   :  { %v884_v18 = vpop.f32.mrb[20].mxu0  ;;  %1152 = vmax.xlane.f32.xlu0 %v1151_v14  ;;  %1149 = vmax.xlane.f32.xlu1 %v1148_v15  ;;  %v973_v20 = vpop.f32.mrb[18].mxu1 }
 0x3f9   :  { %v7417_v16 = vmul.f32 0.35355338, %v884_v18  ;;  %v7419_v21 = vmul.f32 0.35355338, %v973_v20  ;;  %v5826_v23 = vpop.f32.mrb[21].mxu0  ;;  %v5836_v26 = vpop.f32.mrb[19].mxu1 }
 0x3fa   :  { %v7449_v1 = vpop.permute.xlu0 %6566  ;;  %v7453_v14 = vpop.permute.xlu1 %6556 }
 0x3fb   :  { %v1154_v27 = vsel %vm1105_vm4, %v7417_v16, -inf  ;;  %v1160_v24 = vsel %vm1105_vm4, %v7419_v21, -inf }
 0x3fc   :  { %v889_v28 = vpop.f32.mrb[22].mxu0  ;;  %1155 = vmax.xlane.f32.xlu0 %v1154_v27  ;;  %1161 = vmax.xlane.f32.xlu1 %v1160_v24  ;;  %v978_v29 = vpop.f32.mrb[20].mxu1 }
 0x3fd   :  { %v7425_v31 = vmul.f32 0.35355338, %v889_v28  ;;  %v7427_v25 = vmul.f32 0.35355338, %v978_v29  ;;  %v5829_v32 = vpop.f32.mrb[23].mxu0  ;;  %v5839_v33 = vpop.f32.mrb[21].mxu1 }
 0x3ff   :  { %v1157_v35 = vsel %vm1105_vm4, %v7425_v31, -inf  ;;  %v1163_v37 = vsel %vm1105_vm4, %v7427_v25, -inf }
 0x400   :  { %v1067_v38 = vpop.f32.mrb[24].mxu0  ;;  %1158 = vmax.xlane.f32.xlu0 %v1157_v35  ;;  %1164 = vmax.xlane.f32.xlu1 %v1163_v37  ;;  %v983_v39 = vpop.f32.mrb[22].mxu1 }
 0x401   :  { %v7433_v40 = vmul.f32 0.35355338, %v1067_v38  ;;  %v7435_v41 = vmul.f32 0.35355338, %v983_v39  ;;  %v5842_v48 = vpop.f32.mrb[23].mxu1  ;;  %v5849_v49 = vpop.f32.mrb[25].mxu0 }
 0x403   :  { %v1169_v50 = vsel %vm1105_vm4, %v7433_v40, -inf  ;;  %v1166_v52 = vsel %vm1105_vm4, %v7435_v41, -inf }
 0x404   :  { %v1072_v53 = vpop.f32.mrb[26].mxu0  ;;  %1170 = vmax.xlane.f32.xlu0 %v1169_v50  ;;  %1167 = vmax.xlane.f32.xlu1 %v1166_v52 }
 0x405   :  { %v7441_v54 = vmul.f32 0.35355338, %v1072_v53  ;;  %v5852_v57 = vpop.f32.mrb[27].mxu0 }
 0x407   :  { %v1172_v59 = vsel %vm1105_vm4, %v7441_v54, -inf }
 0x408   :  { %v1077_v60 = vpop.f32.mrb[28].mxu0  ;;  %1173 = vmax.xlane.f32.xlu0 %v1172_v59 }
 0x409   :  { %v5855_v61 = vpop.f32.mrb[29].mxu0 }
 0x40c   :  { %v1108_v4 = vpop.xlane.xlu0 %1107 }
 0x40d   :  { %v1178_v20 = vsub.f32 %v7353_v58, %v1108_v4 }
 0x40f   :  { %v1202_v26 = vmul.f32 1.442695, %v1178_v20 }
 0x410   :  { %v1111_v15 = vpop.xlane.xlu1 %1110 }
 0x411   :  { %v1179_v23 = vsub.f32 %v7357_v62, %v1111_v15  ;;  %6682 = vpow2.f32 %v1202_v26  ;;  %v7461_v62 = vmul.f32 0.35355338, %v1077_v60 }
 0x415   :  { %6571 = vrot.lane.b32.xlu1 %v7197_v0, %s6952_s20  ;;  %v1204_v0 = vmul.f32 1.442695, %v1179_v23 }
 0x417   :  { %6684 = vpow2.f32 %v1204_v0 }
 0x418   :  { %v1117_v9 = vpop.xlane.xlu0 %1116 }
 0x419   :  { %v1181_v27 = vsub.f32 %v7361_v8, %v1117_v9 }
 0x41b   :  { %v1208_v29 = vmul.f32 1.442695, %v1181_v27  ;;  %v7463_v37 = vpop.eup %6682 }
 0x41c   :  { %v1114_v18 = vpop.xlane.xlu0 %1113  ;;  %v1250_v39 = vsel %vm1105_vm4, %v7463_v37, 0.0 }
 0x41d   :  { %v1180_v28 = vsub.f32 %v7363_v12, %v1114_v18  ;;  %6686 = vpow2.f32 %v1208_v29  ;;  %v1175_v12 = vsel %vm1105_vm4, %v7461_v62, -inf }
 0x41e   :  { %6576 = vrot.lane.b32.xlu0 %v7206_v5, %s6952_s20 }
 0x41f   :  { %v1206_v32 = vmul.f32 1.442695, %v1180_v28 }
 0x420   :  { %v1120_v24 = vpop.xlane.xlu0 %1119 }
 0x421   :  { %v1182_v5 = vsub.f32 %v7367_v19, %v1120_v24  ;;  %6688 = vpow2.f32 %v1206_v32  ;;  %v7467_v38 = vpop.eup %6684 }
 0x423   :  { %v1210_v35 = vmul.f32 1.442695, %v1182_v5 }
 0x424   :  { %v1123_v33 = vpop.xlane.xlu0 %1122 }
 0x425   :  { %v1183_v58 = vsub.f32 %v7371_v22, %v1123_v33  ;;  %6690 = vpow2.f32 %v1210_v35  ;;  %v1253_v22 = vsel %vm1105_vm4, %v7467_v38, 0.0 }
 0x427   :  { %v1212_v8 = vmul.f32 1.442695, %v1183_v58  ;;  %v7469_v19 = vpop.eup %6686 }
 0x428   :  { %v1259_v49 = vsel %vm1105_vm4, %v7469_v19, 0.0 }
 0x429   :  { %6692 = vpow2.f32 %v1212_v8 }
 0x42b   :  { %v7475_v48 = vpop.eup %6688 }
 0x42c   :  { %v1256_v50 = vsel %vm1105_vm4, %v7475_v48, 0.0 }
 0x42f   :  { %v7481_v52 = vpop.eup %6690 }
 0x430   :  { %v1262_v53 = vsel %vm1105_vm4, %v7481_v52, 0.0 }
 0x433   :  { %v7485_v57 = vpop.eup %6692 }
 0x434   :  { %v1265_v59 = vsel %vm1105_vm4, %v7485_v57, 0.0 }
 0x439   :  { %1176 = vmax.xlane.f32.xlu1 %v1175_v12 }
 0x43d   :  { %1251 = vadd.xlane.f32.xlu0 %v1250_v39  ;;  %1254 = vadd.xlane.f32.xlu1 %v1253_v22 }
 0x441   :  { %1260 = vadd.xlane.f32.xlu0 %v1259_v49  ;;  %1257 = vadd.xlane.f32.xlu1 %v1256_v50 }
 0x445   :  { %1263 = vadd.xlane.f32.xlu0 %v1262_v53 }
 0x449   :  { %1266 = vadd.xlane.f32.xlu0 %v1265_v59 }
 0x471   :  { %v1126_v60 = vpop.xlane.xlu1 %1125 }
 0x472   :  { %v1184_v61 = vsub.f32 %v7377_v17, %v1126_v60 }
 0x474   :  { %v1214_v4 = vmul.f32 1.442695, %v1184_v61 }
 0x475   :  { %v1129_v9 = vpop.xlane.xlu1 %1128 }
 0x476   :  { %6694 = vpow2.f32 %v1214_v4  ;;  %v1185_v15 = vsub.f32 %v7381_v30, %v1129_v9 }
 0x478   :  { %v1216_v18 = vmul.f32 1.442695, %v1185_v15 }
 0x479   :  { %v1135_v20 = vpop.xlane.xlu0 %1134  ;;  %v1132_v23 = vpop.xlane.xlu1 %1131 }
 0x47a   :  { %6696 = vpow2.f32 %v1216_v18  ;;  %v1187_v26 = vsub.f32 %v7385_v34, %v1135_v20  ;;  %v1186_v27 = vsub.f32 %v7387_v36, %v1132_v23 }
 0x47c   :  { %v1220_v24 = vmul.f32 1.442695, %v1187_v26  ;;  %v1218_v0 = vmul.f32 1.442695, %v1186_v27 }
 0x47d   :  { %v1138_v28 = vpop.xlane.xlu0 %1137  ;;  %v1144_v29 = vpop.xlane.xlu1 %1143 }
 0x47e   :  { %6698 = vpow2.f32 %v1220_v24  ;;  %v1188_v17 = vsub.f32 %v7393_v42, %v1138_v28  ;;  %v1190_v32 = vsub.f32 %v7395_v43, %v1144_v29 }
 0x47f   :  { %6700 = vpow2.f32 %v1218_v0 }
 0x480   :  { %v7495_v5 = vpop.eup %6694  ;;  %v1222_v30 = vmul.f32 1.442695, %v1188_v17  ;;  %v1226_v33 = vmul.f32 1.442695, %v1190_v32 }
 0x481   :  { %v1141_v35 = vpop.xlane.xlu0 %1140  ;;  %v1147_v58 = vpop.xlane.xlu1 %1146  ;;  %v1268_v34 = vsel %vm1105_vm4, %v7495_v5, 0.0 }
 0x482   :  { %6702 = vpow2.f32 %v1222_v30  ;;  %v1189_v36 = vsub.f32 %v7401_v51, %v1141_v35  ;;  %v1191_v8 = vsub.f32 %v7403_v55, %v1147_v58  ;;  %1269 = vadd.xlane.f32.xlu1 %v1268_v34 }
 0x483   :  { %6704 = vpow2.f32 %v1226_v33 }
 0x484   :  { %v7501_v42 = vpop.eup %6696  ;;  %v1224_v43 = vmul.f32 1.442695, %v1189_v36  ;;  %v1228_v12 = vmul.f32 1.442695, %v1191_v8 }
 0x485   :  { %v1153_v39 = vpop.xlane.xlu0 %1152  ;;  %v1150_v22 = vpop.xlane.xlu1 %1149  ;;  %v1271_v49 = vsel %vm1105_vm4, %v7501_v42, 0.0 }
 0x486   :  { %6706 = vpow2.f32 %v1224_v43  ;;  %v1193_v50 = vsub.f32 %v7409_v2, %v1153_v39  ;;  %v1192_v53 = vsub.f32 %v7411_v3, %v1150_v22  ;;  %1272 = vadd.xlane.f32.xlu1 %v1271_v49 }
 0x487   :  { %6708 = vpow2.f32 %v1228_v12 }
 0x488   :  { %v7507_v51 = vpop.eup %6698  ;;  %v1232_v55 = vmul.f32 1.442695, %v1193_v50  ;;  %v1230_v60 = vmul.f32 1.442695, %v1192_v53 }
 0x489   :  { %v7509_v59 = vpop.eup %6700  ;;  %v1156_v61 = vpop.xlane.xlu0 %1155  ;;  %v1277_v9 = vsel %vm1105_vm4, %v7507_v51, 0.0 }
 0x48a   :  { %v1162_v4 = vpop.xlane.xlu1 %1161  ;;  %6710 = vpow2.f32 %v1232_v55  ;;  %v1194_v15 = vsub.f32 %v7417_v16, %v1156_v61  ;;  %1278 = vadd.xlane.f32.xlu0 %v1277_v9  ;;  %v1274_v2 = vsel %vm1105_vm4, %v7509_v59, 0.0 }
 0x48b   :  { %1275 = vadd.xlane.f32.xlu1 %v1274_v2  ;;  %6712 = vpow2.f32 %v1230_v60  ;;  %v1196_v23 = vsub.f32 %v7419_v21, %v1162_v4 }
 0x48c   :  { %v7516_v3 = vpop.eup %6702  ;;  %v1234_v20 = vmul.f32 1.442695, %v1194_v15 }
 0x48d   :  { %v7518_v18 = vpop.eup %6704  ;;  %v1280_v27 = vsel %vm1105_vm4, %v7516_v3, 0.0  ;;  %v1159_v24 = vpop.xlane.xlu0 %1158  ;;  %v1238_v28 = vmul.f32 1.442695, %v1196_v23 }
 0x48e   :  { %v1165_v26 = vpop.xlane.xlu1 %1164  ;;  %1281 = vadd.xlane.f32.xlu0 %v1280_v27  ;;  %v1286_v16 = vsel %vm1105_vm4, %v7518_v18, 0.0  ;;  %6714 = vpow2.f32 %v1234_v20  ;;  %v1195_v29 = vsub.f32 %v7425_v31, %v1159_v24 }
 0x48f   :  { %1287 = vadd.xlane.f32.xlu1 %v1286_v16  ;;  %6716 = vpow2.f32 %v1238_v28  ;;  %v1197_v36 = vsub.f32 %v7427_v25, %v1165_v26 }
 0x490   :  { %v7525_v0 = vpop.eup %6706  ;;  %v1236_v34 = vmul.f32 1.442695, %v1195_v29 }
 0x491   :  { %v1283_v21 = vsel %vm1105_vm4, %v7525_v0, 0.0  ;;  %v7531_v30 = vpop.eup %6708  ;;  %v1171_v35 = vpop.xlane.xlu0 %1170 }
 0x492   :  { %v1168_v17 = vpop.xlane.xlu1 %1167  ;;  %v1289_v8 = vsel %vm1105_vm4, %v7531_v30, 0.0  ;;  %v1199_v12 = vsub.f32 %v7433_v40, %v1171_v35 }
 0x493   :  { %v1198_v32 = vsub.f32 %v7435_v41, %v1168_v17  ;;  %1284 = vadd.xlane.f32.xlu1 %v1283_v21  ;;  %v1240_v41 = vmul.f32 1.442695, %v1197_v36  ;;  %v6559_v36 = vunpack.i.h.bf16 %v7453_v14 }
 0x494   :  { %v7533_v33 = vpop.eup %6710  ;;  %v1244_v49 = vmul.f32 1.442695, %v1199_v12 }
 0x495   :  { %v1242_v58 = vmul.f32 1.442695, %v1198_v32  ;;  %v1295_v31 = vsel %vm1105_vm4, %v7533_v33, 0.0  ;;  %v7540_v43 = vpop.eup %6712  ;;  %v1174_v39 = vpop.xlane.xlu0 %1173 }
 0x496   :  { %1296 = vadd.xlane.f32.xlu0 %v1295_v31  ;;  %v1292_v22 = vsel %vm1105_vm4, %v7540_v43, 0.0  ;;  %v1200_v50 = vsub.f32 %v7441_v54, %v1174_v39  ;;  %v7574_v24 = vpop.permute.xlu1 %6571 }
 0x497   :  { %6718 = vpow2.f32 %v1242_v58  ;;  %1290 = vadd.xlane.f32.xlu1 %v1289_v8  ;;  %v6563_v8 = vunpack.i.l.bf16 %v7445_v63 }
 0x498   :  { %6720 = vpow2.f32 %v1236_v34  ;;  %v7545_v25 = vpop.eup %6714  ;;  %v1246_v40 = vmul.f32 1.442695, %v1200_v50 }
 0x499   :  { %6722 = vpow2.f32 %v1240_v41  ;;  %v1298_v53 = vsel %vm1105_vm4, %v7545_v25, 0.0  ;;  %v7550_v55 = vpop.eup %6716  ;;  %v7578_v16 = vpop.permute.xlu0 %6576 }
 0x49a   :  { %6724 = vpow2.f32 %v1244_v49  ;;  %v1304_v61 = vsel %vm1105_vm4, %v7550_v55, 0.0 }
 0x49b   :  { %1293 = vadd.xlane.f32.xlu1 %v1292_v22  ;;  %6726 = vpow2.f32 %v1246_v40 }
 0x49f   :  { %1299 = vadd.xlane.f32.xlu1 %v1298_v53  ;;  %v6569_v53 = vunpack.i.h.bf16 %v7449_v1 }
 0x4a1   :  { %v7552_v60 = vpop.eup %6718 }
 0x4a2   :  { %v1310_v4 = vsel %vm1105_vm4, %v7552_v60, 0.0  ;;  %v7558_v9 = vpop.eup %6720 }
 0x4a3   :  { %1305 = vadd.xlane.f32.xlu1 %v1304_v61  ;;  %1311 = vadd.xlane.f32.xlu0 %v1310_v4  ;;  %v1301_v54 = vsel %vm1105_vm4, %v7558_v9, 0.0  ;;  %v7562_v15 = vpop.eup %6722 }
 0x4a4   :  { %v1307_v2 = vsel %vm1105_vm4, %v7562_v15, 0.0  ;;  %v7566_v20 = vpop.eup %6724 }
 0x4a5   :  { %v1313_v23 = vsel %vm1105_vm4, %v7566_v20, 0.0  ;;  %v7570_v26 = vpop.eup %6726 }
 0x4a6   :  { %v1316_v27 = vsel %vm1105_vm4, %v7570_v26, 0.0 }
 0x4a7   :  { %1302 = vadd.xlane.f32.xlu1 %v1301_v54 }
 0x4ab   :  { %1308 = vadd.xlane.f32.xlu1 %v1307_v2 }
 0x4af   :  { %1314 = vadd.xlane.f32.xlu1 %v1313_v23 }
 0x4b3   :  { %1317 = vadd.xlane.f32.xlu1 %v1316_v27 }
 0x4c4   :  { %6581 = vrot.lane.b32.xlu1 %v7223_v11, %s6952_s20  ;;  %v6558_v11 = vunpack.i.l.bf16 %v7453_v14  ;;  %v6568_v14 = vunpack.i.l.bf16 %v7449_v1 }
 0x4c6   :  { %v1177_v28 = vpop.xlane.xlu1 %1176  ;;  %v6347_v50 = vpack.c.bf16 %v6559_v36, %v6558_v11  ;;  %v6353_v2 = vpack.c.bf16 %v6569_v53, %v6568_v14 }
 0x4c7   :  { %v1201_v29 = vsub.f32 %v7461_v62, %v1177_v28  ;;  %v6564_v62 = vunpack.i.h.bf16 %v7445_v63  ;;  %v6574_v28 = vunpack.i.h.bf16 %v7574_v24 }
 0x4c9   :  { %v1248_v17 = vmul.f32 1.442695, %v1201_v29  ;;  %v6350_v4 = vpack.c.bf16 %v6564_v62, %v6563_v8  ;;  %v6573_v29 = vunpack.i.l.bf16 %v7574_v24 }
 0x4ca   :  { %v1252_v21 = vpop.xlane.xlu0 %1251  ;;  %v1255_v32 = vpop.xlane.xlu1 %1254 }
 0x4cb   :  { %6728 = vpow2.f32 %v1248_v17 }
 0x4cc   :  { %6730 = vrcp.f32 %v1252_v21 }
 0x4cd   :  { %6732 = vrcp.f32 %v1255_v32 }
 0x4ce   :  { %v1261_v35 = vpop.xlane.xlu0 %1260  ;;  %v1258_v58 = vpop.xlane.xlu1 %1257 }
 0x4cf   :  { %6734 = vrcp.f32 %v1261_v35  ;;  %v6356_v35 = vpack.c.bf16 %v6574_v28, %v6573_v29 }
 0x4d0   :  { %6736 = vrcp.f32 %v1258_v58 }
 0x4d2   :  { %v1264_v34 = vpop.xlane.xlu0 %1263 }
 0x4d3   :  { %6738 = vrcp.f32 %v1264_v34  ;;  %v6579_v34 = vunpack.i.h.bf16 %v7578_v16 }
 0x4d5   :  { %v7583_v31 = vpop.eup %6728 }
 0x4d6   :  { %v6731_v41 = vpop.eup %6730  ;;  %v1267_v12 = vpop.xlane.xlu0 %1266  ;;  %v1319_v39 = vsel %vm1105_vm4, %v7583_v31, 0.0 }
 0x4d7   :  { %v6733_v22 = vpop.eup %6732  ;;  %v1346_v49 = vmul.f32 %v6731_v41, %v7463_v37  ;;  %6740 = vrcp.f32 %v1267_v12  ;;  %1320 = vadd.xlane.f32.xlu0 %v1319_v39 }
 0x4d8   :  { %v1347_v40 = vmul.f32 %v6733_v22, %v7467_v38 }
 0x4d9   :  { %v6735_v61 = vpop.eup %6734  ;;  %5861 = vmatmul.mubr.msk.f32.vlgmr.msra.gmra.mrb[30].mxu0 %vm1105_vm4, %v1346_v49 }
 0x4da   :  { %v6737_v63 = vpop.eup %6736  ;;  %5864 = vmatmul.mubr.msk.f32.vlgmr.msra.gmra.mrb[24].mxu1 %vm1105_vm4, %v1347_v40  ;;  %6348 = vmatpush3.bf16.msra.mxu0 %v6347_v50  ;;  %v1349_v54 = vmul.f32 %v6735_v61, %v7469_v19 }
 0x4db   :  { %6351 = vmatpush3.bf16.msra.mxu1 %v6350_v4  ;;  %5866 = vmatprep.mubr.msk.f32.mxu1 %vm6949_vm1, %v6950_v46  ;;  %v1348_v37 = vmul.f32 %v6737_v63, %v7475_v48 }
 0x4dc   :  { %5873 = vmatprep.mubr.msk.f32.mxu0 %vm6949_vm1, %v6950_v46  ;;  %6352 = vmatprep.subr.bf16.mxu0 %v6947_v45 }
 0x4dd   :  { %v6739_v1 = vpop.eup %6738  ;;  %5874 = vmatmul.mubr.msk.f32.vlgmr.msra.gmra.mrb[32].mxu0 %vm1105_vm4, %v1349_v54  ;;  %6355 = vmatprep.subr.bf16.mxu1 %v6947_v45 }
 0x4de   :  { %5867 = vmatmul.mubr.msk.f32.gmra.mrb[26].mxu1 %vm1105_vm4, %v1348_v37  ;;  %6354 = vmatpush3.bf16.msra.mxu0 %v6353_v2  ;;  %v1350_v38 = vmul.f32 %v6739_v1, %v7481_v52 }
 0x4df   :  { %5876 = vmatprep.mubr.msk.f32.mxu0 %vm6949_vm1, %v6950_v46  ;;  %5886 = vmatprep.mubr.msk.f32.mxu1 %vm6949_vm1, %v6950_v46 }
 0x4e0   :  { %6358 = vmatprep.subr.bf16.mxu0 %v6947_v45 }
 0x4e1   :  { %v6741_v19 = vpop.eup %6740  ;;  %5877 = vmatmul.mubr.msk.f32.gmra.mrb[34].mxu0 %vm1105_vm4, %v1350_v38 }
 0x4e2   :  { %5879 = vmatprep.mubr.msk.f32.mxu0 %vm6949_vm1, %v6950_v46  ;;  %v1351_v48 = vmul.f32 %v6741_v19, %v7485_v57 }
 0x4e5   :  { %5880 = vmatmul.mubr.msk.f32.gmra.mrb[36].mxu0 %vm1105_vm4, %v1351_v48 }
 0x4e6   :  { %5899 = vmatprep.mubr.msk.f32.mxu0 %vm6949_vm1, %v6950_v46 }
 0x4ed   :  { %6586 = vrot.lane.b32.xlu0 %v7233_v13, %s6952_s20 }
 0x50f   :  { %v1270_v52 = vpop.xlane.xlu1 %1269 }
 0x510   :  { %6742 = vrcp.f32 %v1270_v52 }
 0x513   :  { %v1273_v23 = vpop.xlane.xlu1 %1272 }
 0x514   :  { %6744 = vrcp.f32 %v1273_v23 }
 0x517   :  { %v1279_v27 = vpop.xlane.xlu0 %1278 }
 0x518   :  { %6746 = vrcp.f32 %v1279_v27  ;;  %v1276_v17 = vpop.xlane.xlu1 %1275 }
 0x519   :  { %6748 = vrcp.f32 %v1276_v17 }
 0x51a   :  { %v6743_v57 = vpop.eup %6742 }
 0x51b   :  { %v1352_v21 = vmul.f32 %v6743_v57, %v7495_v5  ;;  %v1282_v32 = vpop.xlane.xlu0 %1281  ;;  %v6578_v5 = vunpack.i.l.bf16 %v7578_v16 }
 0x51c   :  { %6750 = vrcp.f32 %v1282_v32  ;;  %v1288_v58 = vpop.xlane.xlu1 %1287 }
 0x51d   :  { %6752 = vrcp.f32 %v1288_v58  ;;  %5887 = vmatmul.mubr.msk.f32.vlgmr.msra.gmra.mrb[28].mxu1 %vm1105_vm4, %v1352_v21  ;;  %v6359_v12 = vpack.c.bf16 %v6579_v34, %v6578_v5 }
 0x51e   :  { %v6745_v13 = vpop.eup %6744  ;;  %6357 = vmatpush3.bf16.msra.mxu1 %v6356_v35  ;;  %5889 = vmatprep.mubr.msk.f32.mxu1 %vm6949_vm1, %v6950_v46 }
 0x51f   :  { %v1353_v24 = vmul.f32 %v6745_v13, %v7501_v42  ;;  %6361 = vmatprep.subr.bf16.mxu1 %v6947_v45 }
 0x520   :  { %v1285_v36 = vpop.xlane.xlu1 %1284 }
 0x521   :  { %6754 = vrcp.f32 %v1285_v36  ;;  %5890 = vmatmul.mubr.msk.f32.gmra.mrb[30].mxu1 %vm1105_vm4, %v1353_v24 }
 0x522   :  { %v6747_v11 = vpop.eup %6746  ;;  %5892 = vmatprep.mubr.msk.f32.mxu1 %vm6949_vm1, %v6950_v46 }
 0x523   :  { %v6749_v62 = vpop.eup %6748  ;;  %v1355_v8 = vmul.f32 %v6747_v11, %v7507_v51  ;;  %v1297_v41 = vpop.xlane.xlu0 %1296 }
 0x524   :  { %6756 = vrcp.f32 %v1297_v41  ;;  %v1291_v42 = vpop.xlane.xlu1 %1290  ;;  %v1354_v39 = vmul.f32 %v6749_v62, %v7509_v59 }
 0x525   :  { %6758 = vrcp.f32 %v1291_v42  ;;  %5900 = vmatmul.mubr.msk.f32.vlgmr.msra.gmra.mrb[38].mxu0 %vm1105_vm4, %v1355_v8 }
 0x526   :  { %v6751_v16 = vpop.eup %6750  ;;  %5893 = vmatmul.mubr.msk.f32.gmra.mrb[32].mxu1 %vm1105_vm4, %v1354_v39  ;;  %6360 = vmatpush3.bf16.msra.mxu0 %v6359_v12 }
 0x527   :  { %v6753_v22 = vpop.eup %6752  ;;  %5902 = vmatprep.mubr.msk.f32.mxu0 %vm6949_vm1, %v6950_v46  ;;  %5912 = vmatprep.mubr.msk.f32.mxu1 %vm6949_vm1, %v6950_v46  ;;  %v1356_v51 = vmul.f32 %v6751_v16, %v7516_v3 }
 0x528   :  { %v1358_v49 = vmul.f32 %v6753_v22, %v7518_v18  ;;  %v1294_v50 = vpop.xlane.xlu1 %1293  ;;  %6364 = vmatprep.subr.bf16.mxu0 %v6947_v45 }
 0x529   :  { %6760 = vrcp.f32 %v1294_v50  ;;  %5903 = vmatmul.mubr.msk.f32.gmra.mrb[40].mxu0 %vm1105_vm4, %v1356_v51 }
 0x52a   :  { %5913 = vmatmul.mubr.msk.f32.vlgmr.msra.gmra.mrb[34].mxu1 %vm1105_vm4, %v1358_v49  ;;  %5905 = vmatprep.mubr.msk.f32.mxu0 %vm6949_vm1, %v6950_v46 }
 0x52b   :  { %v6755_v59 = vpop.eup %6754  ;;  %5915 = vmatprep.mubr.msk.f32.mxu1 %vm6949_vm1, %v6950_v46 }
 0x52c   :  { %v1300_v53 = vpop.xlane.xlu1 %1299  ;;  %v1357_v3 = vmul.f32 %v6755_v59, %v7525_v0 }
 0x52d   :  { %6762 = vrcp.f32 %v1300_v53 }
 0x52e   :  { %v6757_v18 = vpop.eup %6756  ;;  %5906 = vmatmul.mubr.msk.f32.gmra.mrb[42].mxu0 %vm1105_vm4, %v1357_v3 }
 0x52f   :  { %v6759_v14 = vpop.eup %6758  ;;  %v1361_v40 = vmul.f32 %v6757_v18, %v7533_v33  ;;  %5925 = vmatprep.mubr.msk.f32.mxu0 %vm6949_vm1, %v6950_v46 }
 0x530   :  { %v1306_v61 = vpop.xlane.xlu1 %1305  ;;  %v1359_v4 = vmul.f32 %v6759_v14, %v7531_v30  ;;  %v1312_v19 = vpop.xlane.xlu0 %1311 }
 0x532   :  { %5916 = vmatmul.mubr.msk.f32.gmra.mrb[36].mxu1 %vm1105_vm4, %v1359_v4  ;;  %5926 = vmatmul.mubr.msk.f32.vlgmr.msra.gmra.mrb[44].mxu0 %vm1105_vm4, %v1361_v40  ;;  %v48_v4 = vld [vmem:[%s8733_s4] sm:$0xff] }
 0x533   :  { %v6761_v63 = vpop.eup %6760  ;;  %5918 = vmatprep.mubr.msk.f32.mxu1 %vm6949_vm1, %v6950_v46  ;;  %5928 = vmatprep.mubr.msk.f32.mxu0 %vm6949_vm1, %v6950_v46 }
 0x534   :  { %v1303_v0 = vpop.xlane.xlu1 %1302  ;;  %v1360_v33 = vmul.f32 %v6761_v63, %v7540_v43  ;;  %v49_v63 = vld [vmem:[%s8733_s4 + $0x8] sm:$0xff] }
 0x535   :  { %6764 = vrcp.f32 %v1303_v0 }
 0x536   :  { %5919 = vmatmul.mubr.msk.f32.gmra.mrb[38].mxu1 %vm1105_vm4, %v1360_v33  ;;  %6766 = vrcp.f32 %v1306_v61  ;;  %v7717_v33 = vpack.c.bf16 %v49_v63, %v48_v4 }
 0x537   :  { %v6763_v54 = vpop.eup %6762  ;;  %5938 = vmatprep.mubr.msk.f32.mxu1 %vm6949_vm1, %v6950_v46 }
 0x538   :  { %v1309_v30 = vpop.xlane.xlu1 %1308  ;;  %v1362_v37 = vmul.f32 %v6763_v54, %v7545_v25 }
 0x539   :  { %6768 = vrcp.f32 %v1309_v30 }
 0x53a   :  { %5929 = vmatmul.mubr.msk.f32.gmra.mrb[46].mxu0 %vm1105_vm4, %v1362_v37  ;;  %6770 = vrcp.f32 %v1312_v19 }
 0x53b   :  { %5931 = vmatprep.mubr.msk.f32.mxu0 %vm6949_vm1, %v6950_v46 }
 0x53c   :  { %v1315_v2 = vpop.xlane.xlu1 %1314 }
 0x53d   :  { %6772 = vrcp.f32 %v1315_v2 }
 0x53f   :  { %v6765_v1 = vpop.eup %6764 }
 0x540   :  { %v1318_v38 = vpop.xlane.xlu1 %1317  ;;  %v1363_v43 = vmul.f32 %v6765_v1, %v7558_v9  ;;  %v6767_v23 = vpop.eup %6766 }
 0x541   :  { %v1364_v28 = vmul.f32 %v6767_v23, %v7550_v55  ;;  %6774 = vrcp.f32 %v1318_v38  ;;  %v51_v23 = vld [vmem:[%s8733_s4 + $0x18] sm:$0xff] }
 0x542   :  { %5932 = vmatmul.mubr.msk.f32.gmra.mrb[48].mxu0 %vm1105_vm4, %v1363_v43 }
 0x543   :  { %5951 = vmatprep.mubr.msk.f32.mxu0 %vm6949_vm1, %v6950_v46  ;;  %v6769_v29 = vpop.eup %6768 }
 0x544   :  { %v6582_v48 = vpop.permute.xlu1 %6581  ;;  %v1365_v9 = vmul.f32 %v6769_v29, %v7562_v15  ;;  %v6771_v17 = vpop.eup %6770 }
 0x545   :  { %v6584_v25 = vunpack.i.h.bf16 %v6582_v48  ;;  %v6583_v52 = vunpack.i.l.bf16 %v6582_v48  ;;  %v1366_v57 = vmul.f32 %v6771_v17, %v7552_v60 }
 0x547   :  { %v6362_v27 = vpack.c.bf16 %v6584_v25, %v6583_v52  ;;  %v6773_v58 = vpop.eup %6772  ;;  %v50_v52 = vld [vmem:[%s8733_s4 + $0x10] sm:$0xff] }
 0x548   :  { %v1367_v15 = vmul.f32 %v6773_v58, %v7566_v20 }
 0x549   :  { %6363 = vmatpush3.bf16.msra.mxu1 %v6362_v27  ;;  %v7732_v27 = vpack.c.bf16 %v51_v23, %v50_v52  ;;  %v6910_v23 = vld [vmem:[%s8729_s0 + $0x8] sm:$0xff] }
 0x54a   :  { %6368 = vmatprep.subr.bf16.mxu1 %v7717_v33 }
 0x54b   :  { %v6775_v24 = vpop.eup %6774 }
 0x54c   :  { %5939 = vmatmul.mubr.msk.f32.vlgmr.msra.gmra.mrb[40].mxu1 %vm1105_vm4, %v1364_v28  ;;  %v1368_v60 = vmul.f32 %v6775_v24, %v7570_v26 }
 0x54d   :  { %5941 = vmatprep.mubr.msk.f32.mxu1 %vm6949_vm1, %v6950_v46  ;;  %6370 = vmatpush3.bf16.msra.mxu1 %v7717_v33 }
 0x54e   :  { %6372 = vmatprep.subr.bf16.mxu1 %v7732_v27 }
 0x550   :  { %5942 = vmatmul.mubr.msk.f32.gmra.mrb[42].mxu1 %vm1105_vm4, %v1365_v9 }
 0x551   :  { %5944 = vmatprep.mubr.msk.f32.mxu1 %vm6949_vm1, %v6950_v46  ;;  %6374 = vmatpush3.bf16.msra.mxu1 %v7732_v27 }
 0x554   :  { %5945 = vmatmul.mubr.msk.f32.gmra.mrb[44].mxu1 %vm1105_vm4, %v1366_v57 }
 0x564   :  { %v1321_v55 = vpop.xlane.xlu0 %1320 }
 0x565   :  { %6776 = vrcp.f32 %v1321_v55 }
 0x568   :  { %v6587_v21 = vpop.permute.xlu0 %6586 }
 0x569   :  { %v6589_v32 = vunpack.i.h.bf16 %v6587_v21  ;;  %v6588_v35 = vunpack.i.l.bf16 %v6587_v21 }
 0x56b   :  { %v6365_v13 = vpack.c.bf16 %v6589_v32, %v6588_v35 }
 0x56d   :  { %6366 = vmatpush3.bf16.msra.mxu0 %v6365_v13 }
 0x56f   :  { %v6777_v34 = vpop.eup %6776 }
 0x570   :  { %5952 = vmatmul.mubr.msk.f32.vlgmr.msra.gmra.mrb[50].mxu0 %vm1105_vm4, %v1367_v15  ;;  %v1369_v5 = vmul.f32 %v6777_v34, %v7583_v31 }
 0x571   :  { %5954 = vmatprep.mubr.msk.f32.mxu0 %vm6949_vm1, %v6950_v46 }
 0x574   :  { %5955 = vmatmul.mubr.msk.f32.gmra.mrb[52].mxu0 %vm1105_vm4, %v1368_v60 }
 0x575   :  { %5957 = vmatprep.mubr.msk.f32.mxu0 %vm6949_vm1, %v6950_v46 }
 0x578   :  { %5958 = vmatmul.mubr.msk.f32.gmra.mrb[54].mxu0 %vm1105_vm4, %v1369_v5 }
 0x5ac   :  { %v7694_v36 = vpop.f32.mrb[30].mxu0 }
 0x5ad   :  { %v7696_v20 = vpop.f32.mrb[24].mxu1  ;;  %v5862_v11 = vpop.f32.mrb[31].mxu0 }
 0x5ae   :  { %v5865_v62 = vpop.f32.mrb[25].mxu1 }
 0x5b0   :  { %v7698_v8 = vpop.f32.mrb[32].mxu0 }
 0x5b1   :  { %v7700_v41 = vpop.f32.mrb[26].mxu1  ;;  %v5875_v26 = vpop.f32.mrb[33].mxu0 }
 0x5b2   :  { %v5868_v12 = vpop.f32.mrb[27].mxu1 }
 0x5b4   :  { %v7702_v42 = vpop.f32.mrb[34].mxu0 }
 0x5b5   :  { %v5878_v39 = vpop.f32.mrb[35].mxu0 }
 0x5b8   :  { %v7704_v16 = vpop.f32.mrb[36].mxu0 }
 0x5b9   :  { %v5881_v31 = vpop.f32.mrb[37].mxu0 }
 0x5f0   :  { %v1641_v22 = vpop.f32.mrb[28].mxu1 }
 0x5f1   :  { %2136 = vrot.lane.b32.xlu0 %v1641_v22, %s6953_s21  ;;  %v5888_v51 = vpop.f32.mrb[29].mxu1 }
 0x5f4   :  { %v1646_v49 = vpop.f32.mrb[30].mxu1 }
 0x5f5   :  { %2138 = vrot.lane.b32.xlu0 %v1646_v49, %s6953_s21  ;;  %v5891_v50 = vpop.f32.mrb[31].mxu1 }
 0x5f8   :  { %v1736_v59 = vpop.f32.mrb[38].mxu0 }
 0x5f9   :  { %v1651_v53 = vpop.f32.mrb[32].mxu1  ;;  %v5901_v3 = vpop.f32.mrb[39].mxu0  ;;  %2142 = vrot.lane.b32.xlu1 %v1736_v59, %s6953_s21 }
 0x5fa   :  { %2140 = vrot.lane.b32.xlu0 %v1651_v53, %s6953_s21  ;;  %v5894_v18 = vpop.f32.mrb[33].mxu1 }
 0x5fc   :  { %v1741_v14 = vpop.f32.mrb[40].mxu0 }
 0x5fd   :  { %v1831_v40 = vpop.f32.mrb[34].mxu1  ;;  %v5904_v61 = vpop.f32.mrb[41].mxu0 }
 0x5fe   :  { %2144 = vrot.lane.b32.xlu0 %v1741_v14, %s6953_s21  ;;  %v5914_v0 = vpop.f32.mrb[35].mxu1 }
 0x601   :  { %v1746_v54 = vpop.f32.mrb[42].mxu0 }
 0x602   :  { %2146 = vrot.lane.b32.xlu1 %v1746_v54, %s6953_s21  ;;  %v5907_v30 = vpop.f32.mrb[43].mxu0  ;;  %2160 = vrot.lane.b32.xlu0 %v1831_v40, %s6954_s26 }
 0x605   :  { %v1836_v37 = vpop.f32.mrb[36].mxu1  ;;  %v1926_v2 = vpop.f32.mrb[44].mxu0 }
 0x606   :  { %v5927_v1 = vpop.f32.mrb[45].mxu0  ;;  %2162 = vrot.lane.b32.xlu1 %v1836_v37, %s6954_s26  ;;  %v5917_v38 = vpop.f32.mrb[37].mxu1 }
 0x609   :  { %v1841_v43 = vpop.f32.mrb[38].mxu1 }
 0x60a   :  { %2166 = vrot.lane.b32.xlu1 %v1926_v2, %s6954_s26  ;;  %2164 = vrot.lane.b32.xlu0 %v1841_v43, %s6954_s26  ;;  %v5920_v19 = vpop.f32.mrb[39].mxu1 }
 0x60d   :  { %v1931_v48 = vpop.f32.mrb[46].mxu0 }
 0x60e   :  { %v5930_v25 = vpop.f32.mrb[47].mxu0 }
 0x615   :  { %v1936_v28 = vpop.f32.mrb[48].mxu0 }
 0x616   :  { %v5933_v29 = vpop.f32.mrb[49].mxu0 }
 0x61f   :  { %v2021_v9 = vpop.f32.mrb[40].mxu1 }
 0x620   :  { %2184 = vrot.lane.b32.xlu0 %v2021_v9, %s6955_s11  ;;  %v5940_v17 = vpop.f32.mrb[41].mxu1 }
 0x623   :  { %v2026_v57 = vpop.f32.mrb[42].mxu1 }
 0x624   :  { %2186 = vrot.lane.b32.xlu1 %v2026_v57, %s6955_s11  ;;  %v5943_v55 = vpop.f32.mrb[43].mxu1 }
 0x627   :  { %v2031_v21 = vpop.f32.mrb[44].mxu1 }
 0x628   :  { %2188 = vrot.lane.b32.xlu0 %v2031_v21, %s6955_s11  ;;  %v5946_v32 = vpop.f32.mrb[45].mxu1 }
 0x62c   :  { %2168 = vrot.lane.b32.xlu0 %v1931_v48, %s6954_s26 }
 0x643   :  { %v2116_v35 = vpop.f32.mrb[50].mxu0 }
 0x644   :  { %v5953_v58 = vpop.f32.mrb[51].mxu0  ;;  %2190 = vrot.lane.b32.xlu1 %v2116_v35, %s6955_s11 }
 0x645   :  { %v6912_v58 = vld [vmem:[%s8729_s0 + $0x18] sm:$0xff] }
 0x647   :  { %v2121_v13 = vpop.f32.mrb[52].mxu0 }
 0x648   :  { %v5956_v15 = vpop.f32.mrb[53].mxu0  ;;  %2170 = vrot.lane.b32.xlu1 %v1936_v28, %s6954_s26  ;;  %2192 = vrot.lane.b32.xlu0 %v2121_v13, %s6955_s11 }
 0x649   :  { %v6913_v15 = vld [vmem:[%s8729_s0 + $0x10] sm:$0xff] }
 0x64b   :  { %v2126_v24 = vpop.f32.mrb[54].mxu0 }
 0x64c   :  { %v5959_v60 = vpop.f32.mrb[55].mxu0  ;;  %2194 = vrot.lane.b32.xlu1 %v2126_v24, %s6955_s11 }
 0x663   :  { %v2137_v34 = vpop.permute.xlu0 %2136 }
 0x664   :  { %v2202_v51 = vsel %vm332_vm2, %v7694_v36, %v2137_v34 }
 0x667   :  { %v2139_v5 = vpop.permute.xlu0 %2138 }
 0x668   :  { %v2203_v3 = vsel %vm332_vm2, %v7696_v20, %v2139_v5 }
 0x66b   :  { %v2143_v62 = vpop.permute.xlu1 %2142 }
 0x66c   :  { %v2141_v11 = vpop.permute.xlu0 %2140  ;;  %v2205_v20 = vsel %vm332_vm2, %v7698_v8, %v2143_v62  ;;  %v6914_v62 = vld [vmem:[%s8729_s0 + $0x28] sm:$0xff] }
 0x66d   :  { %v2204_v36 = vsel %vm332_vm2, %v7700_v41, %v2141_v11 }
 0x670   :  { %v2145_v26 = vpop.permute.xlu0 %2144 }
 0x671   :  { %v2206_v41 = vsel %vm332_vm2, %v7702_v42, %v2145_v26  ;;  %v5384_v42 = vld [vmem:[%s8734_s5] ss:$0 sm:$0xff] }
 0x674   :  { %v2147_v12 = vpop.permute.xlu1 %2146  ;;  %v2161_v39 = vpop.permute.xlu0 %2160 }
 0x675   :  { %v2208_v49 = vsel %vm1105_vm4, %v2202_v51, %v2161_v39  ;;  %v2207_v8 = vsel %vm332_vm2, %v7704_v16, %v2147_v12  ;;  %v6911_v16 = vld [vmem:[%s8729_s0] sm:$0xff] }
 0x676   :  { %v6915_v39 = vld [vmem:[%s8729_s0 + $0x20] sm:$0xff] }
 0x678   :  { %v2163_v31 = vpop.permute.xlu1 %2162 }
 0x679   :  { %v2209_v18 = vsel %vm1105_vm4, %v2203_v3, %v2163_v31 }
 0x67c   :  { %v2165_v22 = vpop.permute.xlu0 %2164  ;;  %v2167_v50 = vpop.permute.xlu1 %2166 }
 0x67d   :  { %v2210_v61 = vsel %vm1105_vm4, %v2204_v36, %v2165_v22  ;;  %v2211_v0 = vsel %vm1105_vm4, %v2205_v20, %v2167_v50 }
 0x692   :  { %v2185_v59 = vpop.permute.xlu0 %2184 }
 0x693   :  { %v2215_v53 = vsel %vm2214_vm5, %v2208_v49, %v2185_v59 }
 0x694   :  { %5968 = vmatprep.mubr.msk.f32.mxu1 %vm67_vm0, %v2215_v53 }
 0x696   :  { %v2187_v14 = vpop.permute.xlu1 %2186 }
 0x697   :  { %v2216_v40 = vsel %vm2214_vm5, %v2209_v18, %v2187_v14 }
 0x698   :  { %5969 = vmatmul.mubr.msk.f32.vlgmr.msra.gmra.mrb[46].mxu1 %vm67_vm0, %v2216_v40 }
 0x69a   :  { %v2189_v4 = vpop.permute.xlu0 %2188 }
 0x69b   :  { %v2217_v63 = vsel %vm2214_vm5, %v2210_v61, %v2189_v4 }
 0x69c   :  { %5971 = vmatprep.mubr.msk.f32.mxu1 %vm67_vm0, %v2217_v63 }
 0x69e   :  { %v2169_v54 = vpop.permute.xlu0 %2168 }
 0x69f   :  { %v2212_v2 = vsel %vm1105_vm4, %v2206_v41, %v2169_v54  ;;  %v54_v41 = vld [vmem:[%s8735_s6 + $0x8] sm:$0xff] }
 0x6b6   :  { %v2191_v30 = vpop.permute.xlu1 %2190 }
 0x6b7   :  { %v2218_v37 = vsel %vm2214_vm5, %v2211_v0, %v2191_v30 }
 0x6b8   :  { %5972 = vmatmul.mubr.msk.f32.gmra.mrb[48].mxu1 %vm67_vm0, %v2218_v37  ;;  %v53_v37 = vld [vmem:[%s8735_s6] sm:$0xff] }
 0x6ba   :  { %v2171_v1 = vpop.permute.xlu1 %2170  ;;  %v2193_v38 = vpop.permute.xlu0 %2192 }
 0x6bb   :  { %v2219_v43 = vsel %vm2214_vm5, %v2212_v2, %v2193_v38  ;;  %v2213_v19 = vsel %vm1105_vm4, %v2207_v8, %v2171_v1  ;;  %v7840_v1 = vpack.c.bf16 %v54_v41, %v53_v37  ;;  %v55_v8 = vld [vmem:[%s8735_s6 + $0x10] sm:$0xff] }
 0x6bc   :  { %5974 = vmatprep.mubr.msk.f32.mxu1 %vm67_vm0, %v2219_v43 }
 0x6bd   :  { %6376 = vmatprep.subr.bf16.mxu0 %v7840_v1 }
 0x6be   :  { %v2195_v48 = vpop.permute.xlu1 %2194  ;;  %6378 = vmatpush3.bf16.msra.mxu0 %v7840_v1 }
 0x6bf   :  { %v2220_v25 = vsel %vm2214_vm5, %v2213_v19, %v2195_v48  ;;  %v56_v19 = vld [vmem:[%s8735_s6 + $0x18] sm:$0xff] }
 0x6c0   :  { %5975 = vmatmul.mubr.msk.f32.gmra.mrb[50].mxu1 %vm67_vm0, %v2220_v25 }
 0x76b   :  { %v5970_v52 = vpop.f32.mrb[46].mxu1 }
 0x76c   :  { %v2335_v28 = vadd.f32 %v6910_v23, %v5970_v52  ;;  %v2305_v29 = vpop.f32.mrb[47].mxu1  ;;  %v7856_v52 = vpack.c.bf16 %v56_v19, %v55_v8 }
 0x76d   :  { %v2334_v9 = vadd.f32 %v6911_v16, %v2305_v29 }
 0x76e   :  { %v7783_v17 = vadd.f32 %v5384_v42, %v2335_v28  ;;  %6380 = vmatprep.subr.bf16.mxu0 %v7856_v52 }
 0x76f   :  { %v7785_v57 = vadd.f32 %v5384_v42, %v2334_v9  ;;  %6382 = vmatpush3.bf16.msra.mxu0 %v7856_v52 }
 0x770   :  { %v2355_v55 = vsel %vm67_vm0, %v7783_v17, 0.0  ;;  %6400 = vmatprep.subr.bf16.mxu0 %v7073_v44 }
 0x771   :  { %2356 = vadd.xlane.f32.xlu1 %v2355_v55  ;;  %v2352_v21 = vsel %vm67_vm0, %v7785_v57, 0.0 }
 0x772   :  { %2353 = vadd.xlane.f32.xlu0 %v2352_v21 }
 0x78b   :  { %v5973_v32 = vpop.f32.mrb[48].mxu1 }
 0x78c   :  { %v2315_v35 = vpop.f32.mrb[49].mxu1  ;;  %v2337_v13 = vadd.f32 %v6912_v58, %v5973_v32 }
 0x78d   :  { %v2336_v24 = vadd.f32 %v6913_v15, %v2315_v35  ;;  %v58_v15 = vld [vmem:[%s8737_s8] sm:$0xff] }
 0x78e   :  { %v7799_v34 = vadd.f32 %v5384_v42, %v2337_v13 }
 0x78f   :  { %v7797_v60 = vadd.f32 %v5384_v42, %v2336_v24  ;;  %v59_v24 = vld [vmem:[%s8737_s8 + $0x8] sm:$0xff] }
 0x790   :  { %v2361_v22 = vsel %vm67_vm0, %v7799_v34, 0.0 }
 0x791   :  { %v2358_v5 = vsel %vm67_vm0, %v7797_v60, 0.0 }
 0x792   :  { %2359 = vadd.xlane.f32.xlu0 %v2358_v5  ;;  %v60_v5 = vld [vmem:[%s8737_s8 + $0x10] sm:$0xff] }
 0x793   :  { %v5976_v11 = vpop.f32.mrb[50].mxu1 }
 0x794   :  { %v2339_v26 = vadd.f32 %v6914_v62, %v5976_v11  ;;  %v2325_v12 = vpop.f32.mrb[51].mxu1  ;;  %v7885_v11 = vpack.c.bf16 %v59_v24, %v58_v15  ;;  %v61_v62 = vld [vmem:[%s8737_s8 + $0x18] sm:$0xff] }
 0x795   :  { %v2338_v31 = vadd.f32 %v6915_v39, %v2325_v12  ;;  %v62_v12 = vld [vmem:[%s8737_s8 + $0x20] sm:$0xff]  ;;  %v63_v39 = vld [vmem:[%s8737_s8 + $0x28] sm:$0xff] }
 0x796   :  { %v7811_v51 = vadd.f32 %v5384_v42, %v2339_v26  ;;  %2362 = vadd.xlane.f32.xlu0 %v2361_v22  ;;  %v7890_v26 = vpack.c.bf16 %v61_v62, %v60_v5  ;;  %6384 = vmatprep.subr.bf16.mxu1 %v7885_v11 }
 0x797   :  { %v7813_v49 = vadd.f32 %v5384_v42, %v2338_v31  ;;  %6386 = vmatpush3.bf16.msra.mxu1 %v7885_v11  ;;  %v7901_v31 = vpack.c.bf16 %v63_v39, %v62_v12 }
 0x798   :  { %v2367_v50 = vsel %vm67_vm0, %v7811_v51, 0.0  ;;  %6388 = vmatprep.subr.bf16.mxu1 %v7890_v26 }
 0x799   :  { %2368 = vadd.xlane.f32.xlu1 %v2367_v50  ;;  %v2364_v59 = vsel %vm67_vm0, %v7813_v49, 0.0 }
 0x79a   :  { %2365 = vadd.xlane.f32.xlu0 %v2364_v59 }
 0x79b   :  { %6390 = vmatpush3.bf16.msra.mxu1 %v7890_v26 }
 0x79c   :  { %6392 = vmatprep.subr.bf16.mxu1 %v7901_v31 }
 0x79f   :  { %6394 = vmatpush3.bf16.msra.mxu1 %v7901_v31 }
 0x7fe   :  { %v2357_v53 = vpop.xlane.xlu1 %2356 }
 0x7ff   :  { %v2371_v3 = vmul.f32 0.03125, %v2357_v53  ;;  %v2354_v18 = vpop.xlane.xlu0 %2353 }
 0x800   :  { %v2370_v14 = vmul.f32 0.03125, %v2354_v18 }
 0x801   :  { %v7820_v40 = vsub.f32 %v7783_v17, %v2371_v3 }
 0x802   :  { %v7823_v36 = vsub.f32 %v7785_v57, %v2370_v14  ;;  %v2432_v14 = vsub.s32 2, %v7087_v56 }
 0x803   :  { %v2383_v61 = vmul.f32 %v7820_v40, %v7820_v40 }
 0x804   :  { %v2382_v4 = vmul.f32 %v7823_v36, %v7823_v36 }
 0x805   :  { %v2391_v63 = vsel %vm67_vm0, %v2383_v61, 0.0  ;;  %v2442_v61 = vsub.s32 3, %v7087_v56 }
 0x806   :  { %2392 = vadd.xlane.f32.xlu1 %v2391_v63  ;;  %v2388_v20 = vsel %vm67_vm0, %v2382_v4, 0.0  ;;  %v6916_v4 = vld [vmem:[%s8730_s1] sm:$0xf] }
 0x807   :  { %2389 = vadd.xlane.f32.xlu0 %v2388_v20  ;;  %v7911_v63 = vrot.slane %v6916_v4, %v2432_v14  ;;  %v7915_v41 = vrot.slane %v6916_v4, %v2442_v61 }
 0x81f   :  { %v2360_v0 = vpop.xlane.xlu0 %2359 }
 0x820   :  { %v2372_v54 = vmul.f32 0.03125, %v2360_v0 }
 0x822   :  { %v7832_v30 = vsub.f32 %v7797_v60, %v2372_v54 }
 0x823   :  { %v2363_v2 = vpop.xlane.xlu0 %2362 }
 0x824   :  { %v2373_v38 = vmul.f32 0.03125, %v2363_v2  ;;  %v2384_v43 = vmul.f32 %v7832_v30, %v7832_v30 }
 0x826   :  { %v7852_v48 = vsub.f32 %v7799_v34, %v2373_v38  ;;  %v2369_v25 = vpop.xlane.xlu1 %2368  ;;  %v2394_v42 = vsel %vm67_vm0, %v2384_v43, 0.0 }
 0x827   :  { %v2375_v23 = vmul.f32 0.03125, %v2369_v25  ;;  %2395 = vadd.xlane.f32.xlu0 %v2394_v42  ;;  %v2366_v28 = vpop.xlane.xlu0 %2365 }
 0x828   :  { %v2374_v29 = vmul.f32 0.03125, %v2366_v28  ;;  %v2385_v16 = vmul.f32 %v7852_v48, %v7852_v48 }
 0x829   :  { %v7862_v9 = vsub.f32 %v7811_v51, %v2375_v23 }
 0x82a   :  { %v7865_v55 = vsub.f32 %v7813_v49, %v2374_v29  ;;  %v2397_v21 = vsel %vm67_vm0, %v2385_v16, 0.0 }
 0x82b   :  { %2398 = vadd.xlane.f32.xlu1 %v2397_v21  ;;  %v2387_v32 = vmul.f32 %v7862_v9, %v7862_v9 }
 0x82c   :  { %v2386_v35 = vmul.f32 %v7865_v55, %v7865_v55 }
 0x82d   :  { %v2403_v58 = vsel %vm67_vm0, %v2387_v32, 0.0 }
 0x82e   :  { %v2400_v13 = vsel %vm67_vm0, %v2386_v35, 0.0 }
 0x82f   :  { %2404 = vadd.xlane.f32.xlu1 %v2403_v58  ;;  %2401 = vadd.xlane.f32.xlu0 %v2400_v13 }
 0x893   :  { %v2393_v22 = vpop.xlane.xlu1 %2392 }
 0x894   :  { %v2407_v50 = vmul.f32 0.03125, %v2393_v22  ;;  %v2390_v59 = vpop.xlane.xlu0 %2389 }
 0x895   :  { %v2406_v53 = vmul.f32 0.03125, %v2390_v59 }
 0x896   :  { %v2413_v3 = vadd.f32 1e-05, %v2407_v50 }
 0x897   :  { %v2412_v18 = vadd.f32 1e-05, %v2406_v53 }
 0x898   :  { %6778 = vrsqrt.f32 %v2413_v3  ;;  %v5385_v3 = vld [vmem:[%s8736_s7] ss:$0 sm:$0xff] }
 0x899   :  { %6780 = vrsqrt.f32 %v2412_v18 }
 0x8a2   :  { %v6779_v20 = vpop.eup %6778 }
 0x8a3   :  { %v6781_v0 = vpop.eup %6780  ;;  %v2425_v54 = vmul.f32 %v6779_v20, %v7820_v40 }
 0x8a4   :  { %v2424_v37 = vmul.f32 %v6781_v0, %v7823_v36 }
 0x8a5   :  { %v2435_v2 = vmul.f32 %v7911_v63, %v2425_v54 }
 0x8a6   :  { %v2434_v38 = vmul.f32 %v7911_v63, %v2424_v37 }
 0x8a7   :  { %v2445_v43 = vadd.f32 %v7915_v41, %v2435_v2 }
 0x8a8   :  { %v2444_v56 = vadd.f32 %v7915_v41, %v2434_v38 }
 0x8aa   :  { %5985 = vmatprep.mubr.msk.f32.mxu0 %vm67_vm0, %v2444_v56 }
 0x8ab   :  { %5986 = vmatmul.mubr.msk.f32.vlgmr.msra.gmra.mrb[56].mxu0 %vm67_vm0, %v2445_v43 }
 0x8ac   :  { %6402 = vmatpush3.bf16.msra.mxu0 %v7073_v44 }
 0x8ad   :  { %6404 = vmatprep.subr.bf16.mxu0 %v7081_v47 }
 0x8b0   :  { %6406 = vmatpush3.bf16.msra.mxu0 %v7081_v47 }
 0x8b1   :  { %6411 = vmatprep.subr.bf16.mxu0 %v6947_v45 }
 0x8b4   :  { %v2396_v40 = vpop.xlane.xlu0 %2395 }
 0x8b5   :  { %v2408_v36 = vmul.f32 0.03125, %v2396_v40 }
 0x8b7   :  { %v2414_v8 = vadd.f32 1e-05, %v2408_v36 }
 0x8b8   :  { %v2399_v19 = vpop.xlane.xlu1 %2398 }
 0x8b9   :  { %6782 = vrsqrt.f32 %v2414_v8  ;;  %v2409_v25 = vmul.f32 0.03125, %v2399_v19 }
 0x8bb   :  { %v2415_v42 = vadd.f32 1e-05, %v2409_v25 }
 0x8bc   :  { %v2405_v23 = vpop.xlane.xlu1 %2404  ;;  %v2402_v28 = vpop.xlane.xlu0 %2401 }
 0x8bd   :  { %6784 = vrsqrt.f32 %v2415_v42  ;;  %v2411_v29 = vmul.f32 0.03125, %v2405_v23  ;;  %v2410_v16 = vmul.f32 0.03125, %v2402_v28  ;;  %v5398_v23 = vld [vmem:[%s8738_s9] ss:$0 sm:$0xff] }
 0x8bf   :  { %v2417_v21 = vadd.f32 1e-05, %v2411_v29  ;;  %v2416_v44 = vadd.f32 1e-05, %v2410_v16 }
 0x8c1   :  { %6786 = vrsqrt.f32 %v2417_v21 }
 0x8c2   :  { %6788 = vrsqrt.f32 %v2416_v44 }
 0x8c3   :  { %v6783_v32 = vpop.eup %6782 }
 0x8c4   :  { %v2426_v47 = vmul.f32 %v6783_v32, %v7832_v30 }
 0x8c6   :  { %v2436_v35 = vmul.f32 %v7911_v63, %v2426_v47 }
 0x8c7   :  { %v6785_v58 = vpop.eup %6784 }
 0x8c8   :  { %v2446_v13 = vadd.f32 %v7915_v41, %v2436_v35  ;;  %v2427_v15 = vmul.f32 %v6785_v58, %v7852_v48 }
 0x8ca   :  { %5988 = vmatprep.mubr.msk.f32.mxu0 %vm67_vm0, %v2446_v13  ;;  %v2437_v24 = vmul.f32 %v7911_v63, %v2427_v15 }
 0x8cb   :  { %v6787_v5 = vpop.eup %6786 }
 0x8cc   :  { %v6789_v62 = vpop.eup %6788  ;;  %v2447_v12 = vadd.f32 %v7915_v41, %v2437_v24  ;;  %v2429_v39 = vmul.f32 %v6787_v5, %v7862_v9  ;;  %v64_v9 = vld [vmem:[%s8737_s8 + $0x30] sm:$0xff] }
 0x8cd   :  { %v2428_v22 = vmul.f32 %v6789_v62, %v7865_v55  ;;  %v65_v55 = vld [vmem:[%s8737_s8 + $0x38] sm:$0xff] }
 0x8ce   :  { %5989 = vmatmul.mubr.msk.f32.gmra.mrb[58].mxu0 %vm67_vm0, %v2447_v12  ;;  %v2439_v30 = vmul.f32 %v7911_v63, %v2429_v39  ;;  %v7949_v53 = vpack.c.bf16 %v65_v55, %v64_v9 }
 0x8cf   :  { %v2438_v50 = vmul.f32 %v7911_v63, %v2428_v22 }
 0x8d0   :  { %v2449_v48 = vadd.f32 %v7915_v41, %v2439_v30  ;;  %6396 = vmatprep.subr.bf16.mxu1 %v7949_v53 }
 0x8d1   :  { %v2448_v59 = vadd.f32 %v7915_v41, %v2438_v50  ;;  %6398 = vmatpush3.bf16.msra.mxu1 %v7949_v53 }
 0x8d2   :  { %6407 = vmatprep.subr.bf16.mxu1 %v6947_v45 }
 0x8d3   :  { %5991 = vmatprep.mubr.msk.f32.mxu0 %vm67_vm0, %v2448_v59 }
 0x8d4   :  { %5992 = vmatmul.mubr.msk.f32.gmra.mrb[60].mxu0 %vm67_vm0, %v2449_v48 }
 0x97e   :  { %v5987_v18 = vpop.f32.mrb[56].mxu0 }
 0x97f   :  { %v2546_v14 = vadd.f32 %v5987_v18, %v5385_v3  ;;  %v2540_v61 = vpop.f32.mrb[57].mxu0 }
 0x980   :  { %v2541_v4 = vadd.f32 %v5385_v3, %v2540_v61 }
 0x981   :  { %v2570_v0 = vmax.f32 %v2546_v14, 0.0 }
 0x982   :  { %v2569_v20 = vmax.f32 %v2541_v4, 0.0 }
 0x984   :  { %6010 = vmatprep.mubr.msk.f32.mxu1 %vm2575_vm6, %v2569_v20 }
 0x985   :  { %6011 = vmatmul.mubr.msk.f32.vlgmr.msra.gmra.mrb[52].mxu1 %vm2575_vm6, %v2570_v0 }
 0x9a1   :  { %v5990_v54 = vpop.f32.mrb[58].mxu0 }
 0x9a2   :  { %v2556_v37 = vadd.f32 %v5990_v54, %v5385_v3  ;;  %v2550_v2 = vpop.f32.mrb[59].mxu0 }
 0x9a3   :  { %v2551_v38 = vadd.f32 %v5385_v3, %v2550_v2 }
 0x9a4   :  { %v2572_v43 = vmax.f32 %v2556_v37, 0.0 }
 0x9a5   :  { %v2571_v56 = vmax.f32 %v2551_v38, 0.0 }
 0x9a7   :  { %v5993_v40 = vpop.f32.mrb[60].mxu0  ;;  %6013 = vmatprep.mubr.msk.f32.mxu1 %vm2575_vm6, %v2571_v56 }
 0x9a8   :  { %v2566_v36 = vadd.f32 %v5993_v40, %v5385_v3  ;;  %v2560_v8 = vpop.f32.mrb[61].mxu0  ;;  %6014 = vmatmul.mubr.msk.f32.gmra.mrb[54].mxu1 %vm2575_vm6, %v2572_v43 }
 0x9a9   :  { %v2561_v19 = vadd.f32 %v5385_v3, %v2560_v8 }
 0x9aa   :  { %v2574_v42 = vmax.f32 %v2566_v36, 0.0 }
 0x9ab   :  { %v2573_v25 = vmax.f32 %v2561_v19, 0.0 }
 0x9ad   :  { %6016 = vmatprep.mubr.msk.f32.mxu1 %vm2575_vm6, %v2573_v25 }
 0x9ae   :  { %6017 = vmatmul.mubr.msk.f32.gmra.mrb[56].mxu1 %vm2575_vm6, %v2574_v42 }
 0x9af   :  { %6040 = vmatprep.mubr.msk.f32.mxu1 %vm6949_vm1, %v6950_v46 }
 0xa58   :  { %v6012_v28 = vpop.f32.mrb[52].mxu1 }
 0xa59   :  { %v2690_v29 = vadd.f32 %v6012_v28, %v7783_v17  ;;  %v2660_v16 = vpop.f32.mrb[53].mxu1 }
 0xa5a   :  { %v2689_v21 = vadd.f32 %v2660_v16, %v7785_v57 }
 0xa5b   :  { %v7970_v44 = vadd.f32 %v5398_v23, %v2690_v29 }
 0xa5c   :  { %v7972_v32 = vadd.f32 %v5398_v23, %v2689_v21 }
 0xa5d   :  { %v2710_v47 = vsel %vm67_vm0, %v7970_v44, 0.0 }
 0xa5e   :  { %2711 = vadd.xlane.f32.xlu1 %v2710_v47  ;;  %v2707_v35 = vsel %vm67_vm0, %v7972_v32, 0.0 }
 0xa5f   :  { %2708 = vadd.xlane.f32.xlu0 %v2707_v35 }
 0xa7b   :  { %v6015_v58 = vpop.f32.mrb[54].mxu1 }
 0xa7c   :  { %v2692_v13 = vadd.f32 %v6015_v58, %v7799_v34  ;;  %v2670_v15 = vpop.f32.mrb[55].mxu1 }
 0xa7d   :  { %v2691_v17 = vadd.f32 %v2670_v15, %v7797_v60 }
 0xa7e   :  { %v7980_v24 = vadd.f32 %v5398_v23, %v2692_v13 }
 0xa7f   :  { %v7982_v57 = vadd.f32 %v5398_v23, %v2691_v17 }
 0xa80   :  { %v2716_v5 = vsel %vm67_vm0, %v7980_v24, 0.0 }
 0xa81   :  { %v6018_v62 = vpop.f32.mrb[56].mxu1  ;;  %2717 = vadd.xlane.f32.xlu1 %v2716_v5  ;;  %v2713_v12 = vsel %vm67_vm0, %v7982_v57, 0.0 }
 0xa82   :  { %v2694_v39 = vadd.f32 %v6018_v62, %v7811_v51  ;;  %v2680_v22 = vpop.f32.mrb[57].mxu1  ;;  %2714 = vadd.xlane.f32.xlu0 %v2713_v12 }
 0xa83   :  { %v2693_v34 = vadd.f32 %v2680_v22, %v7813_v49 }
 0xa84   :  { %v7990_v30 = vadd.f32 %v5398_v23, %v2694_v39 }
 0xa85   :  { %v7992_v60 = vadd.f32 %v5398_v23, %v2693_v34 }
 0xa86   :  { %v2722_v50 = vsel %vm67_vm0, %v7990_v30, 0.0 }
 0xa87   :  { %2723 = vadd.xlane.f32.xlu1 %v2722_v50  ;;  %v2719_v48 = vsel %vm67_vm0, %v7992_v60, 0.0 }
 0xa88   :  { %2720 = vadd.xlane.f32.xlu0 %v2719_v48 }
 0xaeb   :  { %v2712_v59 = vpop.xlane.xlu1 %2711 }
 0xaec   :  { %v2726_v9 = vmul.f32 0.03125, %v2712_v59  ;;  %v2709_v55 = vpop.xlane.xlu0 %2708 }
 0xaed   :  { %v2725_v51 = vmul.f32 0.03125, %v2709_v55 }
 0xaee   :  { %v2732_v3 = vsub.f32 %v7970_v44, %v2726_v9 }
 0xaef   :  { %v2731_v49 = vsub.f32 %v7972_v32, %v2725_v51 }
 0xaf0   :  { %v2738_v18 = vmul.f32 %v2732_v3, %v2732_v3 }
 0xaf1   :  { %v2737_v14 = vmul.f32 %v2731_v49, %v2731_v49 }
 0xaf2   :  { %v2746_v61 = vsel %vm67_vm0, %v2738_v18, 0.0 }
 0xaf3   :  { %2747 = vadd.xlane.f32.xlu1 %v2746_v61  ;;  %v2743_v4 = vsel %vm67_vm0, %v2737_v14, 0.0 }
 0xaf4   :  { %2744 = vadd.xlane.f32.xlu0 %v2743_v4 }
 0xb0e   :  { %v2718_v20 = vpop.xlane.xlu1 %2717 }
 0xb0f   :  { %v2728_v0 = vmul.f32 0.03125, %v2718_v20  ;;  %v2715_v54 = vpop.xlane.xlu0 %2714 }
 0xb10   :  { %v2727_v37 = vmul.f32 0.03125, %v2715_v54 }
 0xb11   :  { %v2734_v2 = vsub.f32 %v7980_v24, %v2728_v0 }
 0xb12   :  { %v2733_v38 = vsub.f32 %v7982_v57, %v2727_v37 }
 0xb13   :  { %v2740_v56 = vmul.f32 %v2734_v2, %v2734_v2 }
 0xb14   :  { %v2724_v43 = vpop.xlane.xlu1 %2723  ;;  %v2739_v40 = vmul.f32 %v2733_v38, %v2733_v38 }
 0xb15   :  { %v2730_v36 = vmul.f32 0.03125, %v2724_v43  ;;  %v2721_v8 = vpop.xlane.xlu0 %2720  ;;  %v2752_v19 = vsel %vm67_vm0, %v2740_v56, 0.0 }
 0xb16   :  { %v2729_v25 = vmul.f32 0.03125, %v2721_v8  ;;  %2753 = vadd.xlane.f32.xlu1 %v2752_v19  ;;  %v2749_v42 = vsel %vm67_vm0, %v2739_v40, 0.0 }
 0xb17   :  { %v2736_v23 = vsub.f32 %v7990_v30, %v2730_v36  ;;  %2750 = vadd.xlane.f32.xlu0 %v2749_v42 }
 0xb18   :  { %v2735_v28 = vsub.f32 %v7992_v60, %v2729_v25 }
 0xb19   :  { %v2742_v29 = vmul.f32 %v2736_v23, %v2736_v23 }
 0xb1a   :  { %v2741_v16 = vmul.f32 %v2735_v28, %v2735_v28 }
 0xb1b   :  { %v2758_v21 = vsel %vm67_vm0, %v2742_v29, 0.0 }
 0xb1c   :  { %2759 = vadd.xlane.f32.xlu1 %v2758_v21  ;;  %v2755_v47 = vsel %vm67_vm0, %v2741_v16, 0.0 }
 0xb1d   :  { %2756 = vadd.xlane.f32.xlu0 %v2755_v47 }
 0xb80   :  { %v2748_v35 = vpop.xlane.xlu1 %2747 }
 0xb81   :  { %v2762_v58 = vmul.f32 0.03125, %v2748_v35  ;;  %v2745_v13 = vpop.xlane.xlu0 %2744 }
 0xb82   :  { %v2761_v15 = vmul.f32 0.03125, %v2745_v13 }
 0xb83   :  { %v2768_v17 = vadd.f32 1e-05, %v2762_v58 }
 0xb84   :  { %v2767_v5 = vadd.f32 1e-05, %v2761_v15 }
 0xb85   :  { %6790 = vrsqrt.f32 %v2768_v17 }
 0xb86   :  { %6792 = vrsqrt.f32 %v2767_v5 }
 0xb8f   :  { %v6791_v62 = vpop.eup %6790 }
 0xb90   :  { %v6793_v12 = vpop.eup %6792  ;;  %v2780_v39 = vmul.f32 %v6791_v62, %v2732_v3 }
 0xb91   :  { %v2779_v22 = vmul.f32 %v6793_v12, %v2731_v49 }
 0xb92   :  { %v2786_v34 = vmul.f32 %v2780_v39, %v7094_v6 }
 0xb93   :  { %v2785_v50 = vmul.f32 %v2779_v22, %v7094_v6 }
 0xb94   :  { %v2792_v59 = vadd.f32 %v2786_v34, %v7097_v10 }
 0xb95   :  { %v2791_v48 = vadd.f32 %v2785_v50, %v7097_v10 }
 0xb97   :  { %6027 = vmatprep.mubr.msk.f32.mxu0 %vm67_vm0, %v2791_v48 }
 0xb98   :  { %6028 = vmatmul.mubr.msk.f32.vlgmr.msra.gmra.mrb[62].mxu0 %vm67_vm0, %v2792_v59 }
 0xba3   :  { %v2754_v9 = vpop.xlane.xlu1 %2753 }
 0xba4   :  { %v2764_v55 = vmul.f32 0.03125, %v2754_v9  ;;  %v2751_v51 = vpop.xlane.xlu0 %2750 }
 0xba5   :  { %v2763_v18 = vmul.f32 0.03125, %v2751_v51 }
 0xba6   :  { %v2770_v14 = vadd.f32 1e-05, %v2764_v55 }
 0xba7   :  { %v2769_v61 = vadd.f32 1e-05, %v2763_v18 }
 0xba8   :  { %6794 = vrsqrt.f32 %v2770_v14 }
 0xba9   :  { %6796 = vrsqrt.f32 %v2769_v61  ;;  %v2760_v3 = vpop.xlane.xlu1 %2759 }
 0xbaa   :  { %v2766_v49 = vmul.f32 0.03125, %v2760_v3  ;;  %v2757_v4 = vpop.xlane.xlu0 %2756 }
 0xbab   :  { %v2765_v20 = vmul.f32 0.03125, %v2757_v4 }
 0xbac   :  { %v2772_v0 = vadd.f32 1e-05, %v2766_v49 }
 0xbad   :  { %v2771_v54 = vadd.f32 1e-05, %v2765_v20 }
 0xbae   :  { %6798 = vrsqrt.f32 %v2772_v0 }
 0xbaf   :  { %6800 = vrsqrt.f32 %v2771_v54 }
 0xbb2   :  { %v6795_v37 = vpop.eup %6794 }
 0xbb3   :  { %v6797_v56 = vpop.eup %6796  ;;  %v2782_v43 = vmul.f32 %v6795_v37, %v2734_v2 }
 0xbb4   :  { %v2781_v40 = vmul.f32 %v6797_v56, %v2733_v38 }
 0xbb5   :  { %v2788_v36 = vmul.f32 %v2782_v43, %v7094_v6 }
 0xbb6   :  { %v2787_v8 = vmul.f32 %v2781_v40, %v7094_v6 }
 0xbb7   :  { %v2794_v29 = vadd.f32 %v2788_v36, %v7097_v10 }
 0xbb8   :  { %v6799_v19 = vpop.eup %6798  ;;  %v2793_v25 = vadd.f32 %v2787_v8, %v7097_v10 }
 0xbb9   :  { %v6801_v42 = vpop.eup %6800  ;;  %v2784_v16 = vmul.f32 %v6799_v19, %v2736_v23 }
 0xbba   :  { %6030 = vmatprep.mubr.msk.f32.mxu0 %vm67_vm0, %v2793_v25  ;;  %v2783_v21 = vmul.f32 %v6801_v42, %v2735_v28  ;;  %v6917_v28 = vld [vmem:[%s8732_s3] ss:$0 sm:$0xff] }
 0xbbb   :  { %6031 = vmatmul.mubr.msk.f32.gmra.mrb[64].mxu0 %vm67_vm0, %v2794_v29  ;;  %v2790_v47 = vmul.f32 %v2784_v16, %v7094_v6 }
 0xbbc   :  { %v2789_v2 = vmul.f32 %v2783_v21, %v7094_v6 }
 0xbbd   :  { %v2796_v35 = vadd.f32 %v2790_v47, %v7097_v10 }
 0xbbe   :  { %v2795_v38 = vadd.f32 %v2789_v2, %v7097_v10 }
 0xbc0   :  { %6033 = vmatprep.mubr.msk.f32.mxu0 %vm67_vm0, %v2795_v38 }
 0xbc1   :  { %6034 = vmatmul.mubr.msk.f32.gmra.mrb[66].mxu0 %vm67_vm0, %v2796_v35 }
 0xbc2   :  { %6053 = vmatprep.mubr.msk.f32.mxu0 %vm6949_vm1, %v6950_v46 }
 0xc6b   :  { %v6029_v23 = vpop.f32.mrb[62].mxu0 }
 0xc6c   :  { %v8033_v58 = vadd.f32 %v6917_v28, %v6029_v23  ;;  %v2881_v13 = vpop.f32.mrb[63].mxu0 }
 0xc6d   :  { %v2882_v9 = vadd.f32 %v6917_v28, %v2881_v13 }
 0xc6e   :  { %2918 = vrot.lane.b32.xlu0 %v8033_v58, %s6945_s16 }
 0xc72   :  { %2930 = vrot.lane.b32.xlu0 %v8033_v58, %s6946_s17 }
 0xc8e   :  { %v6032_v6 = vpop.f32.mrb[64].mxu0 }
 0xc8f   :  { %v2891_v10 = vpop.f32.mrb[65].mxu0  ;;  %v2897_v18 = vadd.f32 %v6917_v28, %v6032_v6 }
 0xc90   :  { %v8039_v15 = vadd.f32 %v6917_v28, %v2891_v10 }
 0xc92   :  { %2920 = vrot.lane.b32.xlu1 %v8039_v15, %s6945_s16  ;;  %v6590_v39 = vpack.i.bf16 %v8039_v15, %v8033_v58 }
 0xc94   :  { %v6035_v17 = vpop.f32.mrb[66].mxu0 }
 0xc95   :  { %v2901_v5 = vpop.f32.mrb[67].mxu0  ;;  %v8049_v12 = vadd.f32 %v6917_v28, %v6035_v17 }
 0xc96   :  { %v8043_v62 = vadd.f32 %v6917_v28, %v2901_v5 }
 0xc98   :  { %2936 = vrot.lane.b32.xlu0 %v8043_v62, %s6946_s17  ;;  %2924 = vrot.lane.b32.xlu1 %v8043_v62, %s6945_s16  ;;  %v6595_v22 = vpack.i.bf16 %v8049_v12, %v8043_v62 }
 0xc9c   :  { %2942 = vrot.lane.b32.xlu0 %v8033_v58, %s6948_s18  ;;  %2926 = vrot.lane.b32.xlu1 %v8049_v12, %s6945_s16 }
 0xca0   :  { %2948 = vrot.lane.b32.xlu0 %v8043_v62, %s6948_s18  ;;  %2932 = vrot.lane.b32.xlu1 %v8039_v15, %s6946_s17 }
 0xca4   :  { %6591 = vrot.lane.b32.xlu0 %v6590_v39, %s6951_s19  ;;  %2938 = vrot.lane.b32.xlu1 %v8049_v12, %s6946_s17 }
 0xca8   :  { %2944 = vrot.lane.b32.xlu1 %v8039_v15, %s6948_s18 }
 0xcac   :  { %2950 = vrot.lane.b32.xlu1 %v8049_v12, %s6948_s18 }
 0xcb0   :  { %6596 = vrot.lane.b32.xlu1 %v6595_v22, %s6951_s19 }
 0xce0   :  { %v8071_v34 = vpop.permute.xlu0 %2918 }
 0xce4   :  { %v8077_v59 = vpop.permute.xlu0 %2930 }
 0xd04   :  { %v8073_v50 = vpop.permute.xlu1 %2920 }
 0xd05   :  { %v6600_v48 = vpack.i.bf16 %v8073_v50, %v8071_v34 }
 0xd07   :  { %6601 = vrot.lane.b32.xlu0 %v6600_v48, %s6951_s19 }
 0xd0a   :  { %v8080_v55 = vpop.permute.xlu1 %2924  ;;  %v8082_v51 = vpop.permute.xlu0 %2936 }
 0xd0b   :  { %2916 = vrot.lane.b32.xlu0 %v2882_v9, %s6945_s16 }
 0xd0e   :  { %v8085_v14 = vpop.permute.xlu1 %2926  ;;  %v8087_v61 = vpop.permute.xlu0 %2942 }
 0xd0f   :  { %v8091_v3 = vpack.i.bf16 %v8085_v14, %v8080_v55  ;;  %2922 = vrot.lane.b32.xlu0 %v2897_v18, %s6945_s16 }
 0xd11   :  { %6606 = vrot.lane.b32.xlu1 %v8091_v3, %s6951_s19 }
 0xd12   :  { %v8096_v49 = vpop.permute.xlu1 %2932  ;;  %v8098_v4 = vpop.permute.xlu0 %2948 }
 0xd13   :  { %v8102_v20 = vpack.i.bf16 %v8096_v49, %v8077_v59  ;;  %2928 = vrot.lane.b32.xlu0 %v2882_v9, %s6946_s17 }
 0xd15   :  { %6611 = vrot.lane.b32.xlu1 %v8102_v20, %s6951_s19 }
 0xd16   :  { %v8107_v0 = vpop.permute.xlu1 %2938  ;;  %v6592_v54 = vpop.permute.xlu0 %6591 }
 0xd17   :  { %v8111_v37 = vpack.i.bf16 %v8107_v0, %v8082_v51  ;;  %v6594_v56 = vunpack.i.h.bf16 %v6592_v54  ;;  %v6593_v43 = vunpack.i.l.bf16 %v6592_v54  ;;  %2934 = vrot.lane.b32.xlu0 %v2897_v18, %s6946_s17 }
 0xd19   :  { %v6408_v40 = vpack.c.bf16 %v6594_v56, %v6593_v43  ;;  %6616 = vrot.lane.b32.xlu1 %v8111_v37, %s6951_s19 }
 0xd1a   :  { %v8116_v36 = vpop.permute.xlu1 %2944 }
 0xd1b   :  { %v8120_v8 = vpack.i.bf16 %v8116_v36, %v8087_v61  ;;  %6410 = vmatpush3.bf16.xpose.msk.msra.mxu1 %vm7210_vm3, %v6408_v40  ;;  %2940 = vrot.lane.b32.xlu0 %v2882_v9, %s6948_s18 }
 0xd1c   :  { %6415 = vmatprep.subr.bf16.mxu1 %v6947_v45 }
 0xd1d   :  { %6621 = vrot.lane.b32.xlu1 %v8120_v8, %s6951_s19 }
 0xd1e   :  { %v8128_v19 = vpop.permute.xlu1 %2950 }
 0xd1f   :  { %v8132_v25 = vpack.i.bf16 %v8128_v19, %v8098_v4  ;;  %6636 = vrot.lane.b32.xlu0 %v6595_v22, %s6952_s20 }
 0xd21   :  { %6626 = vrot.lane.b32.xlu1 %v8132_v25, %s6951_s19  ;;  %s6956_s19 = smov [#allocation2]  }
 0xd22   :  { %v6597_v42 = vpop.permute.xlu1 %6596  ;;  %6041 = vmatmul.mubr.msk.f32.vlgmr.msra.gmra.mrb[58].mxu1 %vm332_vm2, %v2882_v9 }
 0xd23   :  { %v6599_v29 = vunpack.i.h.bf16 %v6597_v42  ;;  %v6598_v16 = vunpack.i.l.bf16 %v6597_v42  ;;  %6043 = vmatprep.mubr.msk.f32.mxu1 %vm6949_vm1, %v6950_v46 }
 0xd25   :  { %v6412_v21 = vpack.c.bf16 %v6599_v29, %v6598_v16  ;;  %2946 = vrot.lane.b32.xlu1 %v2897_v18, %s6948_s18 }
 0xd26   :  { %6044 = vmatmul.mubr.msk.f32.gmra.mrb[60].mxu1 %vm332_vm2, %v8033_v58 }
 0xd27   :  { %6414 = vmatpush3.bf16.xpose.msk.msra.mxu0 %vm7210_vm3, %v6412_v21  ;;  %6046 = vmatprep.mubr.msk.f32.mxu1 %vm6949_vm1, %v6950_v46 }
 0xd28   :  { %6419 = vmatprep.subr.bf16.mxu0 %v6947_v45 }
 0xd29   :  { %6631 = vrot.lane.b32.xlu1 %v6590_v39, %s6952_s20 }
 0xd2a   :  { %6047 = vmatmul.mubr.msk.f32.gmra.mrb[62].mxu1 %vm332_vm2, %v8039_v15 }
 0xd2b   :  { %6066 = vmatprep.mubr.msk.f32.mxu1 %vm6949_vm1, %v6950_v46 }
 0xd2d   :  { %6641 = vrot.lane.b32.xlu1 %v6600_v48, %s6952_s20 }
 0xd2e   :  { %6054 = vmatmul.mubr.msk.f32.vlgmr.msra.gmra.mrb[68].mxu0 %vm332_vm2, %v2897_v18 }
 0xd2f   :  { %6056 = vmatprep.mubr.msk.f32.mxu0 %vm6949_vm1, %v6950_v46 }
 0xd32   :  { %6057 = vmatmul.mubr.msk.f32.gmra.mrb[70].mxu0 %vm332_vm2, %v8043_v62 }
 0xd33   :  { %6059 = vmatprep.mubr.msk.f32.mxu0 %vm6949_vm1, %v6950_v46 }
 0xd36   :  { %6060 = vmatmul.mubr.msk.f32.gmra.mrb[72].mxu0 %vm332_vm2, %v8049_v12 }
 0xd37   :  { %6079 = vmatprep.mubr.msk.f32.mxu0 %vm6949_vm1, %v6950_v46 }
 0xd79   :  { %v6602_v47 = vpop.permute.xlu0 %6601 }
 0xd7a   :  { %v6604_v2 = vunpack.i.h.bf16 %v6602_v47  ;;  %v6603_v38 = vunpack.i.l.bf16 %v6602_v47 }
 0xd7c   :  { %v6416_v35 = vpack.c.bf16 %v6604_v2, %v6603_v38 }
 0xd7d   :  { %v2917_v23 = vpop.permute.xlu0 %2916 }
 0xd7e   :  { %6418 = vmatpush3.bf16.xpose.msk.msra.mxu1 %vm7210_vm3, %v6416_v35 }
 0xd7f   :  { %6423 = vmatprep.subr.bf16.mxu1 %v6947_v45 }
 0xd81   :  { %v2923_v10 = vpop.permute.xlu0 %2922 }
 0xd83   :  { %v6607_v28 = vpop.permute.xlu1 %6606 }
 0xd84   :  { %v6609_v58 = vunpack.i.h.bf16 %v6607_v28  ;;  %v6608_v13 = vunpack.i.l.bf16 %v6607_v28 }
 0xd85   :  { %6067 = vmatmul.mubr.msk.f32.vlgmr.msra.gmra.mrb[64].mxu1 %vm332_vm2, %v2917_v23  ;;  %v2929_v48 = vpop.permute.xlu0 %2928 }
 0xd86   :  { %v6420_v6 = vpack.c.bf16 %v6609_v58, %v6608_v13  ;;  %6069 = vmatprep.mubr.msk.f32.mxu1 %vm6949_vm1, %v6950_v46 }
 0xd87   :  { %v6612_v15 = vpop.permute.xlu1 %6611 }
 0xd88   :  { %v6614_v17 = vunpack.i.h.bf16 %v6612_v15  ;;  %v6613_v5 = vunpack.i.l.bf16 %v6612_v15  ;;  %6422 = vmatpush3.bf16.xpose.msk.msra.mxu0 %vm7210_vm3, %v6420_v6 }
 0xd89   :  { %6070 = vmatmul.mubr.msk.f32.gmra.mrb[66].mxu1 %vm332_vm2, %v8071_v34  ;;  %6427 = vmatprep.subr.bf16.mxu0 %v6947_v45  ;;  %v2935_v56 = vpop.permute.xlu0 %2934 }
 0xd8a   :  { %v6424_v62 = vpack.c.bf16 %v6614_v17, %v6613_v5  ;;  %6072 = vmatprep.mubr.msk.f32.mxu1 %vm6949_vm1, %v6950_v46 }
 0xd8b   :  { %v6617_v12 = vpop.permute.xlu1 %6616 }
 0xd8c   :  { %v6619_v39 = vunpack.i.h.bf16 %v6617_v12  ;;  %v6618_v22 = vunpack.i.l.bf16 %v6617_v12  ;;  %6426 = vmatpush3.bf16.xpose.msk.msra.mxu1 %vm7210_vm3, %v6424_v62 }
 0xd8d   :  { %6073 = vmatmul.mubr.msk.f32.gmra.mrb[68].mxu1 %vm332_vm2, %v8073_v50  ;;  %6431 = vmatprep.subr.bf16.mxu1 %v6947_v45 }
 0xd8e   :  { %v6428_v9 = vpack.c.bf16 %v6619_v39, %v6618_v22  ;;  %6092 = vmatprep.mubr.msk.f32.mxu1 %vm6949_vm1, %v6950_v46 }
 0xd8f   :  { %v6622_v34 = vpop.permute.xlu1 %6621  ;;  %6080 = vmatmul.mubr.msk.f32.vlgmr.msra.gmra.mrb[74].mxu0 %vm332_vm2, %v2923_v10 }
 0xd90   :  { %v6624_v18 = vunpack.i.h.bf16 %v6622_v34  ;;  %v6623_v54 = vunpack.i.l.bf16 %v6622_v34  ;;  %6430 = vmatpush3.bf16.xpose.msk.msra.mxu0 %vm7210_vm3, %v6428_v9  ;;  %6082 = vmatprep.mubr.msk.f32.mxu0 %vm6949_vm1, %v6950_v46 }
 0xd91   :  { %6435 = vmatprep.subr.bf16.mxu0 %v6947_v45 }
 0xd92   :  { %v6432_v50 = vpack.c.bf16 %v6624_v18, %v6623_v54 }
 0xd93   :  { %v6627_v43 = vpop.permute.xlu1 %6626  ;;  %6083 = vmatmul.mubr.msk.f32.gmra.mrb[76].mxu0 %vm332_vm2, %v8080_v55  ;;  %6093 = vmatmul.mubr.msk.f32.vlgmr.msra.gmra.mrb[70].mxu1 %vm332_vm2, %v2929_v48  ;;  %v2941_v55 = vpop.permute.xlu0 %2940 }
 0xd94   :  { %6434 = vmatpush3.bf16.xpose.msk.msra.mxu1 %vm7210_vm3, %v6432_v50  ;;  %6085 = vmatprep.mubr.msk.f32.mxu0 %vm6949_vm1, %v6950_v46  ;;  %v6629_v40 = vunpack.i.h.bf16 %v6627_v43  ;;  %v6628_v42 = vunpack.i.l.bf16 %v6627_v43 }
 0xd95   :  { %6095 = vmatprep.mubr.msk.f32.mxu1 %vm6949_vm1, %v6950_v46  ;;  %6439 = vmatprep.subr.bf16.mxu1 %v6947_v45 }
 0xd96   :  { %v6436_v16 = vpack.c.bf16 %v6629_v40, %v6628_v42 }
 0xd97   :  { %v2947_v29 = vpop.permute.xlu1 %2946  ;;  %6086 = vmatmul.mubr.msk.f32.gmra.mrb[78].mxu0 %vm332_vm2, %v8085_v14  ;;  %6096 = vmatmul.mubr.msk.f32.gmra.mrb[72].mxu1 %vm332_vm2, %v8077_v59  ;;  %v6637_v14 = vpop.permute.xlu0 %6636 }
 0xd98   :  { %6098 = vmatprep.mubr.msk.f32.mxu1 %vm6949_vm1, %v6950_v46  ;;  %6105 = vmatprep.mubr.msk.f32.mxu0 %vm6949_vm1, %v6950_v46  ;;  %v6639_v7 = vunpack.i.h.bf16 %v6637_v14 }
 0xd9b   :  { %v6632_v21 = vpop.permute.xlu1 %6631  ;;  %6099 = vmatmul.mubr.msk.f32.gmra.mrb[74].mxu1 %vm332_vm2, %v8096_v49  ;;  %6106 = vmatmul.mubr.msk.f32.vlgmr.msra.gmra.mrb[80].mxu0 %vm332_vm2, %v2935_v56  ;;  %v6638_v49 = vunpack.i.l.bf16 %v6637_v14 }
 0xd9c   :  { %v6634_v47 = vunpack.i.h.bf16 %v6632_v21  ;;  %v6633_v2 = vunpack.i.l.bf16 %v6632_v21  ;;  %6438 = vmatpush3.bf16.xpose.msk.msra.mxu0 %vm7210_vm3, %v6436_v16  ;;  %6108 = vmatprep.mubr.msk.f32.mxu0 %vm6949_vm1, %v6950_v46 }
 0xd9d   :  { %6118 = vmatprep.mubr.msk.f32.mxu1 %vm6949_vm1, %v6950_v46  ;;  %6442 = vmatprep.subr.bf16.mxu0 %v6947_v45 }
 0xd9e   :  { %v6440_v59 = vpack.c.bf16 %v6634_v47, %v6633_v2 }
 0xd9f   :  { %6109 = vmatmul.mubr.msk.f32.gmra.mrb[82].mxu0 %vm332_vm2, %v8082_v51  ;;  %6119 = vmatmul.mubr.msk.f32.vlgmr.msra.gmra.mrb[76].mxu1 %vm332_vm2, %v2941_v55  ;;  %v6443_v51 = vpack.c.bf16 %v6639_v7, %v6638_v49 }
 0xda0   :  { %6441 = vmatpush3.bf16.msra.mxu1 %v6440_v59  ;;  %6111 = vmatprep.mubr.msk.f32.mxu0 %vm6949_vm1, %v6950_v46 }
 0xda1   :  { %6121 = vmatprep.mubr.msk.f32.mxu1 %vm6949_vm1, %v6950_v46  ;;  %6445 = vmatprep.subr.bf16.mxu1 %v6947_v45 }
 0xda3   :  { %6112 = vmatmul.mubr.msk.f32.gmra.mrb[84].mxu0 %vm332_vm2, %v8107_v0  ;;  %6122 = vmatmul.mubr.msk.f32.gmra.mrb[78].mxu1 %vm332_vm2, %v8087_v61 }
 0xda4   :  { %6124 = vmatprep.mubr.msk.f32.mxu1 %vm6949_vm1, %v6950_v46  ;;  %6131 = vmatprep.mubr.msk.f32.mxu0 %vm6949_vm1, %v6950_v46 }
 0xda7   :  { %6125 = vmatmul.mubr.msk.f32.gmra.mrb[80].mxu1 %vm332_vm2, %v8116_v36  ;;  %6132 = vmatmul.mubr.msk.f32.vlgmr.msra.gmra.mrb[86].mxu0 %vm332_vm2, %v2947_v29 }
 0xda8   :  { %6444 = vmatpush3.bf16.msra.mxu0 %v6443_v51  ;;  %6134 = vmatprep.mubr.msk.f32.mxu0 %vm6949_vm1, %v6950_v46 }
 0xda9   :  { %6144 = vmatprep.mubr.msk.f32.mxu1 %vm6949_vm1, %v6950_v46  ;;  %6448 = vmatprep.subr.bf16.mxu0 %v6947_v45 }
 0xdab   :  { %6135 = vmatmul.mubr.msk.f32.gmra.mrb[88].mxu0 %vm332_vm2, %v8098_v4 }
 0xdac   :  { %6137 = vmatprep.mubr.msk.f32.mxu0 %vm6949_vm1, %v6950_v46 }
 0xdaf   :  { %6138 = vmatmul.mubr.msk.f32.gmra.mrb[90].mxu0 %vm332_vm2, %v8128_v19 }
 0xdb0   :  { %6157 = vmatprep.mubr.msk.f32.mxu0 %vm6949_vm1, %v6950_v46 }
 0xdf5   :  { %v3032_v61 = vpop.f32.mrb[58].mxu1 }
 0xdf6   :  { %v8251_v0 = vmul.f32 0.35355338, %v3032_v61  ;;  %v6042_v36 = vpop.f32.mrb[59].mxu1 }
 0xdf8   :  { %v3728_v38 = vsel %vm1105_vm4, %v8251_v0, -inf }
 0xdf9   :  { %3729 = vmax.xlane.f32.xlu0 %v3728_v38  ;;  %v3037_v35 = vpop.f32.mrb[60].mxu1 }
 0xdfa   :  { %v8255_v23 = vmul.f32 0.35355338, %v3037_v35  ;;  %v6045_v4 = vpop.f32.mrb[61].mxu1 }
 0xdfc   :  { %v3731_v28 = vsel %vm1105_vm4, %v8255_v23, -inf }
 0xdfd   :  { %3732 = vmax.xlane.f32.xlu1 %v3731_v28  ;;  %v3042_v19 = vpop.f32.mrb[62].mxu1 }
 0xdfe   :  { %v6048_v58 = vpop.f32.mrb[63].mxu1  ;;  %v8261_v15 = vmul.f32 0.35355338, %v3042_v19 }
 0xe00   :  { %v3734_v39 = vsel %vm1105_vm4, %v8261_v15, -inf }
 0xe01   :  { %v3126_v13 = vpop.f32.mrb[68].mxu0 }
 0xe02   :  { %v8259_v6 = vmul.f32 0.35355338, %v3126_v13  ;;  %v6055_v10 = vpop.f32.mrb[69].mxu0 }
 0xe04   :  { %v3737_v17 = vsel %vm1105_vm4, %v8259_v6, -inf }
 0xe05   :  { %v3131_v5 = vpop.f32.mrb[70].mxu0  ;;  %3738 = vmax.xlane.f32.xlu0 %v3737_v17 }
 0xe06   :  { %v6058_v62 = vpop.f32.mrb[71].mxu0  ;;  %v8265_v12 = vmul.f32 0.35355338, %v3131_v5 }
 0xe08   :  { %v3740_v34 = vsel %vm1105_vm4, %v8265_v12, -inf }
 0xe09   :  { %v3136_v22 = vpop.f32.mrb[72].mxu0  ;;  %3735 = vmax.xlane.f32.xlu0 %v3734_v39 }
 0xe0a   :  { %v6061_v48 = vpop.f32.mrb[73].mxu0  ;;  %v8269_v9 = vmul.f32 0.35355338, %v3136_v22 }
 0xe0c   :  { %v3743_v18 = vsel %vm1105_vm4, %v8269_v9, -inf }
 0xe0d   :  { %3741 = vmax.xlane.f32.xlu0 %v3740_v34 }
 0xe11   :  { %3744 = vmax.xlane.f32.xlu0 %v3743_v18 }
 0xe58   :  { %v3220_v54 = vpop.f32.mrb[64].mxu1 }
 0xe59   :  { %v8275_v50 = vmul.f32 0.35355338, %v3220_v54  ;;  %v6068_v56 = vpop.f32.mrb[65].mxu1 }
 0xe5b   :  { %v3746_v43 = vsel %vm1105_vm4, %v8275_v50, -inf }
 0xe5c   :  { %3747 = vmax.xlane.f32.xlu1 %v3746_v43  ;;  %v3225_v40 = vpop.f32.mrb[66].mxu1 }
 0xe5d   :  { %v8279_v42 = vmul.f32 0.35355338, %v3225_v40  ;;  %v6071_v29 = vpop.f32.mrb[67].mxu1 }
 0xe5f   :  { %v3749_v55 = vsel %vm1105_vm4, %v8279_v42, -inf }
 0xe60   :  { %3750 = vmax.xlane.f32.xlu1 %v3749_v55  ;;  %v3230_v16 = vpop.f32.mrb[68].mxu1 }
 0xe61   :  { %v8283_v21 = vmul.f32 0.35355338, %v3230_v16  ;;  %v6074_v47 = vpop.f32.mrb[69].mxu1 }
 0xe62   :  { %v3314_v2 = vpop.f32.mrb[74].mxu0 }
 0xe63   :  { %v8285_v59 = vmul.f32 0.35355338, %v3314_v2  ;;  %v6081_v14 = vpop.f32.mrb[75].mxu0  ;;  %v3752_v7 = vsel %vm1105_vm4, %v8283_v21, -inf }
 0xe64   :  { %3753 = vmax.xlane.f32.xlu1 %v3752_v7 }
 0xe65   :  { %v3755_v49 = vsel %vm1105_vm4, %v8285_v59, -inf }
 0xe66   :  { %v3319_v51 = vpop.f32.mrb[76].mxu0  ;;  %3756 = vmax.xlane.f32.xlu0 %v3755_v49  ;;  %v3408_v61 = vpop.f32.mrb[70].mxu1 }
 0xe67   :  { %v8291_v36 = vmul.f32 0.35355338, %v3319_v51  ;;  %v8293_v38 = vmul.f32 0.35355338, %v3408_v61  ;;  %v6084_v35 = vpop.f32.mrb[77].mxu0  ;;  %v6094_v4 = vpop.f32.mrb[71].mxu1 }
 0xe69   :  { %v3758_v28 = vsel %vm1105_vm4, %v8291_v36, -inf  ;;  %v3764_v19 = vsel %vm1105_vm4, %v8293_v38, -inf }
 0xe6a   :  { %v3324_v58 = vpop.f32.mrb[78].mxu0  ;;  %3759 = vmax.xlane.f32.xlu0 %v3758_v28  ;;  %3765 = vmax.xlane.f32.xlu1 %v3764_v19  ;;  %v3413_v13 = vpop.f32.mrb[72].mxu1 }
 0xe6b   :  { %v8299_v10 = vmul.f32 0.35355338, %v3324_v58  ;;  %v8301_v17 = vmul.f32 0.35355338, %v3413_v13  ;;  %v6087_v5 = vpop.f32.mrb[79].mxu0  ;;  %v6097_v62 = vpop.f32.mrb[73].mxu1 }
 0xe6d   :  { %v3761_v39 = vsel %vm1105_vm4, %v8299_v10, -inf  ;;  %v3767_v22 = vsel %vm1105_vm4, %v8301_v17, -inf }
 0xe6e   :  { %v3502_v48 = vpop.f32.mrb[80].mxu0  ;;  %3762 = vmax.xlane.f32.xlu0 %v3761_v39  ;;  %3768 = vmax.xlane.f32.xlu1 %v3767_v22  ;;  %v3418_v34 = vpop.f32.mrb[74].mxu1 }
 0xe6f   :  { %v8307_v18 = vmul.f32 0.35355338, %v3502_v48  ;;  %v8309_v54 = vmul.f32 0.35355338, %v3418_v34  ;;  %v6100_v56 = vpop.f32.mrb[75].mxu1  ;;  %v6107_v43 = vpop.f32.mrb[81].mxu0 }
 0xe71   :  { %v3773_v40 = vsel %vm1105_vm4, %v8307_v18, -inf  ;;  %v3770_v29 = vsel %vm1105_vm4, %v8309_v54, -inf }
 0xe72   :  { %v3507_v55 = vpop.f32.mrb[82].mxu0  ;;  %3774 = vmax.xlane.f32.xlu0 %v3773_v40  ;;  %3771 = vmax.xlane.f32.xlu1 %v3770_v29  ;;  %v3596_v16 = vpop.f32.mrb[76].mxu1 }
 0xe73   :  { %v8315_v47 = vmul.f32 0.35355338, %v3507_v55  ;;  %v8317_v2 = vmul.f32 0.35355338, %v3596_v16  ;;  %v6110_v14 = vpop.f32.mrb[83].mxu0  ;;  %v6120_v7 = vpop.f32.mrb[77].mxu1 }
 0xe75   :  { %v3776_v49 = vsel %vm1105_vm4, %v8315_v47, -inf  ;;  %v3782_v51 = vsel %vm1105_vm4, %v8317_v2, -inf }
 0xe76   :  { %v3512_v61 = vpop.f32.mrb[84].mxu0  ;;  %3777 = vmax.xlane.f32.xlu0 %v3776_v49  ;;  %3783 = vmax.xlane.f32.xlu1 %v3782_v51  ;;  %v3601_v35 = vpop.f32.mrb[78].mxu1 }
 0xe77   :  { %v8323_v4 = vmul.f32 0.35355338, %v3512_v61  ;;  %v8325_v28 = vmul.f32 0.35355338, %v3601_v35  ;;  %v6113_v19 = vpop.f32.mrb[85].mxu0  ;;  %v6123_v58 = vpop.f32.mrb[79].mxu1 }
 0xe78   :  { %v8351_v58 = vpop.permute.xlu1 %6641 }
 0xe79   :  { %v3779_v13 = vsel %vm1105_vm4, %v8323_v4, -inf  ;;  %v3785_v5 = vsel %vm1105_vm4, %v8325_v28, -inf }
 0xe7a   :  { %v3690_v62 = vpop.f32.mrb[86].mxu0  ;;  %3780 = vmax.xlane.f32.xlu0 %v3779_v13  ;;  %3786 = vmax.xlane.f32.xlu1 %v3785_v5  ;;  %v3606_v39 = vpop.f32.mrb[80].mxu1 }
 0xe7b   :  { %v8331_v22 = vmul.f32 0.35355338, %v3690_v62  ;;  %v8333_v48 = vmul.f32 0.35355338, %v3606_v39  ;;  %v6126_v34 = vpop.f32.mrb[81].mxu1  ;;  %v6133_v56 = vpop.f32.mrb[87].mxu0 }
 0xe7d   :  { %v3791_v43 = vsel %vm1105_vm4, %v8331_v22, -inf  ;;  %v3788_v40 = vsel %vm1105_vm4, %v8333_v48, -inf }
 0xe7e   :  { %v3695_v29 = vpop.f32.mrb[88].mxu0  ;;  %3792 = vmax.xlane.f32.xlu0 %v3791_v43  ;;  %3789 = vmax.xlane.f32.xlu1 %v3788_v40 }
 0xe7f   :  { %v8339_v55 = vmul.f32 0.35355338, %v3695_v29  ;;  %v6136_v16 = vpop.f32.mrb[89].mxu0 }
 0xe81   :  { %v3794_v14 = vsel %vm1105_vm4, %v8339_v55, -inf }
 0xe82   :  { %v3700_v7 = vpop.f32.mrb[90].mxu0  ;;  %3795 = vmax.xlane.f32.xlu0 %v3794_v14 }
 0xe83   :  { %v8343_v49 = vmul.f32 0.35355338, %v3700_v7  ;;  %v6139_v51 = vpop.f32.mrb[91].mxu0 }
 0xe85   :  { %v3797_v61 = vsel %vm1105_vm4, %v8343_v49, -inf }
 0xe86   :  { %3798 = vmax.xlane.f32.xlu1 %v3797_v61  ;;  %v3730_v35 = vpop.xlane.xlu0 %3729 }
 0xe87   :  { %v3800_v5 = vsub.f32 %v8251_v0, %v3730_v35 }
 0xe89   :  { %v3824_v56 = vmul.f32 1.442695, %v3800_v5 }
 0xe8a   :  { %v3733_v62 = vpop.xlane.xlu1 %3732 }
 0xe8b   :  { %v3801_v39 = vsub.f32 %v8255_v23, %v3733_v62  ;;  %6802 = vpow2.f32 %v3824_v56 }
 0xe8d   :  { %v3826_v40 = vmul.f32 1.442695, %v3801_v39 }
 0xe8f   :  { %6804 = vpow2.f32 %v3826_v40 }
 0xe92   :  { %v3739_v19 = vpop.xlane.xlu0 %3738 }
 0xe93   :  { %v3803_v43 = vsub.f32 %v8259_v6, %v3739_v19 }
 0xe95   :  { %v8359_v51 = vpop.eup %6802 }
 0xe96   :  { %v3736_v13 = vpop.xlane.xlu0 %3735 }
 0xe97   :  { %6651 = vrot.lane.b32.xlu1 %v8102_v20, %s6952_s20  ;;  %v3802_v29 = vsub.f32 %v8261_v15, %v3736_v13  ;;  %v3830_v20 = vmul.f32 1.442695, %v3803_v43  ;;  %v3872_v15 = vsel %vm1105_vm4, %v8359_v51, 0.0 }
 0xe98   :  { %6646 = vrot.lane.b32.xlu0 %v8091_v3, %s6952_s20 }
 0xe99   :  { %v3828_v14 = vmul.f32 1.442695, %v3802_v29  ;;  %6806 = vpow2.f32 %v3830_v20  ;;  %v8361_v6 = vpop.eup %6804 }
 0xe9a   :  { %v3742_v34 = vpop.xlane.xlu0 %3741 }
 0xe9b   :  { %v3804_v16 = vsub.f32 %v8265_v12, %v3742_v34  ;;  %6808 = vpow2.f32 %v3828_v14 }
 0xe9d   :  { %v3832_v7 = vmul.f32 1.442695, %v3804_v16 }
 0xe9e   :  { %v3745_v3 = vpop.xlane.xlu0 %3744 }
 0xe9f   :  { %v3805_v0 = vsub.f32 %v8269_v9, %v3745_v3  ;;  %6810 = vpow2.f32 %v3832_v7  ;;  %v3875_v9 = vsel %vm1105_vm4, %v8361_v6, 0.0 }
 0xea1   :  { %v3834_v23 = vmul.f32 1.442695, %v3805_v0 }
 0xea3   :  { %6812 = vpow2.f32 %v3834_v23  ;;  %v8365_v61 = vpop.eup %6806 }
 0xea4   :  { %v3881_v35 = vsel %vm1105_vm4, %v8365_v61, 0.0 }
 0xea5   :  { %v8367_v12 = vpop.eup %6808 }
 0xea6   :  { %v3878_v5 = vsel %vm1105_vm4, %v8367_v12, 0.0 }
 0xea9   :  { %v8373_v19 = vpop.eup %6810 }
 0xeaa   :  { %v3884_v13 = vsel %vm1105_vm4, %v8373_v19, 0.0 }
 0xead   :  { %v8379_v62 = vpop.eup %6812 }
 0xeae   :  { %v3887_v39 = vsel %vm1105_vm4, %v8379_v62, 0.0 }
 0xeb7   :  { %3873 = vadd.xlane.f32.xlu0 %v3872_v15 }
 0xebb   :  { %3882 = vadd.xlane.f32.xlu0 %v3881_v35  ;;  %3876 = vadd.xlane.f32.xlu1 %v3875_v9 }
 0xebf   :  { %3885 = vadd.xlane.f32.xlu0 %v3884_v13  ;;  %3879 = vadd.xlane.f32.xlu1 %v3878_v5 }
 0xec3   :  { %3888 = vadd.xlane.f32.xlu0 %v3887_v39 }
 0xee9   :  { %v3748_v34 = vpop.xlane.xlu1 %3747 }
 0xeea   :  { %v3806_v56 = vsub.f32 %v8275_v50, %v3748_v34 }
 0xeec   :  { %v3836_v43 = vmul.f32 1.442695, %v3806_v56 }
 0xeed   :  { %v3751_v40 = vpop.xlane.xlu1 %3750 }
 0xeee   :  { %6814 = vpow2.f32 %v3836_v43  ;;  %v3807_v29 = vsub.f32 %v8279_v42, %v3751_v40 }
 0xef0   :  { %v3838_v20 = vmul.f32 1.442695, %v3807_v29 }
 0xef1   :  { %v3754_v16 = vpop.xlane.xlu1 %3753 }
 0xef2   :  { %6816 = vpow2.f32 %v3838_v20  ;;  %v3808_v3 = vsub.f32 %v8283_v21, %v3754_v16 }
 0xef3   :  { %v3757_v14 = vpop.xlane.xlu0 %3756 }
 0xef4   :  { %v3840_v7 = vmul.f32 1.442695, %v3808_v3  ;;  %v3809_v0 = vsub.f32 %v8285_v59, %v3757_v14 }
 0xef6   :  { %6818 = vpow2.f32 %v3840_v7  ;;  %v3842_v23 = vmul.f32 1.442695, %v3809_v0 }
 0xef7   :  { %v3760_v15 = vpop.xlane.xlu0 %3759  ;;  %v3766_v35 = vpop.xlane.xlu1 %3765 }
 0xef8   :  { %v8387_v9 = vpop.eup %6814  ;;  %6820 = vpow2.f32 %v3842_v23  ;;  %v3810_v50 = vsub.f32 %v8291_v36, %v3760_v15  ;;  %v3812_v42 = vsub.f32 %v8293_v38, %v3766_v35 }
 0xef9   :  { %v3890_v13 = vsel %vm1105_vm4, %v8387_v9, 0.0 }
 0xefa   :  { %v3844_v5 = vmul.f32 1.442695, %v3810_v50  ;;  %v3848_v21 = vmul.f32 1.442695, %v3812_v42  ;;  %3891 = vadd.xlane.f32.xlu1 %v3890_v13 }
 0xefb   :  { %v3763_v39 = vpop.xlane.xlu0 %3762  ;;  %v3769_v34 = vpop.xlane.xlu1 %3768 }
 0xefc   :  { %v8393_v59 = vpop.eup %6816  ;;  %6822 = vpow2.f32 %v3844_v5  ;;  %v3811_v56 = vsub.f32 %v8299_v10, %v3763_v39  ;;  %v3813_v38 = vsub.f32 %v8301_v17, %v3769_v34 }
 0xefd   :  { %v3893_v43 = vsel %vm1105_vm4, %v8393_v59, 0.0  ;;  %6824 = vpow2.f32 %v3848_v21 }
 0xefe   :  { %v3846_v36 = vmul.f32 1.442695, %v3811_v56  ;;  %3894 = vadd.xlane.f32.xlu1 %v3893_v43  ;;  %v3850_v10 = vmul.f32 1.442695, %v3813_v38 }
 0xeff   :  { %v3775_v40 = vpop.xlane.xlu0 %3774  ;;  %v3772_v29 = vpop.xlane.xlu1 %3771 }
 0xf00   :  { %v8399_v20 = vpop.eup %6818  ;;  %v3815_v16 = vsub.f32 %v8307_v18, %v3775_v40  ;;  %6826 = vpow2.f32 %v3846_v36  ;;  %v3814_v0 = vsub.f32 %v8309_v54, %v3772_v29 }
 0xf01   :  { %v3896_v3 = vsel %vm1105_vm4, %v8399_v20, 0.0 }
 0xf02   :  { %v8404_v14 = vpop.eup %6820  ;;  %v3854_v7 = vmul.f32 1.442695, %v3815_v16  ;;  %3897 = vadd.xlane.f32.xlu1 %v3896_v3  ;;  %v3852_v50 = vmul.f32 1.442695, %v3814_v0 }
 0xf03   :  { %v3778_v23 = vpop.xlane.xlu0 %3777  ;;  %v3784_v17 = vpop.xlane.xlu1 %3783  ;;  %v3899_v15 = vsel %vm1105_vm4, %v8404_v14, 0.0 }
 0xf04   :  { %6828 = vpow2.f32 %v3854_v7  ;;  %v3816_v35 = vsub.f32 %v8315_v47, %v3778_v23  ;;  %3900 = vadd.xlane.f32.xlu0 %v3899_v15  ;;  %v3818_v13 = vsub.f32 %v8317_v2, %v3784_v17 }
 0xf05   :  { %6830 = vpow2.f32 %v3850_v10 }
 0xf06   :  { %v8410_v18 = vpop.eup %6822  ;;  %v3856_v42 = vmul.f32 1.442695, %v3816_v35  ;;  %v3860_v47 = vmul.f32 1.442695, %v3818_v13 }
 0xf07   :  { %v3781_v5 = vpop.xlane.xlu0 %3780  ;;  %v3787_v21 = vpop.xlane.xlu1 %3786  ;;  %v3902_v54 = vsel %vm1105_vm4, %v8410_v18, 0.0 }
 0xf08   :  { %v8415_v39 = vpop.eup %6824  ;;  %6832 = vpow2.f32 %v3856_v42  ;;  %v3819_v34 = vsub.f32 %v8325_v28, %v3787_v21  ;;  %3903 = vadd.xlane.f32.xlu0 %v3902_v54  ;;  %v3817_v56 = vsub.f32 %v8323_v4, %v3781_v5 }
 0xf09   :  { %6834 = vpow2.f32 %v3852_v50  ;;  %v3908_v2 = vsel %vm1105_vm4, %v8415_v39, 0.0 }
 0xf0a   :  { %v3862_v43 = vmul.f32 1.442695, %v3819_v34  ;;  %v8421_v40 = vpop.eup %6826  ;;  %v3858_v28 = vmul.f32 1.442695, %v3817_v56 }
 0xf0b   :  { %v3793_v36 = vpop.xlane.xlu0 %3792  ;;  %v3790_v38 = vpop.xlane.xlu1 %3789  ;;  %v3905_v7 = vsel %vm1105_vm4, %v8421_v40, 0.0 }
 0xf0c   :  { %v3820_v29 = vsub.f32 %v8333_v48, %v3790_v38  ;;  %3909 = vadd.xlane.f32.xlu0 %v3908_v2  ;;  %6836 = vpow2.f32 %v3862_v43  ;;  %v3821_v3 = vsub.f32 %v8331_v22, %v3793_v36 }
 0xf0d   :  { %6838 = vpow2.f32 %v3860_v47 }
 0xf0e   :  { %v8424_v16 = vpop.eup %6828  ;;  %v3864_v10 = vmul.f32 1.442695, %v3820_v29  ;;  %v3866_v15 = vmul.f32 1.442695, %v3821_v3 }
 0xf0f   :  { %v3796_v4 = vpop.xlane.xlu0 %3795  ;;  %v3917_v0 = vsel %vm1105_vm4, %v8424_v16, 0.0  ;;  %v8431_v23 = vpop.eup %6830 }
 0xf10   :  { %v3822_v48 = vsub.f32 %v8339_v55, %v3796_v4  ;;  %3906 = vadd.xlane.f32.xlu0 %v3905_v7  ;;  %3918 = vadd.xlane.f32.xlu1 %v3917_v0  ;;  %6840 = vpow2.f32 %v3864_v10  ;;  %v3911_v50 = vsel %vm1105_vm4, %v8431_v23, 0.0 }
 0xf11   :  { %6842 = vpow2.f32 %v3858_v28 }
 0xf12   :  { %v8434_v17 = vpop.eup %6832  ;;  %v3868_v22 = vmul.f32 1.442695, %v3822_v48 }
 0xf13   :  { %v3799_v35 = vpop.xlane.xlu1 %3798  ;;  %v3920_v42 = vsel %vm1105_vm4, %v8434_v17, 0.0  ;;  %v8440_v13 = vpop.eup %6834 }
 0xf14   :  { %6844 = vpow2.f32 %v3868_v22  ;;  %v3823_v55 = vsub.f32 %v8343_v49, %v3799_v35  ;;  %3912 = vadd.xlane.f32.xlu0 %v3911_v50  ;;  %3921 = vadd.xlane.f32.xlu1 %v3920_v42  ;;  %v3914_v54 = vsel %vm1105_vm4, %v8440_v13, 0.0  ;;  %v6647_v7 = vpop.permute.xlu0 %6646  ;;  %v6644_v42 = vunpack.i.h.bf16 %v8351_v58 }
 0xf15   :  { %6846 = vpow2.f32 %v3866_v15 }
 0xf16   :  { %v3870_v5 = vmul.f32 1.442695, %v3823_v55  ;;  %v8443_v21 = vpop.eup %6836 }
 0xf17   :  { %v8447_v34 = vpop.eup %6838  ;;  %v3929_v47 = vsel %vm1105_vm4, %v8443_v21, 0.0  ;;  %v6652_v0 = vpop.permute.xlu1 %6651 }
 0xf18   :  { %3915 = vadd.xlane.f32.xlu0 %v3914_v54  ;;  %3930 = vadd.xlane.f32.xlu1 %v3929_v47  ;;  %6848 = vpow2.f32 %v3870_v5  ;;  %v3926_v49 = vsel %vm1105_vm4, %v8447_v34, 0.0  ;;  %v6649_v54 = vunpack.i.h.bf16 %v6647_v7  ;;  %v6648_v47 = vunpack.i.l.bf16 %v6647_v7 }
 0xf1a   :  { %v8451_v56 = vpop.eup %6840 }
 0xf1b   :  { %v8455_v43 = vpop.eup %6842  ;;  %v3932_v36 = vsel %vm1105_vm4, %v8451_v56, 0.0 }
 0xf1c   :  { %3927 = vadd.xlane.f32.xlu0 %v3926_v49  ;;  %3933 = vadd.xlane.f32.xlu1 %v3932_v36  ;;  %v3923_v2 = vsel %vm1105_vm4, %v8455_v43, 0.0 }
 0xf1e   :  { %v8459_v38 = vpop.eup %6844 }
 0xf1f   :  { %v3938_v29 = vsel %vm1105_vm4, %v8459_v38, 0.0  ;;  %v8465_v28 = vpop.eup %6846 }
 0xf20   :  { %3924 = vadd.xlane.f32.xlu0 %v3923_v2  ;;  %3939 = vadd.xlane.f32.xlu1 %v3938_v29  ;;  %v3935_v3 = vsel %vm1105_vm4, %v8465_v28, 0.0  ;;  %v6449_v2 = vpack.c.bf16 %v6649_v54, %v6648_v47 }
 0xf22   :  { %v8469_v10 = vpop.eup %6848 }
 0xf23   :  { %v3941_v4 = vsel %vm1105_vm4, %v8469_v10, 0.0 }
 0xf24   :  { %3936 = vadd.xlane.f32.xlu0 %v3935_v3 }
 0xf28   :  { %3942 = vadd.xlane.f32.xlu0 %v3941_v4 }
 0xf31   :  { %6661 = vrot.lane.b32.xlu1 %v8120_v8, %s6952_s20  ;;  %v6643_v8 = vunpack.i.l.bf16 %v8351_v58 }
 0xf33   :  { %v6446_v5 = vpack.c.bf16 %v6644_v42, %v6643_v8 }
 0xf35   :  { %6666 = vrot.lane.b32.xlu1 %v8132_v25, %s6952_s20 }
 0xf3e   :  { %6656 = vrot.lane.b32.xlu0 %v8111_v37, %s6952_s20  ;;  %s5296_s20 = sshll.u32 %s6956_s19, 4  ;;  %s5297_s20 = int_to_ptr.vmem [resolvable:$true] %s5296_s20 }
 0xf3f   :  { %p6926_p1 = scmp.lt.s32.totalorder %s5297_s20, %s5297_s20 }
 0xf44   :  { %v3874_v48 = vpop.xlane.xlu0 %3873 }
 0xf45   :  { %6850 = vrcp.f32 %v3874_v48 }
 0xf48   :  { %v3883_v15 = vpop.xlane.xlu0 %3882  ;;  %v3877_v22 = vpop.xlane.xlu1 %3876 }
 0xf49   :  { %6852 = vrcp.f32 %v3883_v15  ;;  %v6654_v15 = vunpack.i.h.bf16 %v6652_v0 }
 0xf4a   :  { %6854 = vrcp.f32 %v3877_v22  ;;  %v6653_v22 = vunpack.i.l.bf16 %v6652_v0 }
 0xf4c   :  { %v3886_v35 = vpop.xlane.xlu0 %3885  ;;  %v3880_v50 = vpop.xlane.xlu1 %3879  ;;  %v6452_v42 = vpack.c.bf16 %v6654_v15, %v6653_v22 }
 0xf4d   :  { %6856 = vrcp.f32 %v3886_v35 }
 0xf4e   :  { %6858 = vrcp.f32 %v3880_v50 }
 0xf4f   :  { %v6851_v25 = vpop.eup %6850 }
 0xf50   :  { %v3968_v55 = vmul.f32 %v6851_v25, %v8359_v51  ;;  %v3889_v37 = vpop.xlane.xlu0 %3888 }
 0xf51   :  { %6860 = vrcp.f32 %v3889_v37 }
 0xf52   :  { %6145 = vmatmul.mubr.msk.f32.vlgmr.msra.gmra.mrb[82].mxu1 %vm1105_vm4, %v3968_v55 }
 0xf53   :  { %v6853_v49 = vpop.eup %6852  ;;  %6447 = vmatpush3.bf16.msra.mxu1 %v6446_v5  ;;  %6147 = vmatprep.mubr.msk.f32.mxu1 %vm6949_vm1, %v6950_v46 }
 0xf54   :  { %v6855_v36 = vpop.eup %6854  ;;  %v3971_v58 = vmul.f32 %v6853_v49, %v8365_v61  ;;  %6451 = vmatprep.subr.bf16.mxu1 %v6947_v45 }
 0xf55   :  { %v3969_v51 = vmul.f32 %v6855_v36, %v8361_v6 }
 0xf56   :  { %6158 = vmatmul.mubr.msk.f32.vlgmr.msra.gmra.mrb[92].mxu0 %vm1105_vm4, %v3971_v58 }
 0xf57   :  { %v6857_v29 = vpop.eup %6856  ;;  %6148 = vmatmul.mubr.msk.f32.gmra.mrb[84].mxu1 %vm1105_vm4, %v3969_v51  ;;  %6450 = vmatpush3.bf16.msra.mxu0 %v6449_v2 }
 0xf58   :  { %v6859_v3 = vpop.eup %6858  ;;  %6150 = vmatprep.mubr.msk.f32.mxu1 %vm6949_vm1, %v6950_v46  ;;  %6160 = vmatprep.mubr.msk.f32.mxu0 %vm6949_vm1, %v6950_v46  ;;  %v3972_v61 = vmul.f32 %v6857_v29, %v8373_v19 }
 0xf59   :  { %v3970_v4 = vmul.f32 %v6859_v3, %v8367_v12  ;;  %6454 = vmatprep.subr.bf16.mxu0 %v6947_v45 }
 0xf5a   :  { %6161 = vmatmul.mubr.msk.f32.gmra.mrb[94].mxu0 %vm1105_vm4, %v3972_v61 }
 0xf5b   :  { %v6861_v6 = vpop.eup %6860  ;;  %6151 = vmatmul.mubr.msk.f32.gmra.mrb[86].mxu1 %vm1105_vm4, %v3970_v4  ;;  %6163 = vmatprep.mubr.msk.f32.mxu0 %vm6949_vm1, %v6950_v46 }
 0xf5c   :  { %v3973_v7 = vmul.f32 %v6861_v6, %v8379_v62  ;;  %6170 = vmatprep.mubr.msk.f32.mxu1 %vm6949_vm1, %v6950_v46 }
 0xf5e   :  { %6164 = vmatmul.mubr.msk.f32.gmra.mrb[96].mxu0 %vm1105_vm4, %v3973_v7 }
 0xf5f   :  { %6183 = vmatprep.mubr.msk.f32.mxu0 %vm6949_vm1, %v6950_v46 }
 0xf87   :  { %v3892_v12 = vpop.xlane.xlu1 %3891 }
 0xf88   :  { %6862 = vrcp.f32 %v3892_v12 }
 0xf8b   :  { %v3895_v19 = vpop.xlane.xlu1 %3894 }
 0xf8c   :  { %6864 = vrcp.f32 %v3895_v19 }
 0xf8f   :  { %v3898_v48 = vpop.xlane.xlu1 %3897 }
 0xf90   :  { %6866 = vrcp.f32 %v3898_v48 }
 0xf91   :  { %v3901_v35 = vpop.xlane.xlu0 %3900 }
 0xf92   :  { %v6863_v50 = vpop.eup %6862  ;;  %6868 = vrcp.f32 %v3901_v35 }
 0xf93   :  { %v3974_v62 = vmul.f32 %v6863_v50, %v8387_v9 }
 0xf95   :  { %v3904_v8 = vpop.xlane.xlu0 %3903  ;;  %6171 = vmatmul.mubr.msk.f32.vlgmr.msra.gmra.mrb[88].mxu1 %vm1105_vm4, %v3974_v62 }
 0xf96   :  { %v6865_v25 = vpop.eup %6864  ;;  %6870 = vrcp.f32 %v3904_v8  ;;  %6453 = vmatpush3.bf16.msra.mxu1 %v6452_v42  ;;  %6173 = vmatprep.mubr.msk.f32.mxu1 %vm6949_vm1, %v6950_v46 }
 0xf97   :  { %v3975_v55 = vmul.f32 %v6865_v25, %v8393_v59  ;;  %6457 = vmatprep.subr.bf16.mxu1 %v6947_v45 }
 0xf99   :  { %v3910_v0 = vpop.xlane.xlu0 %3909  ;;  %6174 = vmatmul.mubr.msk.f32.gmra.mrb[90].mxu1 %vm1105_vm4, %v3975_v55 }
 0xf9a   :  { %v6867_v37 = vpop.eup %6866  ;;  %6872 = vrcp.f32 %v3910_v0  ;;  %6176 = vmatprep.mubr.msk.f32.mxu1 %vm6949_vm1, %v6950_v46 }
 0xf9b   :  { %v3976_v9 = vmul.f32 %v6867_v37, %v8399_v20 }
 0xf9c   :  { %v6869_v5 = vpop.eup %6868 }
 0xf9d   :  { %v3977_v54 = vmul.f32 %v6869_v5, %v8404_v14  ;;  %v3907_v47 = vpop.xlane.xlu0 %3906  ;;  %v3919_v49 = vpop.xlane.xlu1 %3918  ;;  %6177 = vmatmul.mubr.msk.f32.gmra.mrb[92].mxu1 %vm1105_vm4, %v3976_v9 }
 0xf9e   :  { %6874 = vrcp.f32 %v3907_v47  ;;  %6196 = vmatprep.mubr.msk.f32.mxu1 %vm6949_vm1, %v6950_v46 }
 0xf9f   :  { %6184 = vmatmul.mubr.msk.f32.vlgmr.msra.gmra.mrb[98].mxu0 %vm1105_vm4, %v3977_v54 }
 0xfa0   :  { %v6871_v59 = vpop.eup %6870  ;;  %6186 = vmatprep.mubr.msk.f32.mxu0 %vm6949_vm1, %v6950_v46 }
 0xfa1   :  { %v3913_v36 = vpop.xlane.xlu0 %3912  ;;  %v3922_v58 = vpop.xlane.xlu1 %3921  ;;  %v3978_v20 = vmul.f32 %v6871_v59, %v8410_v18 }
 0xfa2   :  { %6876 = vrcp.f32 %v3913_v36 }
 0xfa3   :  { %6187 = vmatmul.mubr.msk.f32.gmra.mrb[100].mxu0 %vm1105_vm4, %v3978_v20 }
 0xfa4   :  { %v6873_v14 = vpop.eup %6872  ;;  %6189 = vmatprep.mubr.msk.f32.mxu0 %vm6949_vm1, %v6950_v46 }
 0xfa5   :  { %v3980_v2 = vmul.f32 %v6873_v14, %v8415_v39  ;;  %v3916_v51 = vpop.xlane.xlu0 %3915  ;;  %v3931_v29 = vpop.xlane.xlu1 %3930 }
 0xfa6   :  { %6878 = vrcp.f32 %v3916_v51 }
 0xfa7   :  { %6197 = vmatmul.mubr.msk.f32.vlgmr.msra.gmra.mrb[94].mxu1 %vm1105_vm4, %v3980_v2 }
 0xfa8   :  { %v6875_v3 = vpop.eup %6874  ;;  %6199 = vmatprep.mubr.msk.f32.mxu1 %vm6949_vm1, %v6950_v46 }
 0xfa9   :  { %v3928_v61 = vpop.xlane.xlu0 %3927  ;;  %v3979_v18 = vmul.f32 %v6875_v3, %v8421_v40  ;;  %v3934_v4 = vpop.xlane.xlu1 %3933 }
 0xfaa   :  { %6880 = vrcp.f32 %v3928_v61 }
 0xfab   :  { %6190 = vmatmul.mubr.msk.f32.gmra.mrb[102].mxu0 %vm1105_vm4, %v3979_v18  ;;  %6882 = vrcp.f32 %v3931_v29 }
 0xfac   :  { %v6877_v6 = vpop.eup %6876  ;;  %6209 = vmatprep.mubr.msk.f32.mxu0 %vm6949_vm1, %v6950_v46  ;;  %6884 = vrcp.f32 %v3919_v49 }
 0xfad   :  { %v3925_v39 = vpop.xlane.xlu0 %3924  ;;  %v3981_v7 = vmul.f32 %v6877_v6, %v8431_v23  ;;  %v3940_v12 = vpop.xlane.xlu1 %3939  ;;  %6886 = vrcp.f32 %v3934_v4 }
 0xfae   :  { %6888 = vrcp.f32 %v3922_v58 }
 0xfaf   :  { %6200 = vmatmul.mubr.msk.f32.gmra.mrb[96].mxu1 %vm1105_vm4, %v3981_v7  ;;  %6890 = vrcp.f32 %v3925_v39 }
 0xfb0   :  { %v6879_v19 = vpop.eup %6878  ;;  %6202 = vmatprep.mubr.msk.f32.mxu1 %vm6949_vm1, %v6950_v46 }
 0xfb1   :  { %v3937_v40 = vpop.xlane.xlu0 %3936  ;;  %v3982_v48 = vmul.f32 %v6879_v19, %v8440_v13  ;;  %v6662_v15 = vpop.permute.xlu1 %6661 }
 0xfb2   :  { %v6664_v22 = vunpack.i.h.bf16 %v6662_v15  ;;  %v6663_v35 = vunpack.i.l.bf16 %v6662_v15  ;;  %6892 = vrcp.f32 %v3937_v40 }
 0xfb3   :  { %6203 = vmatmul.mubr.msk.f32.gmra.mrb[98].mxu1 %vm1105_vm4, %v3982_v48  ;;  %6894 = vrcp.f32 %v3940_v12 }
 0xfb4   :  { %6222 = vmatprep.mubr.msk.f32.mxu1 %vm6949_vm1, %v6950_v46  ;;  %v6881_v23 = vpop.eup %6880  ;;  %v6458_v50 = vpack.c.bf16 %v6664_v22, %v6663_v35 }
 0xfb5   :  { %v3943_v62 = vpop.xlane.xlu0 %3942  ;;  %v3986_v42 = vmul.f32 %v6881_v23, %v8447_v34  ;;  %v6883_v13 = vpop.eup %6882 }
 0xfb6   :  { %6459 = vmatpush3.bf16.msra.mxu1 %v6458_v50  ;;  %v6667_v8 = vpop.permute.xlu1 %6666  ;;  %v6885_v37 = vpop.eup %6884  ;;  %v3987_v34 = vmul.f32 %v6883_v13, %v8443_v21  ;;  %6896 = vrcp.f32 %v3943_v62 }
 0xfb7   :  { %6464 = vmatprep.subr.bf16.mxu1 %v7717_v33  ;;  %v6669_v9 = vunpack.i.h.bf16 %v6667_v8  ;;  %v6668_v5 = vunpack.i.l.bf16 %v6667_v8  ;;  %v6887_v47 = vpop.eup %6886  ;;  %v3983_v49 = vmul.f32 %v6885_v37, %v8424_v16 }
 0xfb8   :  { %v3988_v36 = vmul.f32 %v6887_v47, %v8451_v56 }
 0xfb9   :  { %v6657_v25 = vpop.permute.xlu0 %6656  ;;  %6223 = vmatmul.mubr.msk.f32.vlgmr.msra.gmra.mrb[100].mxu1 %vm1105_vm4, %v3986_v42  ;;  %v6461_v59 = vpack.c.bf16 %v6669_v9, %v6668_v5 }
 0xfba   :  { %v6659_v55 = vunpack.i.h.bf16 %v6657_v25  ;;  %v6658_v0 = vunpack.i.l.bf16 %v6657_v25  ;;  %6225 = vmatprep.mubr.msk.f32.mxu1 %vm6949_vm1, %v6950_v46  ;;  %6466 = vmatpush3.bf16.msra.mxu1 %v7717_v33  ;;  %v6889_v33 = vpop.eup %6888 }
 0xfbb   :  { %6468 = vmatprep.subr.bf16.mxu1 %v7732_v27  ;;  %v3984_v16 = vmul.f32 %v6889_v33, %v8434_v17 }
 0xfbc   :  { %v6455_v54 = vpack.c.bf16 %v6659_v55, %v6658_v0 }
 0xfbd   :  { %6226 = vmatmul.mubr.msk.f32.gmra.mrb[102].mxu1 %vm1105_vm4, %v3987_v34 }
 0xfbe   :  { %6456 = vmatpush3.bf16.msra.mxu0 %v6455_v54  ;;  %6228 = vmatprep.mubr.msk.f32.mxu1 %vm6949_vm1, %v6950_v46 }
 0xfbf   :  { %6460 = vmatprep.subr.bf16.mxu0 %v6947_v45  ;;  %6470 = vmatpush3.bf16.msra.mxu1 %v7732_v27  ;;  %v6891_v45 = vpop.eup %6890 }
 0xfc0   :  { %6480 = vmatprep.subr.bf16.mxu1 %v7885_v11  ;;  %v3985_v27 = vmul.f32 %v6891_v45, %v8455_v43  ;;  %v6893_v21 = vpop.eup %6892 }
 0xfc1   :  { %6210 = vmatmul.mubr.msk.f32.vlgmr.msra.gmra.mrb[104].mxu0 %vm1105_vm4, %v3983_v49  ;;  %6229 = vmatmul.mubr.msk.f32.gmra.mrb[104].mxu1 %vm1105_vm4, %v3988_v36  ;;  %v3989_v56 = vmul.f32 %v6893_v21, %v8465_v28  ;;  %v6895_v17 = vpop.eup %6894 }
 0xfc2   :  { %6462 = vmatpush3.bf16.msra.mxu0 %v6461_v59  ;;  %6212 = vmatprep.mubr.msk.f32.mxu0 %vm6949_vm1, %v6950_v46  ;;  %v3990_v58 = vmul.f32 %v6895_v17, %v8459_v38  ;;  %v6897_v43 = vpop.eup %6896 }
 0xfc3   :  { %6472 = vmatprep.subr.bf16.mxu0 %v7840_v1  ;;  %v3991_v28 = vmul.f32 %v6897_v43, %v8469_v10 }
 0xfc5   :  { %6213 = vmatmul.mubr.msk.f32.gmra.mrb[106].mxu0 %vm1105_vm4, %v3984_v16 }
 0xfc6   :  { %6215 = vmatprep.mubr.msk.f32.mxu0 %vm6949_vm1, %v6950_v46 }
 0xfc9   :  { %6216 = vmatmul.mubr.msk.f32.gmra.mrb[108].mxu0 %vm1105_vm4, %v3985_v27 }
 0xfca   :  { %6235 = vmatprep.mubr.msk.f32.mxu0 %vm6949_vm1, %v6950_v46 }
 0xfcd   :  { %6236 = vmatmul.mubr.msk.f32.vlgmr.msra.gmra.mrb[110].mxu0 %vm1105_vm4, %v3989_v56 }
 0xfce   :  { %6238 = vmatprep.mubr.msk.f32.mxu0 %vm6949_vm1, %v6950_v46  ;;  %6474 = vmatpush3.bf16.msra.mxu0 %v7840_v1 }
 0xfcf   :  { %6476 = vmatprep.subr.bf16.mxu0 %v7856_v52 }
 0xfd1   :  { %6239 = vmatmul.mubr.msk.f32.gmra.mrb[112].mxu0 %vm1105_vm4, %v3990_v58 }
 0xfd2   :  { %6241 = vmatprep.mubr.msk.f32.mxu0 %vm6949_vm1, %v6950_v46  ;;  %6478 = vmatpush3.bf16.msra.mxu0 %v7856_v52 }
 0xfd5   :  { %6242 = vmatmul.mubr.msk.f32.gmra.mrb[114].mxu0 %vm1105_vm4, %v3991_v28 }
0x1025   :  { %v8586_v20 = vpop.f32.mrb[82].mxu1 }
0x1026   :  { %v6146_v14 = vpop.f32.mrb[83].mxu1 }
0x1029   :  { %v8588_v1 = vpop.f32.mrb[92].mxu0 }
0x102a   :  { %v8590_v38 = vpop.f32.mrb[84].mxu1  ;;  %v6159_v2 = vpop.f32.mrb[93].mxu0 }
0x102b   :  { %v6149_v51 = vpop.f32.mrb[85].mxu1 }
0x102d   :  { %v8592_v29 = vpop.f32.mrb[94].mxu0 }
0x102e   :  { %v8594_v3 = vpop.f32.mrb[86].mxu1  ;;  %v6162_v46 = vpop.f32.mrb[95].mxu0 }
0x102f   :  { %v6152_v61 = vpop.f32.mrb[87].mxu1 }
0x1031   :  { %v8596_v52 = vpop.f32.mrb[96].mxu0 }
0x1032   :  { %v6165_v10 = vpop.f32.mrb[97].mxu0 }
0x1068   :  { %v4263_v18 = vpop.f32.mrb[88].mxu1 }
0x1069   :  { %4758 = vrot.lane.b32.xlu1 %v4263_v18, %s6953_s21  ;;  %v6172_v4 = vpop.f32.mrb[89].mxu1 }
0x106c   :  { %v4268_v6 = vpop.f32.mrb[90].mxu1 }
0x106d   :  { %4760 = vrot.lane.b32.xlu1 %v4268_v6, %s6953_s21  ;;  %v6175_v39 = vpop.f32.mrb[91].mxu1 }
0x1070   :  { %v4273_v7 = vpop.f32.mrb[92].mxu1 }
0x1071   :  { %4762 = vrot.lane.b32.xlu0 %v4273_v7, %s6953_s21  ;;  %v6178_v12 = vpop.f32.mrb[93].mxu1 }
0x1072   :  { %v4358_v19 = vpop.f32.mrb[98].mxu0 }
0x1073   :  { %v6185_v40 = vpop.f32.mrb[99].mxu0  ;;  %4764 = vrot.lane.b32.xlu1 %v4358_v19, %s6953_s21 }
0x1076   :  { %v4363_v48 = vpop.f32.mrb[100].mxu0 }
0x1077   :  { %v6188_v15 = vpop.f32.mrb[101].mxu0  ;;  %4766 = vrot.lane.b32.xlu0 %v4363_v48, %s6953_s21 }
0x107a   :  { %v4453_v22 = vpop.f32.mrb[94].mxu1 }
0x107b   :  { %4782 = vrot.lane.b32.xlu1 %v4453_v22, %s6954_s26  ;;  %v6198_v35 = vpop.f32.mrb[95].mxu1 }
0x107e   :  { %v4368_v23 = vpop.f32.mrb[102].mxu0 }
0x107f   :  { %v6191_v50 = vpop.f32.mrb[103].mxu0  ;;  %4768 = vrot.lane.b32.xlu1 %v4368_v23, %s6953_s21 }
0x1082   :  { %v4458_v62 = vpop.f32.mrb[96].mxu1 }
0x1083   :  { %4784 = vrot.lane.b32.xlu1 %v4458_v62, %s6954_s26  ;;  %v6201_v42 = vpop.f32.mrb[97].mxu1 }
0x1086   :  { %v4463_v13 = vpop.f32.mrb[98].mxu1 }
0x1087   :  { %4786 = vrot.lane.b32.xlu0 %v4463_v13, %s6954_s26  ;;  %v6204_v8 = vpop.f32.mrb[99].mxu1 }
0x108c   :  { %v4643_v25 = vpop.f32.mrb[100].mxu1 }
0x108d   :  { %4806 = vrot.lane.b32.xlu0 %v4643_v25, %s6955_s11  ;;  %v6224_v55 = vpop.f32.mrb[101].mxu1 }
0x1090   :  { %v4648_v0 = vpop.f32.mrb[102].mxu1 }
0x1091   :  { %v6227_v37 = vpop.f32.mrb[103].mxu1 }
0x1094   :  { %v4548_v9 = vpop.f32.mrb[104].mxu0  ;;  %v4653_v5 = vpop.f32.mrb[104].mxu1 }
0x1095   :  { %v6211_v54 = vpop.f32.mrb[105].mxu0  ;;  %4788 = vrot.lane.b32.xlu1 %v4548_v9, %s6954_s26  ;;  %4810 = vrot.lane.b32.xlu0 %v4653_v5, %s6955_s11  ;;  %v6230_v34 = vpop.f32.mrb[105].mxu1  ;;  %v6918_v9 = vld [vmem:[%s8734_s5] ss:$0 sm:$0xff] }
0x1098   :  { %v4553_v47 = vpop.f32.mrb[106].mxu0 }
0x1099   :  { %v6214_v49 = vpop.f32.mrb[107].mxu0  ;;  %4808 = vrot.lane.b32.xlu1 %v4648_v0, %s6955_s11  ;;  %4790 = vrot.lane.b32.xlu0 %v4553_v47, %s6954_s26 }
0x109c   :  { %v4558_v33 = vpop.f32.mrb[108].mxu0 }
0x109d   :  { %v6217_v59 = vpop.f32.mrb[109].mxu0 }
0x10a0   :  { %v4738_v36 = vpop.f32.mrb[110].mxu0 }
0x10a1   :  { %v6237_v16 = vpop.f32.mrb[111].mxu0  ;;  %4812 = vrot.lane.b32.xlu1 %v4738_v36, %s6955_s11 }
0x10a4   :  { %v4743_v45 = vpop.f32.mrb[112].mxu0 }
0x10a5   :  { %v6240_v27 = vpop.f32.mrb[113].mxu0  ;;  %4792 = vrot.lane.b32.xlu1 %v4558_v33, %s6954_s26  ;;  %4814 = vrot.lane.b32.xlu0 %v4743_v45, %s6955_s11  ;;  %s6921_s26 = scalar_lea.vmem %s5297_s20, 256 }
0x10a6   :  { %p6922_p0 = scmp.ne.s32.totalorder %s5297_s20, %s6921_s26  ;;  %p6927_p2 = scmp.lt.s32.totalorder %s6921_s26, %s6921_s26 }
0x10a8   :  { %v4748_v21 = vpop.f32.mrb[114].mxu0  ;;  %p6928_p3 = por %p6927_p2, %p6926_p1 }
0x10a9   :  { %v6243_v56 = vpop.f32.mrb[115].mxu0  ;;  %4816 = vrot.lane.b32.xlu1 %v4748_v21, %s6955_s11 }
0x10aa   :  { %p6929_p4 = pnand %p6928_p3, %p6922_p0 }
0x10db   :  { %v4759_v17 = vpop.permute.xlu1 %4758 }
0x10dc   :  { %v4824_v61 = vsel %vm332_vm2, %v8586_v20, %v4759_v17 }
0x10df   :  { %v4761_v58 = vpop.permute.xlu1 %4760 }
0x10e0   :  { %v4825_v7 = vsel %vm332_vm2, %v8590_v38, %v4761_v58 }
0x10e3   :  { %v4763_v43 = vpop.permute.xlu0 %4762 }
0x10e4   :  { %v4826_v19 = vsel %vm332_vm2, %v8594_v3, %v4763_v43 }
0x10e5   :  { %v4765_v28 = vpop.permute.xlu1 %4764 }
0x10e6   :  { %v4827_v38 = vsel %vm332_vm2, %v8588_v1, %v4765_v28 }
0x10e9   :  { %v4767_v2 = vpop.permute.xlu0 %4766 }
0x10ed   :  { %v4783_v14 = vpop.permute.xlu1 %4782 }
0x10ee   :  { %v4830_v10 = vsel %vm1105_vm4, %v4824_v61, %v4783_v14 }
0x10f1   :  { %v4769_v46 = vpop.permute.xlu1 %4768 }
0x10f2   :  { %v4829_v13 = vsel %vm332_vm2, %v8596_v52, %v4769_v46 }
0x10f5   :  { %v4785_v6 = vpop.permute.xlu1 %4784 }
0x10f6   :  { %v4831_v40 = vsel %vm1105_vm4, %v4825_v7, %v4785_v6 }
0x10f9   :  { %v4787_v51 = vpop.permute.xlu0 %4786 }
0x10fa   :  { %v4832_v20 = vsel %vm1105_vm4, %v4826_v19, %v4787_v51 }
0x10ff   :  { %v4807_v18 = vpop.permute.xlu0 %4806 }
0x1100   :  { %v4836_v4 = vsel %vm2214_vm5, %v4830_v10, %v4807_v18 }
0x1101   :  { %6252 = vmatprep.mubr.msk.f32.mxu1 %vm67_vm0, %v4836_v4 }
0x1107   :  { %v4789_v39 = vpop.permute.xlu1 %4788  ;;  %v4811_v12 = vpop.permute.xlu0 %4810 }
0x1108   :  { %v4838_v22 = vsel %vm2214_vm5, %v4832_v20, %v4811_v12  ;;  %v4833_v3 = vsel %vm1105_vm4, %v4827_v38, %v4789_v39 }
0x110b   :  { %v4809_v48 = vpop.permute.xlu1 %4808  ;;  %v4791_v35 = vpop.permute.xlu0 %4790 }
0x110c   :  { %v4837_v15 = vsel %vm2214_vm5, %v4831_v40, %v4809_v48 }
0x110d   :  { %6253 = vmatmul.mubr.msk.f32.vlgmr.msra.gmra.mrb[106].mxu1 %vm67_vm0, %v4837_v15 }
0x110e   :  { %6255 = vmatprep.mubr.msk.f32.mxu1 %vm67_vm0, %v4838_v22  ;;  %6482 = vmatpush3.bf16.msra.mxu1 %v7885_v11  ;;  %v4828_v11 = vsel %vm332_vm2, %v8592_v29, %v4767_v2 }
0x110f   :  { %6484 = vmatprep.subr.bf16.mxu1 %v7890_v26  ;;  %v4834_v62 = vsel %vm1105_vm4, %v4828_v11, %v4791_v35 }
0x1112   :  { %6486 = vmatpush3.bf16.msra.mxu1 %v7890_v26 }
0x1113   :  { %v4813_v23 = vpop.permute.xlu1 %4812  ;;  %6488 = vmatprep.subr.bf16.mxu1 %v7901_v31 }
0x1114   :  { %v4839_v50 = vsel %vm2214_vm5, %v4833_v3, %v4813_v23 }
0x1115   :  { %6256 = vmatmul.mubr.msk.f32.gmra.mrb[108].mxu1 %vm67_vm0, %v4839_v50 }
0x1116   :  { %6490 = vmatpush3.bf16.msra.mxu1 %v7901_v31 }
0x1117   :  { %v4793_v1 = vpop.permute.xlu1 %4792  ;;  %v4815_v42 = vpop.permute.xlu0 %4814  ;;  %6492 = vmatprep.subr.bf16.mxu1 %v7949_v53 }
0x1118   :  { %v4840_v26 = vsel %vm2214_vm5, %v4834_v62, %v4815_v42  ;;  %v4835_v8 = vsel %vm1105_vm4, %v4829_v13, %v4793_v1 }
0x1119   :  { %6258 = vmatprep.mubr.msk.f32.mxu1 %vm67_vm0, %v4840_v26 }
0x111a   :  { %6494 = vmatpush3.bf16.msra.mxu1 %v7949_v53 }
0x111b   :  { %v4817_v29 = vpop.permute.xlu1 %4816 }
0x111c   :  { %v4841_v31 = vsel %vm2214_vm5, %v4835_v8, %v4817_v29 }
0x111d   :  { %6259 = vmatmul.mubr.msk.f32.gmra.mrb[110].mxu1 %vm67_vm0, %v4841_v31 }
0x11e0   :  { %v6254_v25 = vpop.f32.mrb[106].mxu1 }
0x11e1   :  { %v4956_v55 = vadd.f32 %v6254_v25, %v7970_v44  ;;  %v4926_v0 = vpop.f32.mrb[107].mxu1 }
0x11e2   :  { %v4955_v37 = vadd.f32 %v4926_v0, %v7972_v32 }
0x11e3   :  { %v4962_v52 = vadd.f32 %v6918_v9, %v4956_v55 }
0x11e4   :  { %v8658_v5 = vadd.f32 %v6918_v9, %v4955_v37 }
0x11e5   :  { %v4970_v53 = vsel %vm67_vm0, %v4962_v52, 0.0 }
0x11e6   :  { %4971 = vadd.xlane.f32.xlu1 %v4970_v53  ;;  %v4967_v54 = vsel %vm67_vm0, %v8658_v5, 0.0 }
0x11e7   :  { %4968 = vadd.xlane.f32.xlu0 %v4967_v54 }
0x11e8   :  { %v6257_v34 = vpop.f32.mrb[108].mxu1 }
0x11e9   :  { %v4936_v47 = vpop.f32.mrb[109].mxu1  ;;  %v4958_v44 = vadd.f32 %v6257_v34, %v7980_v24 }
0x11ea   :  { %v4957_v32 = vadd.f32 %v4936_v47, %v7982_v57 }
0x11eb   :  { %v8665_v33 = vadd.f32 %v6918_v9, %v4958_v44 }
0x11ec   :  { %v4963_v49 = vadd.f32 %v6918_v9, %v4957_v32 }
0x11ed   :  { %v4976_v21 = vsel %vm67_vm0, %v8665_v33, 0.0 }
0x11ee   :  { %v4973_v59 = vsel %vm67_vm0, %v4963_v49, 0.0 }
0x11ef   :  { %4974 = vadd.xlane.f32.xlu0 %v4973_v59 }
0x11f0   :  { %v6260_v36 = vpop.f32.mrb[110].mxu1 }
0x11f1   :  { %v4960_v16 = vadd.f32 %v6260_v36, %v7990_v30  ;;  %v4946_v45 = vpop.f32.mrb[111].mxu1 }
0x11f2   :  { %v4959_v27 = vadd.f32 %v4946_v45, %v7992_v60 }
0x11f3   :  { %v4966_v56 = vadd.f32 %v6918_v9, %v4960_v16  ;;  %4977 = vadd.xlane.f32.xlu0 %v4976_v21 }
0x11f4   :  { %v4965_v24 = vadd.f32 %v6918_v9, %v4959_v27 }
0x11f5   :  { %v4982_v57 = vsel %vm67_vm0, %v4966_v56, 0.0 }
0x11f6   :  { %4983 = vadd.xlane.f32.xlu1 %v4982_v57  ;;  %v4979_v17 = vsel %vm67_vm0, %v4965_v24, 0.0 }
0x11f7   :  { %4980 = vadd.xlane.f32.xlu0 %v4979_v17 }
0x1273   :  { %v4972_v58 = vpop.xlane.xlu1 %4971 }
0x1274   :  { %v4986_v43 = vmul.f32 0.03125, %v4972_v58  ;;  %v4969_v28 = vpop.xlane.xlu0 %4968 }
0x1275   :  { %v4985_v14 = vmul.f32 0.03125, %v4969_v28 }
0x1276   :  { %v4992_v30 = vsub.f32 %v4962_v52, %v4986_v43 }
0x1277   :  { %v4991_v2 = vsub.f32 %v8658_v5, %v4985_v14 }
0x1278   :  { %v4998_v60 = vmul.f32 %v4992_v30, %v4992_v30 }
0x1279   :  { %v4997_v51 = vmul.f32 %v4991_v2, %v4991_v2 }
0x127a   :  { %v5006_v46 = vsel %vm67_vm0, %v4998_v60, 0.0 }
0x127b   :  { %5007 = vadd.xlane.f32.xlu1 %v5006_v46  ;;  %v5003_v61 = vsel %vm67_vm0, %v4997_v51, 0.0 }
0x127c   :  { %v4975_v10 = vpop.xlane.xlu0 %4974  ;;  %5004 = vadd.xlane.f32.xlu0 %v5003_v61 }
0x127d   :  { %v4987_v18 = vmul.f32 0.03125, %v4975_v10 }
0x127f   :  { %v4993_v4 = vsub.f32 %v4963_v49, %v4987_v18 }
0x1280   :  { %v4978_v6 = vpop.xlane.xlu0 %4977 }
0x1281   :  { %v4988_v39 = vmul.f32 0.03125, %v4978_v6  ;;  %v4999_v7 = vmul.f32 %v4993_v4, %v4993_v4  ;;  %v6919_v6 = vld [vmem:[%s8736_s7] ss:$0 sm:$0xff] }
0x1283   :  { %v4994_v12 = vsub.f32 %v8665_v33, %v4988_v39  ;;  %v4984_v19 = vpop.xlane.xlu1 %4983  ;;  %v5009_v40 = vsel %vm67_vm0, %v4999_v7, 0.0 }
0x1284   :  { %v4990_v48 = vmul.f32 0.03125, %v4984_v19  ;;  %5010 = vadd.xlane.f32.xlu0 %v5009_v40  ;;  %v4981_v20 = vpop.xlane.xlu0 %4980 }
0x1285   :  { %v4989_v15 = vmul.f32 0.03125, %v4981_v20  ;;  %v5000_v22 = vmul.f32 %v4994_v12, %v4994_v12 }
0x1286   :  { %v4996_v38 = vsub.f32 %v4966_v56, %v4990_v48 }
0x1287   :  { %v4995_v3 = vsub.f32 %v4965_v24, %v4989_v15  ;;  %v5012_v35 = vsel %vm67_vm0, %v5000_v22, 0.0 }
0x1288   :  { %5013 = vadd.xlane.f32.xlu1 %v5012_v35  ;;  %v5002_v23 = vmul.f32 %v4996_v38, %v4996_v38 }
0x1289   :  { %v5001_v50 = vmul.f32 %v4995_v3, %v4995_v3 }
0x128a   :  { %v5018_v11 = vsel %vm67_vm0, %v5002_v23, 0.0 }
0x128b   :  { %v5015_v62 = vsel %vm67_vm0, %v5001_v50, 0.0 }
0x128c   :  { %5019 = vadd.xlane.f32.xlu1 %v5018_v11  ;;  %5016 = vadd.xlane.f32.xlu0 %v5015_v62 }
0x1308   :  { %v5008_v1 = vpop.xlane.xlu1 %5007 }
0x1309   :  { %v5022_v42 = vmul.f32 0.03125, %v5008_v1  ;;  %v5005_v26 = vpop.xlane.xlu0 %5004 }
0x130a   :  { %v5021_v13 = vmul.f32 0.03125, %v5005_v26  ;;  %v6920_v26 = vld [vmem:[%s8738_s9] ss:$0 sm:$0xff] }
0x130b   :  { %v5028_v8 = vadd.f32 1e-05, %v5022_v42 }
0x130c   :  { %v5027_v29 = vadd.f32 1e-05, %v5021_v13 }
0x130d   :  { %6898 = vrsqrt.f32 %v5028_v8 }
0x130e   :  { %6900 = vrsqrt.f32 %v5027_v29 }
0x1311   :  { %v5011_v31 = vpop.xlane.xlu0 %5010 }
0x1312   :  { %v5023_v25 = vmul.f32 0.03125, %v5011_v31 }
0x1314   :  { %v5029_v55 = vadd.f32 1e-05, %v5023_v25 }
0x1315   :  { %v5014_v0 = vpop.xlane.xlu1 %5013 }
0x1316   :  { %6902 = vrsqrt.f32 %v5029_v55  ;;  %v5024_v37 = vmul.f32 0.03125, %v5014_v0 }
0x1317   :  { %v6899_v9 = vpop.eup %6898 }
0x1318   :  { %v6901_v52 = vpop.eup %6900  ;;  %v5040_v53 = vmul.f32 %v6899_v9, %v4992_v30  ;;  %v5030_v54 = vadd.f32 1e-05, %v5024_v37 }
0x1319   :  { %v5020_v34 = vpop.xlane.xlu1 %5019  ;;  %v5017_v47 = vpop.xlane.xlu0 %5016  ;;  %v5039_v44 = vmul.f32 %v6901_v52, %v4991_v2 }
0x131a   :  { %v5046_v32 = vmul.f32 %v5040_v53, %v7911_v63  ;;  %6904 = vrsqrt.f32 %v5030_v54  ;;  %v5026_v49 = vmul.f32 0.03125, %v5020_v34  ;;  %v5025_v59 = vmul.f32 0.03125, %v5017_v47 }
0x131b   :  { %v5045_v36 = vmul.f32 %v5039_v44, %v7911_v63 }
0x131c   :  { %v5032_v16 = vadd.f32 1e-05, %v5026_v49  ;;  %v5031_v45 = vadd.f32 1e-05, %v5025_v59  ;;  %v5052_v21 = vadd.f32 %v5046_v32, %v7915_v41 }
0x131d   :  { %v5051_v27 = vadd.f32 %v5045_v36, %v7915_v41 }
0x131e   :  { %6906 = vrsqrt.f32 %v5032_v16 }
0x131f   :  { %6908 = vrsqrt.f32 %v5031_v45  ;;  %6269 = vmatprep.mubr.msk.f32.mxu0 %vm67_vm0, %v5051_v27 }
0x1320   :  { %v6903_v56 = vpop.eup %6902  ;;  %6270 = vmatmul.mubr.msk.f32.vlgmr.msra.gmra.mrb[116].mxu0 %vm67_vm0, %v5052_v21 }
0x1321   :  { %v5041_v24 = vmul.f32 %v6903_v56, %v4993_v4 }
0x1323   :  { %v5047_v57 = vmul.f32 %v5041_v24, %v7911_v63 }
0x1324   :  { %v6905_v17 = vpop.eup %6904 }
0x1325   :  { %v5053_v58 = vadd.f32 %v5047_v57, %v7915_v41  ;;  %v5042_v43 = vmul.f32 %v6905_v17, %v4994_v12 }
0x1327   :  { %6272 = vmatprep.mubr.msk.f32.mxu0 %vm67_vm0, %v5053_v58  ;;  %v5048_v28 = vmul.f32 %v5042_v43, %v7911_v63 }
0x1328   :  { %v6907_v14 = vpop.eup %6906 }
0x1329   :  { %v6909_v30 = vpop.eup %6908  ;;  %v5054_v2 = vadd.f32 %v5048_v28, %v7915_v41  ;;  %v5044_v60 = vmul.f32 %v6907_v14, %v4996_v38 }
0x132a   :  { %v5043_v51 = vmul.f32 %v6909_v30, %v4995_v3 }
0x132b   :  { %6273 = vmatmul.mubr.msk.f32.gmra.mrb[118].mxu0 %vm67_vm0, %v5054_v2  ;;  %v5050_v46 = vmul.f32 %v5044_v60, %v7911_v63 }
0x132c   :  { %v5049_v61 = vmul.f32 %v5043_v51, %v7911_v63 }
0x132d   :  { %v5056_v10 = vadd.f32 %v5050_v46, %v7915_v41 }
0x132e   :  { %v5055_v18 = vadd.f32 %v5049_v61, %v7915_v41 }
0x1330   :  { %6275 = vmatprep.mubr.msk.f32.mxu0 %vm67_vm0, %v5055_v18 }
0x1331   :  { %6276 = vmatmul.mubr.msk.f32.gmra.mrb[120].mxu0 %vm67_vm0, %v5056_v10 }
0x13f3   :  { %v6271_v4 = vpop.f32.mrb[116].mxu0 }
0x13f4   :  { %v5147_v39 = vadd.f32 %v6919_v6, %v6271_v4  ;;  %v5141_v7 = vpop.f32.mrb[117].mxu0 }
0x13f5   :  { %v5142_v12 = vadd.f32 %v6919_v6, %v5141_v7 }
0x13f6   :  { %v5171_v40 = vmax.f32 %v5147_v39, 0.0 }
0x13f7   :  { %v5170_v19 = vmax.f32 %v5142_v12, 0.0 }
0x13f9   :  { %6294 = vmatprep.mubr.msk.f32.mxu1 %vm2575_vm6, %v5170_v19 }
0x13fa   :  { %6295 = vmatmul.mubr.msk.f32.vlgmr.msra.gmra.mrb[112].mxu1 %vm2575_vm6, %v5171_v40 }
0x13fe   :  { %v6274_v63 = vpop.f32.mrb[118].mxu0 }
0x13ff   :  { %v5157_v41 = vadd.f32 %v6919_v6, %v6274_v63  ;;  %v5151_v48 = vpop.f32.mrb[119].mxu0 }
0x1400   :  { %v5152_v20 = vadd.f32 %v6919_v6, %v5151_v48 }
0x1401   :  { %v5173_v22 = vmax.f32 %v5157_v41, 0.0 }
0x1402   :  { %v5172_v15 = vmax.f32 %v5152_v20, 0.0 }
0x1404   :  { %v6277_v38 = vpop.f32.mrb[120].mxu0  ;;  %6297 = vmatprep.mubr.msk.f32.mxu1 %vm2575_vm6, %v5172_v15 }
0x1405   :  { %v5167_v3 = vadd.f32 %v6919_v6, %v6277_v38  ;;  %v5161_v35 = vpop.f32.mrb[121].mxu0  ;;  %6298 = vmatmul.mubr.msk.f32.gmra.mrb[114].mxu1 %vm2575_vm6, %v5173_v22 }
0x1406   :  { %v5162_v23 = vadd.f32 %v6919_v6, %v5161_v35 }
0x1407   :  { %v5175_v11 = vmax.f32 %v5167_v3, 0.0 }
0x1408   :  { %v5174_v50 = vmax.f32 %v5162_v23, 0.0 }
0x140a   :  { %6300 = vmatprep.mubr.msk.f32.mxu1 %vm2575_vm6, %v5174_v50 }
0x140b   :  { %6301 = vmatmul.mubr.msk.f32.gmra.mrb[116].mxu1 %vm2575_vm6, %v5175_v11 }
0x14cd   :  { %v6296_v62 = vpop.f32.mrb[112].mxu1 }
0x14ce   :  { %v5260_v1 = vpop.f32.mrb[113].mxu1 }
0x14cf   :  { %v5285_v42 = vadd.f32 %v5260_v1, %v8658_v5 }
0x14d1   :  { %v5287_v13 = vadd.f32 %v6920_v26, %v5285_v42 }
0x14d3   :  { %5289 = vst.msk [vmem:[#allocation2] sm:$0xff] %vm67_vm0, %v5287_v13 }
0x14d8   :  { %v6299_v8 = vpop.f32.mrb[114].mxu1 }
0x14d9   :  { %v5286_v29 = vadd.f32 %v6299_v8, %v8665_v33  ;;  %v5269_v31 = vpop.f32.mrb[115].mxu1 }
0x14db   :  { %v5288_v25 = vadd.f32 %v6920_v26, %v5286_v29 }
0x14dd   :  { %5290 = vst.msk [vmem:[#allocation2 + $0x8] sm:$0xff] %vm67_vm0, %v5288_v25 }
0x14de   :  { %v6302_v55 = vpop.f32.mrb[116].mxu1 }
0x14df   :  { %6932 = shalt.err (!%p6929_p4)
}
0x14e0   :  { %s6933_s29 = scalar_lea.hbm %s8739_s10, 256 }
0x14e1   :  { %p6934_p5 = scmp.ne.s32.totalorder %s8739_s10, %s6933_s29  ;;  %p6937_p6 = scmp.lt.u32.totalorder %s6933_s29, %s8739_s10 }
0x14e3   :  { %p6939_p7 = pnand %p6937_p6, %p6934_p5 }
0x14e5   :  { %6942 = shalt.err (!%p6939_p7)
}
0x14e6   :  { %s6957_s2 = smov 128   ;;  %v5278_v5 = vpop.f32.mrb[117].mxu1 }
0x14e7   :  { %5302 = dma.vmem_to_hbm [thread:$0]  %s5297_s20, 256, %s8739_s10, [#allocation3], %s6957_s2, %s6957_s2, %s6953_s21  }
0x14e8   :  { %6943 = dma.done.wait [#allocation3], 256  }
0x14e9   :  { %6944 = vsyncadd [#allocation3], 4294967040 }
0x14ea   :  { %5306 = vsyncpa [#allocation3], 1 }

</bundles_post_ra>
